<compile_context>
chip_gen: v6e
topology: v6e:2x2x1
jax: 0.10.0
libtpu: 0.0.40
codegen_flags: <defaults>
</compile_context>

<pallas_src>
import functools

import numpy as np
import jax
import jax.numpy as jnp
from jax.experimental import pallas as pl
from jax.experimental.pallas import tpu as pltpu

# ----------------------------- config --------------------------------------
B, T, C = 2, 2, 3            # batch, num_frames, channels
IMG, PATCH = 16, 8           # image size, patch size
HIDDEN, NUM_HEADS, INTER = 32, 4, 64
NUM_LAYERS = 2
NUM_CLASSES = 13
LN_EPS = 1e-6
BN_EPS = 1e-5

PH = PW = IMG // PATCH
P = PH * PW                  # patches per frame
PT = P * T                   # patch tokens per batch element (rows ordered (p, t), t fastest)
MS = T + T * P               # spatial-attention rows per batch: [T cls rows] + [T*P patch rows]
NEG_INF = -1e30


# -------------------- static layout / mask constants ------------------------
def _build_layer_constants():
    # temporal attention: sequences are consecutive groups of T token rows (fixed patch p)
    gt = np.arange(PT) // T
    mask_t = np.where(gt[:, None] == gt[None, :], 0.0, NEG_INF).astype(np.float32)

    # spatial attention rows: [cls row per frame t] + [patch rows ordered (t, p), p fastest]
    gs = np.concatenate([np.arange(T), np.repeat(np.arange(T), P)])
    mask_s = np.where(gs[:, None] == gs[None, :], 0.0, NEG_INF).astype(np.float32)

    # cls placement: the first T spatial rows all take the batch's single CLS vector
    m_cls = np.zeros((MS, 1), np.float32)
    m_cls[:T, 0] = 1.0

    # patch placement: spatial row (T + t*P + p)  <-  token row (p*T + t)
    m_tok = np.zeros((MS, PT), np.float32)
    for t in range(T):
        for p in range(P):
            m_tok[T + t * P + p, p * T + t] = 1.0
    back_pt = np.ascontiguousarray(m_tok.T)      # token row <- spatial row (inverse perm)

    # mean over frames of each frame-sequence's CLS output
    avg_sp = np.zeros((1, MS), np.float32)
    avg_sp[0, :T] = 1.0 / T

    return tuple(jnp.asarray(a) for a in (mask_t, mask_s, m_cls, m_tok, avg_sp, back_pt))


LAYER_CONSTS = _build_layer_constants()


# ------------------------------ helpers -------------------------------------
def _const_map(ndim):
    return lambda *_: (0,) * ndim


def _as_row(p):
    return p.reshape(1, -1) if p.ndim == 1 else p


def _ln_rows(x, g, b, eps):
    mean = jnp.mean(x, axis=-1, keepdims=True)
    var = jnp.mean((x - mean) ** 2, axis=-1, keepdims=True)
    return (x - mean) * jax.lax.rsqrt(var + eps) * g + b


def _gelu(x):
    # exact (erf) GELU, matching torch.nn.GELU default
    return 0.5 * x * (1.0 + jax.lax.erf(x * 0.7071067811865476))


def _mha_rows(xn, qkv_w, qkv_b, out_w, out_b, mask, num_heads, scale):
    """Multi-head self-attention over flattened rows.  Independent sequences are
    delimited by an additive block-diagonal mask.  All heads run in one invocation;
    each head's context is pushed straight through the matching rows of the output
    projection (block matmul), so no lane-axis concat / transpose is materialised."""
    M, H = xn.shape
    dH = H // num_heads
    qkv = jnp.dot(xn, qkv_w, preferred_element_type=jnp.float32) + qkv_b      # (M, 3H)
    out = out_b                                                               # (1, H)
    for h in range(num_heads):
        q = qkv[:, h * dH:(h + 1) * dH]
        k = qkv[:, H + h * dH:H + (h + 1) * dH]
        v = qkv[:, 2 * H + h * dH:2 * H + (h + 1) * dH]
        # q @ k^T without an explicit transpose (contract last dims)
        s = jax.lax.dot_general(q, k, (((1,), (1,)), ((), ())),
                                preferred_element_type=jnp.float32) * scale + mask
        s = s - jnp.max(s, axis=-1, keepdims=True)
        p = jnp.exp(s)
        p = p * pl.reciprocal(jnp.sum(p, axis=-1, keepdims=True), approx=True)
        ctx = jnp.dot(p, v, preferred_element_type=jnp.float32)               # (M, dH)
        out = out + jnp.dot(ctx, out_w[h * dH:(h + 1) * dH, :],
                            preferred_element_type=jnp.float32)
    return out                                                                # (M, H)


# --------------------------- Pallas kernels ---------------------------------
def _embed_kernel(x_ref, w_ref, b_ref, pt_ref, o_ref):
    # x: (B*P*T, C*PATCH*PATCH) patch pixels, rows ordered (b, p, t)
    y = jnp.dot(x_ref[...], w_ref[...], preferred_element_type=jnp.float32) + b_ref[...]
    o_ref[...] = y + pt_ref[...]


def _layer_kernel(cls_ref, tok_ref,
                  t_ln_g, t_ln_b, t_qkv_w, t_qkv_b, t_out_w, t_out_b,
                  t_dense_w, t_dense_b,
                  s_ln_g, s_ln_b, s_qkv_w, s_qkv_b, s_out_w, s_out_b,
                  f_ln_g, f_ln_b, fc1_w, fc1_b, fc2_w, fc2_b,
                  mask_t, mask_s, m_cls, m_tok, avg_sp, back_pt,
                  o_cls_ref, o_tok_ref,
                  *, num_heads, scale, eps):
    # One grid step == one batch element (parallel axis, shards across v7x TCs).
    cls_in = cls_ref[0]            # (1, H)
    tokens = tok_ref[0]            # (PT, H), rows ordered (p, t), t fastest

    # ---- temporal attention (+ extra temporal dense), residual ----
    tn = _ln_rows(tokens, t_ln_g[...], t_ln_b[...], eps)
    t_attn = _mha_rows(tn, t_qkv_w[...], t_qkv_b[...], t_out_w[...], t_out_b[...],
                       mask_t[...], num_heads, scale)
    t_attn = jnp.dot(t_attn, t_dense_w[...],
                     preferred_element_type=jnp.float32) + t_dense_b[...]
    tokens_t = tokens + t_attn

    # ---- spatial attention: per-frame sequences [CLS; P patches] ----
    sp = (m_cls[...] * cls_in
          + jnp.dot(m_tok[...], tokens_t, preferred_element_type=jnp.float32))   # (MS, H)
    sn = _ln_rows(sp, s_ln_g[...], s_ln_b[...], eps)
    s_attn = _mha_rows(sn, s_qkv_w[...], s_qkv_b[...], s_out_w[...], s_out_b[...],
                       mask_s[...], num_heads, scale)
    cls_res = jnp.dot(avg_sp[...], s_attn, preferred_element_type=jnp.float32)   # (1, H)
    tok_res = jnp.dot(back_pt[...], s_attn, preferred_element_type=jnp.float32)  # (PT, H)

    cls_h = cls_in + cls_res
    tok_h = tokens_t + tok_res

    # ---- MLP (layernorm_after -> fc1 -> GELU -> fc2), residual ----
    def mlp(x):
        y = _ln_rows(x, f_ln_g[...], f_ln_b[...], eps)
        y = jnp.dot(y, fc1_w[...], preferred_element_type=jnp.float32) + fc1_b[...]
        y = _gelu(y)
        y = jnp.dot(y, fc2_w[...], preferred_element_type=jnp.float32) + fc2_b[...]
        return x + y

    o_cls_ref[0] = mlp(cls_h)
    o_tok_ref[0] = mlp(tok_h)


def _head_kernel(x_ref, ln_g, ln_b,
                 w1, b1, s1, t1, w2, b2, s2, t2,
                 w3, b3, s3, t3, w4, b4, s4, t4,
                 wf, bf, o_ref, *, eps):
    # Final LayerNorm (per-row, so applying it to CLS rows only is exact) followed by
    # 4 x (Linear -> BN(eval) -> ReLU) and the final Linear, all chained in VMEM.
    x = _ln_rows(x_ref[...], ln_g[...], ln_b[...], eps)
    for w, b, s, t in ((w1, b1, s1, t1), (w2, b2, s2, t2),
                       (w3, b3, s3, t3), (w4, b4, s4, t4)):
        x = jnp.dot(x, w[...], preferred_element_type=jnp.float32) + b[...]
        x = jnp.maximum(x * s[...] + t[...], 0.0)
    o_ref[...] = jnp.dot(x, wf[...], preferred_element_type=jnp.float32) + bf[...]


# ------------------------- kernel wrappers ----------------------------------
def patch_embed(x2d, w, b, pos_time):
    M, K = x2d.shape
    H = w.shape[1]
    args = (x2d, w, b.reshape(1, H), pos_time)
    return pl.pallas_call(
        _embed_kernel,
        grid=(1,),
        out_shape=jax.ShapeDtypeStruct((M, H), jnp.float32),
        in_specs=[pl.BlockSpec(a.shape, _const_map(a.ndim)) for a in args],
        out_specs=pl.BlockSpec((M, H), _const_map(2)),
    )(*args)


def timesformer_layer(cls_tok, tokens, lp):
    Bb = cls_tok.shape[0]
    H = cls_tok.shape[-1]
    scale = float(H // NUM_HEADS) ** -0.5

    params_list = [_as_row(lp[k]) for k in (
        "t_ln_g", "t_ln_b", "t_qkv_w", "t_qkv_b", "t_out_w", "t_out_b",
        "t_dense_w", "t_dense_b",
        "ln1_g", "ln1_b", "s_qkv_w", "s_qkv_b", "s_out_w", "s_out_b",
        "ln2_g", "ln2_b", "fc1_w", "fc1_b", "fc2_w", "fc2_b")]
    const_list = list(LAYER_CONSTS)
    args = [cls_tok, tokens] + params_list + const_list

    in_specs = ([pl.BlockSpec((1, 1, H), lambda b: (b, 0, 0)),
                 pl.BlockSpec((1, PT, H), lambda b: (b, 0, 0))]
                + [pl.BlockSpec(a.shape, _const_map(a.ndim))
                   for a in params_list + const_list])
    out_shape = (jax.ShapeDtypeStruct((Bb, 1, H), jnp.float32),
                 jax.ShapeDtypeStruct((Bb, PT, H), jnp.float32))
    out_specs = (pl.BlockSpec((1, 1, H), lambda b: (b, 0, 0)),
                 pl.BlockSpec((1, PT, H), lambda b: (b, 0, 0)))

    return pl.pallas_call(
        functools.partial(_layer_kernel, num_heads=NUM_HEADS, scale=scale, eps=LN_EPS),
        grid=(Bb,),
        out_shape=out_shape,
        in_specs=in_specs,
        out_specs=out_specs,
        compiler_params=pltpu.CompilerParams(dimension_semantics=("parallel",)),
    )(*args)


def classification_head(pooled, params):
    Bb, H = pooled.shape
    args = [pooled, params["ln_f_g"].reshape(1, H), params["ln_f_b"].reshape(1, H)]
    for st in params["head_stages"]:
        n = st["w"].shape[1]
        scale = st["bn_g"] / jnp.sqrt(st["bn_var"] + BN_EPS)     # BN folded (eval mode)
        shift = st["bn_b"] - st["bn_mean"] * scale
        args += [st["w"], st["b"].reshape(1, n), scale.reshape(1, n), shift.reshape(1, n)]
    args += [params["head_w"], params["head_b"].reshape(1, NUM_CLASSES)]
    return pl.pallas_call(
        functools.partial(_head_kernel, eps=LN_EPS),
        grid=(1,),
        out_shape=jax.ShapeDtypeStruct((Bb, NUM_CLASSES), jnp.float32),
        in_specs=[pl.BlockSpec(a.shape, _const_map(a.ndim)) for a in args],
        out_specs=pl.BlockSpec((Bb, NUM_CLASSES), _const_map(2)),
    )(*args)


# ----------------------- TimesFormer forward --------------------------------
def eden_forward(pixel_values, params):
    Bb, Tt = pixel_values.shape[0], pixel_values.shape[1]
    H = HIDDEN

    # Patch extraction directly in (b, p, t)-row order (pure data layout, left to XLA);
    # Conv2d(kernel=stride=patch) == per-patch flatten + matmul done in the Pallas kernel.
    x = pixel_values.reshape(Bb, Tt, C, PH, PATCH, PW, PATCH)
    x = x.transpose(0, 3, 5, 1, 2, 4, 6).reshape(Bb * P * Tt, C * PATCH * PATCH)

    # positional + temporal embeddings per (p, t) token row (batch independent)
    pos_time = (params["pos_emb"][0, 1:, :][:, None, :]
                + params["time_emb"][0][None, :, :]).reshape(P * Tt, H)
    pos_time = jnp.tile(pos_time, (Bb, 1))

    tokens = patch_embed(x, params["patch_w"], params["patch_b"], pos_time)
    tokens = tokens.reshape(Bb, P * Tt, H)

    # CLS token init (= cls_token + pos_emb[0]).  HF's `embeddings[:batch, 0]` quirk is
    # numerically identical here because every frame's CLS embedding is this same vector.
    cls_vec = (params["cls_token"][0, 0] + params["pos_emb"][0, 0]).reshape(1, 1, H)
    cls_tok = jnp.broadcast_to(cls_vec, (Bb, 1, H))

    for lp in params["layers"]:
        cls_tok, tokens = timesformer_layer(cls_tok, tokens, lp)

    pooled = cls_tok.reshape(Bb, H)        # final LN is applied inside the head kernel
    return classification_head(pooled, params)


# ----------------------------- params ---------------------------------------
def init_params(key):
    keys = iter(jax.random.split(key, 256))

    def nrm(shape, std=0.02):
        return std * jax.random.normal(next(keys), shape, jnp.float32)

    H = HIDDEN
    params = {
        "patch_w": nrm((C * PATCH * PATCH, H)),
        "patch_b": nrm((H,)),
        "cls_token": nrm((1, 1, H)),
        "pos_emb": nrm((1, P + 1, H)),
        "time_emb": nrm((1, T, H)),
        "ln_f_g": jnp.ones((H,), jnp.float32),
        "ln_f_b": jnp.zeros((H,), jnp.float32),
        "layers": [],
        "head_stages": [],
    }
    for _ in range(NUM_LAYERS):
        params["layers"].append({
            "t_ln_g": jnp.ones((H,), jnp.float32), "t_ln_b": jnp.zeros((H,), jnp.float32),
            "t_qkv_w": nrm((H, 3 * H)), "t_qkv_b": nrm((3 * H,)),
            "t_out_w": nrm((H, H)), "t_out_b": nrm((H,)),
            "t_dense_w": nrm((H, H)), "t_dense_b": nrm((H,)),
            "ln1_g": jnp.ones((H,), jnp.float32), "ln1_b": jnp.zeros((H,), jnp.float32),
            "s_qkv_w": nrm((H, 3 * H)), "s_qkv_b": nrm((3 * H,)),
            "s_out_w": nrm((H, H)), "s_out_b": nrm((H,)),
            "ln2_g": jnp.ones((H,), jnp.float32), "ln2_b": jnp.zeros((H,), jnp.float32),
            "fc1_w": nrm((H, INTER)), "fc1_b": nrm((INTER,)),
            "fc2_w": nrm((INTER, H)), "fc2_b": nrm((H,)),
        })
    dims = [H, H // 2, H // 4, H // 8, H // 16]
    for i in range(4):
        din, dout = dims[i], dims[i + 1]
        params["head_stages"].append({
            "w": nrm((din, dout)), "b": nrm((dout,)),
            "bn_g": jnp.ones((dout,), jnp.float32) + nrm((dout,), 0.01),
            "bn_b": nrm((dout,), 0.01),
            "bn_mean": nrm((dout,), 0.01),
            "bn_var": jnp.ones((dout,), jnp.float32) + jnp.abs(nrm((dout,), 0.01)),
        })
    params["head_w"] = nrm((H // 16, NUM_CLASSES))
    params["head_b"] = nrm((NUM_CLASSES,))
    return params


# ------------------------------ main -----------------------------------------
if __name__ == "__main__":
    key = jax.random.PRNGKey(0)
    pkey, xkey = jax.random.split(key)
    params = init_params(pkey)
    pixel_values = jax.random.normal(xkey, (B, T, C, IMG, IMG), jnp.float32)

    logits = jax.jit(eden_forward)(pixel_values, params)
    jax.block_until_ready(logits)
    assert logits.shape == (B, NUM_CLASSES)
    assert bool(jnp.all(jnp.isfinite(logits)))
    print("KERNEL_OK")
</pallas_src>

<mosaic_0001>
module attributes {stable_mosaic.version = 11 : i64} {
  func.func @_embed_kernel(%arg0: i32, %arg1: memref<16x192xf32, #tpu.memory_space<vmem>>, %arg2: memref<192x32xf32, #tpu.memory_space<vmem>>, %arg3: memref<1x32xf32, #tpu.memory_space<vmem>>, %arg4: memref<16x32xf32, #tpu.memory_space<vmem>>, %arg5: memref<16x32xf32, #tpu.memory_space<vmem>>) attributes {dimension_semantics = [#tpu.dimension_semantics<arbitrary>], iteration_bounds = array<i64: 1>, scalar_prefetch = 0 : i64, scratch_operands = 0 : i64, tpu.core_type = #tpu.core_type<tc>, window_params = [{pipeline_mode = #tpu.pipeline_mode<synchronous>, transform_indices = @transform_0, window_bounds = array<i64: 16, 192>}, {pipeline_mode = #tpu.pipeline_mode<synchronous>, transform_indices = @transform_1, window_bounds = array<i64: 192, 32>}, {pipeline_mode = #tpu.pipeline_mode<synchronous>, transform_indices = @transform_2, window_bounds = array<i64: 1, 32>}, {pipeline_mode = #tpu.pipeline_mode<synchronous>, transform_indices = @transform_3, window_bounds = array<i64: 16, 32>}, {pipeline_mode = #tpu.pipeline_mode<synchronous>, transform_indices = @transform_4, window_bounds = array<i64: 16, 32>}]} {
    %c0 = arith.constant 0 : index
    %c0_0 = arith.constant 0 : index
    %0 = vector.load %arg1[%c0, %c0_0] : memref<16x192xf32, #tpu.memory_space<vmem>>, vector<16x192xf32>
    %c0_1 = arith.constant 0 : index
    %c0_2 = arith.constant 0 : index
    %1 = vector.load %arg2[%c0_1, %c0_2] : memref<192x32xf32, #tpu.memory_space<vmem>>, vector<192x32xf32>
    %cst = arith.constant dense<0.000000e+00> : vector<16x32xf32>
    %2 = tpu.matmul %0, %1, %cst {dimension_numbers = #tpu.dot_dimension_numbers<[1], [0], [0], [1], [0, 0, 1, 1], [], []>} : vector<16x192xf32>, vector<192x32xf32>, vector<16x32xf32> -> vector<16x32xf32>
    %c0_3 = arith.constant 0 : index
    %c0_4 = arith.constant 0 : index
    %3 = vector.load %arg3[%c0_3, %c0_4] : memref<1x32xf32, #tpu.memory_space<vmem>>, vector<1x32xf32>
    %4 = vector.broadcast %3 : vector<1x32xf32> to vector<16x32xf32>
    %5 = arith.addf %2, %4 : vector<16x32xf32>
    %c0_5 = arith.constant 0 : index
    %c0_6 = arith.constant 0 : index
    %6 = vector.load %arg4[%c0_5, %c0_6] : memref<16x32xf32, #tpu.memory_space<vmem>>, vector<16x32xf32>
    %7 = arith.addf %5, %6 : vector<16x32xf32>
    %c0_7 = arith.constant 0 : index
    %c0_8 = arith.constant 0 : index
    %8 = vector.load %arg5[%c0_7, %c0_8] : memref<16x32xf32, #tpu.memory_space<vmem>>, vector<16x32xf32>
    tpu.vector_store %arg5[%c0_7, %c0_8], %7 {strides = array<i32>} : memref<16x32xf32, #tpu.memory_space<vmem>>, vector<16x32xf32>,
    return
  }
  func.func @transform_0(%arg0: i32) -> (i32, i32) {
    %c0_i32 = arith.constant 0 : i32
    %c0_i32_0 = arith.constant 0 : i32
    %c0_i32_1 = arith.constant 0 : i32
    return %c0_i32, %c0_i32_0 : i32, i32
  }
  func.func @transform_1(%arg0: i32) -> (i32, i32) {
    %c0_i32 = arith.constant 0 : i32
    %c0_i32_0 = arith.constant 0 : i32
    %c0_i32_1 = arith.constant 0 : i32
    return %c0_i32, %c0_i32_0 : i32, i32
  }
  func.func @transform_2(%arg0: i32) -> (i32, i32) {
    %c0_i32 = arith.constant 0 : i32
    %c0_i32_0 = arith.constant 0 : i32
    %c0_i32_1 = arith.constant 0 : i32
    return %c0_i32, %c0_i32_0 : i32, i32
  }
  func.func @transform_3(%arg0: i32) -> (i32, i32) {
    %c0_i32 = arith.constant 0 : i32
    %c0_i32_0 = arith.constant 0 : i32
    %c0_i32_1 = arith.constant 0 : i32
    return %c0_i32, %c0_i32_0 : i32, i32
  }
  func.func @transform_4(%arg0: i32) -> (i32, i32) {
    %c0_i32 = arith.constant 0 : i32
    %c0_i32_0 = arith.constant 0 : i32
    %c0_i32_1 = arith.constant 0 : i32
    return %c0_i32, %c0_i32_0 : i32, i32
  }
}

module attributes {stable_mosaic.version = 11 : i64} {
  func.func @_layer_kernel(%arg0: i32, %arg1: memref<1x1x32xf32, #tpu.memory_space<vmem>>, %arg2: memref<1x8x32xf32, #tpu.memory_space<vmem>>, %arg3: memref<1x32xf32, #tpu.memory_space<vmem>>, %arg4: memref<1x32xf32, #tpu.memory_space<vmem>>, %arg5: memref<32x96xf32, #tpu.memory_space<vmem>>, %arg6: memref<1x96xf32, #tpu.memory_space<vmem>>, %arg7: memref<32x32xf32, #tpu.memory_space<vmem>>, %arg8: memref<1x32xf32, #tpu.memory_space<vmem>>, %arg9: memref<32x32xf32, #tpu.memory_space<vmem>>, %arg10: memref<1x32xf32, #tpu.memory_space<vmem>>, %arg11: memref<1x32xf32, #tpu.memory_space<vmem>>, %arg12: memref<1x32xf32, #tpu.memory_space<vmem>>, %arg13: memref<32x96xf32, #tpu.memory_space<vmem>>, %arg14: memref<1x96xf32, #tpu.memory_space<vmem>>, %arg15: memref<32x32xf32, #tpu.memory_space<vmem>>, %arg16: memref<1x32xf32, #tpu.memory_space<vmem>>, %arg17: memref<1x32xf32, #tpu.memory_space<vmem>>, %arg18: memref<1x32xf32, #tpu.memory_space<vmem>>, %arg19: memref<32x64xf32, #tpu.memory_space<vmem>>, %arg20: memref<1x64xf32, #tpu.memory_space<vmem>>, %arg21: memref<64x32xf32, #tpu.memory_space<vmem>>, %arg22: memref<1x32xf32, #tpu.memory_space<vmem>>, %arg23: memref<8x8xf32, #tpu.memory_space<vmem>>, %arg24: memref<10x10xf32, #tpu.memory_space<vmem>>, %arg25: memref<10x1xf32, #tpu.memory_space<vmem>>, %arg26: memref<10x8xf32, #tpu.memory_space<vmem>>, %arg27: memref<1x10xf32, #tpu.memory_space<vmem>>, %arg28: memref<8x10xf32, #tpu.memory_space<vmem>>, %arg29: memref<1x1x32xf32, #tpu.memory_space<vmem>>, %arg30: memref<1x8x32xf32, #tpu.memory_space<vmem>>) attributes {dimension_semantics = [#tpu.dimension_semantics<parallel>], iteration_bounds = array<i64: 2>, scalar_prefetch = 0 : i64, scratch_operands = 0 : i64, tpu.core_type = #tpu.core_type<tc>, window_params = [{transform_indices = @transform_0, window_bounds = array<i64: 1, 1, 32>}, {transform_indices = @transform_1, window_bounds = array<i64: 1, 8, 32>}, {pipeline_mode = #tpu.pipeline_mode<synchronous>, transform_indices = @transform_2, window_bounds = array<i64: 1, 32>}, {pipeline_mode = #tpu.pipeline_mode<synchronous>, transform_indices = @transform_3, window_bounds = array<i64: 1, 32>}, {pipeline_mode = #tpu.pipeline_mode<synchronous>, transform_indices = @transform_4, window_bounds = array<i64: 32, 96>}, {pipeline_mode = #tpu.pipeline_mode<synchronous>, transform_indices = @transform_5, window_bounds = array<i64: 1, 96>}, {pipeline_mode = #tpu.pipeline_mode<synchronous>, transform_indices = @transform_6, window_bounds = array<i64: 32, 32>}, {pipeline_mode = #tpu.pipeline_mode<synchronous>, transform_indices = @transform_7, window_bounds = array<i64: 1, 32>}, {pipeline_mode = #tpu.pipeline_mode<synchronous>, transform_indices = @transform_8, window_bounds = array<i64: 32, 32>}, {pipeline_mode = #tpu.pipeline_mode<synchronous>, transform_indices = @transform_9, window_bounds = array<i64: 1, 32>}, {pipeline_mode = #tpu.pipeline_mode<synchronous>, transform_indices = @transform_10, window_bounds = array<i64: 1, 32>}, {pipeline_mode = #tpu.pipeline_mode<synchronous>, transform_indices = @transform_11, window_bounds = array<i64: 1, 32>}, {pipeline_mode = #tpu.pipeline_mode<synchronous>, transform_indices = @transform_12, window_bounds = array<i64: 32, 96>}, {pipeline_mode = #tpu.pipeline_mode<synchronous>, transform_indices = @transform_13, window_bounds = array<i64: 1, 96>}, {pipeline_mode = #tpu.pipeline_mode<synchronous>, transform_indices = @transform_14, window_bounds = array<i64: 32, 32>}, {pipeline_mode = #tpu.pipeline_mode<synchronous>, transform_indices = @transform_15, window_bounds = array<i64: 1, 32>}, {pipeline_mode = #tpu.pipeline_mode<synchronous>, transform_indices = @transform_16, window_bounds = array<i64: 1, 32>}, {pipeline_mode = #tpu.pipeline_mode<synchronous>, transform_indices = @transform_17, window_bounds = array<i64: 1, 32>}, {pipeline_mode = #tpu.pipeline_mode<synchronous>, transform_indices = @transform_18, window_bounds = array<i64: 32, 64>}, {pipeline_mode = #tpu.pipeline_mode<synchronous>, transform_indices = @transform_19, window_bounds = array<i64: 1, 64>}, {pipeline_mode = #tpu.pipeline_mode<synchronous>, transform_indices = @transform_20, window_bounds = array<i64: 64, 32>}, {pipeline_mode = #tpu.pipeline_mode<synchronous>, transform_indices = @transform_21, window_bounds = array<i64: 1, 32>}, {pipeline_mode = #tpu.pipeline_mode<synchronous>, transform_indices = @transform_22, window_bounds = array<i64: 8, 8>}, {pipeline_mode = #tpu.pipeline_mode<synchronous>, transform_indices = @transform_23, window_bounds = array<i64: 10, 10>}, {pipeline_mode = #tpu.pipeline_mode<synchronous>, transform_indices = @transform_24, window_bounds = array<i64: 10, 1>}, {pipeline_mode = #tpu.pipeline_mode<synchronous>, transform_indices = @transform_25, window_bounds = array<i64: 10, 8>}, {pipeline_mode = #tpu.pipeline_mode<synchronous>, transform_indices = @transform_26, window_bounds = array<i64: 1, 10>}, {pipeline_mode = #tpu.pipeline_mode<synchronous>, transform_indices = @transform_27, window_bounds = array<i64: 8, 10>}, {transform_indices = @transform_28, window_bounds = array<i64: 1, 1, 32>}, {transform_indices = @transform_29, window_bounds = array<i64: 1, 8, 32>}]} {
    %c0 = arith.constant 0 : index
    %c0_0 = arith.constant 0 : index
    %c0_1 = arith.constant 0 : index
    %0 = vector.load %arg1[%c0, %c0_0, %c0_1] : memref<1x1x32xf32, #tpu.memory_space<vmem>>, vector<1x1x32xf32>
    %1 = vector.shape_cast %0 : vector<1x1x32xf32> to vector<1x32xf32>
    %c0_2 = arith.constant 0 : index
    %c0_3 = arith.constant 0 : index
    %c0_4 = arith.constant 0 : index
    %2 = vector.load %arg2[%c0_2, %c0_3, %c0_4] : memref<1x8x32xf32, #tpu.memory_space<vmem>>, vector<1x8x32xf32>
    %3 = vector.shape_cast %2 : vector<1x8x32xf32> to vector<8x32xf32>
    %c0_5 = arith.constant 0 : index
    %c0_6 = arith.constant 0 : index
    %4 = vector.load %arg3[%c0_5, %c0_6] : memref<1x32xf32, #tpu.memory_space<vmem>>, vector<1x32xf32>
    %c0_7 = arith.constant 0 : index
    %c0_8 = arith.constant 0 : index
    %5 = vector.load %arg4[%c0_7, %c0_8] : memref<1x32xf32, #tpu.memory_space<vmem>>, vector<1x32xf32>
    %cst = arith.constant dense<0.000000e+00> : vector<8xf32>
    %6 = vector.multi_reduction <add>, %3, %cst [1] : vector<8x32xf32> to vector<8xf32>
    %7 = vector.shape_cast %6 : vector<8xf32> to vector<8x1xf32>
    %cst_9 = arith.constant 3.200000e+01 : f32
    %8 = vector.broadcast %cst_9 : f32 to vector<8x1xf32>
    %9 = arith.divf %7, %8 : vector<8x1xf32>
    %10 = vector.broadcast %9 : vector<8x1xf32> to vector<8x32xf32>
    %11 = arith.subf %3, %10 : vector<8x32xf32>
    %12 = arith.mulf %11, %11 : vector<8x32xf32>
    %cst_10 = arith.constant dense<0.000000e+00> : vector<8xf32>
    %13 = vector.multi_reduction <add>, %12, %cst_10 [1] : vector<8x32xf32> to vector<8xf32>
    %14 = vector.shape_cast %13 : vector<8xf32> to vector<8x1xf32>
    %cst_11 = arith.constant 3.200000e+01 : f32
    %15 = vector.broadcast %cst_11 : f32 to vector<8x1xf32>
    %16 = arith.divf %14, %15 : vector<8x1xf32>
    %17 = vector.broadcast %9 : vector<8x1xf32> to vector<8x32xf32>
    %18 = arith.subf %3, %17 : vector<8x32xf32>
    %cst_12 = arith.constant 9.99999997E-7 : f32
    %19 = vector.broadcast %cst_12 : f32 to vector<8x1xf32>
    %20 = arith.addf %16, %19 : vector<8x1xf32>
    %21 = math.rsqrt %20 : vector<8x1xf32>
    %22 = vector.broadcast %21 : vector<8x1xf32> to vector<8x32xf32>
    %23 = arith.mulf %18, %22 : vector<8x32xf32>
    %24 = vector.broadcast %4 : vector<1x32xf32> to vector<8x32xf32>
    %25 = arith.mulf %23, %24 : vector<8x32xf32>
    %26 = vector.broadcast %5 : vector<1x32xf32> to vector<8x32xf32>
    %27 = arith.addf %25, %26 : vector<8x32xf32>
    %c0_13 = arith.constant 0 : index
    %c0_14 = arith.constant 0 : index
    %28 = vector.load %arg5[%c0_13, %c0_14] : memref<32x96xf32, #tpu.memory_space<vmem>>, vector<32x96xf32>
    %c0_15 = arith.constant 0 : index
    %c0_16 = arith.constant 0 : index
    %29 = vector.load %arg6[%c0_15, %c0_16] : memref<1x96xf32, #tpu.memory_space<vmem>>, vector<1x96xf32>
    %c0_17 = arith.constant 0 : index
    %c0_18 = arith.constant 0 : index
    %30 = vector.load %arg7[%c0_17, %c0_18] : memref<32x32xf32, #tpu.memory_space<vmem>>, vector<32x32xf32>
    %c0_19 = arith.constant 0 : index
    %c0_20 = arith.constant 0 : index
    %31 = vector.load %arg8[%c0_19, %c0_20] : memref<1x32xf32, #tpu.memory_space<vmem>>, vector<1x32xf32>
    %c0_21 = arith.constant 0 : index
    %c0_22 = arith.constant 0 : index
    %32 = vector.load %arg23[%c0_21, %c0_22] : memref<8x8xf32, #tpu.memory_space<vmem>>, vector<8x8xf32>
    %cst_23 = arith.constant dense<0.000000e+00> : vector<8x96xf32>
    %33 = tpu.matmul %27, %28, %cst_23 {dimension_numbers = #tpu.dot_dimension_numbers<[1], [0], [0], [1], [0, 0, 1, 1], [], []>} : vector<8x32xf32>, vector<32x96xf32>, vector<8x96xf32> -> vector<8x96xf32>
    %34 = vector.broadcast %29 : vector<1x96xf32> to vector<8x96xf32>
    %35 = arith.addf %33, %34 : vector<8x96xf32>
    %36 = vector.extract_strided_slice %35 {offsets = [0, 0], sizes = [8, 8], strides = [1, 1]} : vector<8x96xf32> to vector<8x8xf32>
    %37 = vector.extract_strided_slice %35 {offsets = [0, 32], sizes = [8, 8], strides = [1, 1]} : vector<8x96xf32> to vector<8x8xf32>
    %38 = vector.extract_strided_slice %35 {offsets = [0, 64], sizes = [8, 8], strides = [1, 1]} : vector<8x96xf32> to vector<8x8xf32>
    %cst_24 = arith.constant dense<0.000000e+00> : vector<8x8xf32>
    %39 = tpu.matmul %36, %37, %cst_24 {dimension_numbers = #tpu.dot_dimension_numbers<[1], [1], [0], [0], [0, 0, 1, 0], [], []>} : vector<8x8xf32>, vector<8x8xf32>, vector<8x8xf32> -> vector<8x8xf32>
    %cst_25 = arith.constant 0.353553385 : f32
    %40 = vector.broadcast %cst_25 : f32 to vector<8x8xf32>
    %41 = arith.mulf %39, %40 : vector<8x8xf32>
    %42 = arith.addf %41, %32 : vector<8x8xf32>
    %cst_26 = arith.constant dense<0xFF800000> : vector<8xf32>
    %43 = vector.multi_reduction <maximumf>, %42, %cst_26 [1] : vector<8x8xf32> to vector<8xf32>
    %44 = vector.shape_cast %43 : vector<8xf32> to vector<8x1xf32>
    %45 = vector.broadcast %44 : vector<8x1xf32> to vector<8x8xf32>
    %46 = arith.subf %42, %45 : vector<8x8xf32>
    %47 = math.exp %46 : vector<8x8xf32>
    %cst_27 = arith.constant dense<0.000000e+00> : vector<8xf32>
    %48 = vector.multi_reduction <add>, %47, %cst_27 [1] : vector<8x8xf32> to vector<8xf32>
    %49 = vector.shape_cast %48 : vector<8xf32> to vector<8x1xf32>
    %50 = tpu.reciprocal %49 {approx = true} : vector<8x1xf32> -> vector<8x1xf32>
    %51 = vector.broadcast %50 : vector<8x1xf32> to vector<8x8xf32>
    %52 = arith.mulf %47, %51 : vector<8x8xf32>
    %cst_28 = arith.constant dense<0.000000e+00> : vector<8x8xf32>
    %53 = tpu.matmul %52, %38, %cst_28 {dimension_numbers = #tpu.dot_dimension_numbers<[1], [0], [0], [1], [0, 0, 1, 1], [], []>} : vector<8x8xf32>, vector<8x8xf32>, vector<8x8xf32> -> vector<8x8xf32>
    %54 = vector.extract_strided_slice %30 {offsets = [0, 0], sizes = [8, 32], strides = [1, 1]} : vector<32x32xf32> to vector<8x32xf32>
    %cst_29 = arith.constant dense<0.000000e+00> : vector<8x32xf32>
    %55 = tpu.matmul %53, %54, %cst_29 {dimension_numbers = #tpu.dot_dimension_numbers<[1], [0], [0], [1], [0, 0, 1, 1], [], []>} : vector<8x8xf32>, vector<8x32xf32>, vector<8x32xf32> -> vector<8x32xf32>
    %56 = vector.broadcast %31 : vector<1x32xf32> to vector<8x32xf32>
    %57 = arith.addf %56, %55 : vector<8x32xf32>
    %58 = vector.extract_strided_slice %35 {offsets = [0, 8], sizes = [8, 8], strides = [1, 1]} : vector<8x96xf32> to vector<8x8xf32>
    %59 = vector.extract_strided_slice %35 {offsets = [0, 40], sizes = [8, 8], strides = [1, 1]} : vector<8x96xf32> to vector<8x8xf32>
    %60 = vector.extract_strided_slice %35 {offsets = [0, 72], sizes = [8, 8], strides = [1, 1]} : vector<8x96xf32> to vector<8x8xf32>
    %cst_30 = arith.constant dense<0.000000e+00> : vector<8x8xf32>
    %61 = tpu.matmul %58, %59, %cst_30 {dimension_numbers = #tpu.dot_dimension_numbers<[1], [1], [0], [0], [0, 0, 1, 0], [], []>} : vector<8x8xf32>, vector<8x8xf32>, vector<8x8xf32> -> vector<8x8xf32>
    %cst_31 = arith.constant 0.353553385 : f32
    %62 = vector.broadcast %cst_31 : f32 to vector<8x8xf32>
    %63 = arith.mulf %61, %62 : vector<8x8xf32>
    %64 = arith.addf %63, %32 : vector<8x8xf32>
    %cst_32 = arith.constant dense<0xFF800000> : vector<8xf32>
    %65 = vector.multi_reduction <maximumf>, %64, %cst_32 [1] : vector<8x8xf32> to vector<8xf32>
    %66 = vector.shape_cast %65 : vector<8xf32> to vector<8x1xf32>
    %67 = vector.broadcast %66 : vector<8x1xf32> to vector<8x8xf32>
    %68 = arith.subf %64, %67 : vector<8x8xf32>
    %69 = math.exp %68 : vector<8x8xf32>
    %cst_33 = arith.constant dense<0.000000e+00> : vector<8xf32>
    %70 = vector.multi_reduction <add>, %69, %cst_33 [1] : vector<8x8xf32> to vector<8xf32>
    %71 = vector.shape_cast %70 : vector<8xf32> to vector<8x1xf32>
    %72 = tpu.reciprocal %71 {approx = true} : vector<8x1xf32> -> vector<8x1xf32>
    %73 = vector.broadcast %72 : vector<8x1xf32> to vector<8x8xf32>
    %74 = arith.mulf %69, %73 : vector<8x8xf32>
    %cst_34 = arith.constant dense<0.000000e+00> : vector<8x8xf32>
    %75 = tpu.matmul %74, %60, %cst_34 {dimension_numbers = #tpu.dot_dimension_numbers<[1], [0], [0], [1], [0, 0, 1, 1], [], []>} : vector<8x8xf32>, vector<8x8xf32>, vector<8x8xf32> -> vector<8x8xf32>
    %76 = vector.extract_strided_slice %30 {offsets = [8, 0], sizes = [8, 32], strides = [1, 1]} : vector<32x32xf32> to vector<8x32xf32>
    %cst_35 = arith.constant dense<0.000000e+00> : vector<8x32xf32>
    %77 = tpu.matmul %75, %76, %cst_35 {dimension_numbers = #tpu.dot_dimension_numbers<[1], [0], [0], [1], [0, 0, 1, 1], [], []>} : vector<8x8xf32>, vector<8x32xf32>, vector<8x32xf32> -> vector<8x32xf32>
    %78 = arith.addf %57, %77 : vector<8x32xf32>
    %79 = vector.extract_strided_slice %35 {offsets = [0, 16], sizes = [8, 8], strides = [1, 1]} : vector<8x96xf32> to vector<8x8xf32>
    %80 = vector.extract_strided_slice %35 {offsets = [0, 48], sizes = [8, 8], strides = [1, 1]} : vector<8x96xf32> to vector<8x8xf32>
    %81 = vector.extract_strided_slice %35 {offsets = [0, 80], sizes = [8, 8], strides = [1, 1]} : vector<8x96xf32> to vector<8x8xf32>
    %cst_36 = arith.constant dense<0.000000e+00> : vector<8x8xf32>
    %82 = tpu.matmul %79, %80, %cst_36 {dimension_numbers = #tpu.dot_dimension_numbers<[1], [1], [0], [0], [0, 0, 1, 0], [], []>} : vector<8x8xf32>, vector<8x8xf32>, vector<8x8xf32> -> vector<8x8xf32>
    %cst_37 = arith.constant 0.353553385 : f32
    %83 = vector.broadcast %cst_37 : f32 to vector<8x8xf32>
    %84 = arith.mulf %82, %83 : vector<8x8xf32>
    %85 = arith.addf %84, %32 : vector<8x8xf32>
    %cst_38 = arith.constant dense<0xFF800000> : vector<8xf32>
    %86 = vector.multi_reduction <maximumf>, %85, %cst_38 [1] : vector<8x8xf32> to vector<8xf32>
    %87 = vector.shape_cast %86 : vector<8xf32> to vector<8x1xf32>
    %88 = vector.broadcast %87 : vector<8x1xf32> to vector<8x8xf32>
    %89 = arith.subf %85, %88 : vector<8x8xf32>
    %90 = math.exp %89 : vector<8x8xf32>
    %cst_39 = arith.constant dense<0.000000e+00> : vector<8xf32>
    %91 = vector.multi_reduction <add>, %90, %cst_39 [1] : vector<8x8xf32> to vector<8xf32>
    %92 = vector.shape_cast %91 : vector<8xf32> to vector<8x1xf32>
    %93 = tpu.reciprocal %92 {approx = true} : vector<8x1xf32> -> vector<8x1xf32>
    %94 = vector.broadcast %93 : vector<8x1xf32> to vector<8x8xf32>
    %95 = arith.mulf %90, %94 : vector<8x8xf32>
    %cst_40 = arith.constant dense<0.000000e+00> : vector<8x8xf32>
    %96 = tpu.matmul %95, %81, %cst_40 {dimension_numbers = #tpu.dot_dimension_numbers<[1], [0], [0], [1], [0, 0, 1, 1], [], []>} : vector<8x8xf32>, vector<8x8xf32>, vector<8x8xf32> -> vector<8x8xf32>
    %97 = vector.extract_strided_slice %30 {offsets = [16, 0], sizes = [8, 32], strides = [1, 1]} : vector<32x32xf32> to vector<8x32xf32>
    %cst_41 = arith.constant dense<0.000000e+00> : vector<8x32xf32>
    %98 = tpu.matmul %96, %97, %cst_41 {dimension_numbers = #tpu.dot_dimension_numbers<[1], [0], [0], [1], [0, 0, 1, 1], [], []>} : vector<8x8xf32>, vector<8x32xf32>, vector<8x32xf32> -> vector<8x32xf32>
    %99 = arith.addf %78, %98 : vector<8x32xf32>
    %100 = vector.extract_strided_slice %35 {offsets = [0, 24], sizes = [8, 8], strides = [1, 1]} : vector<8x96xf32> to vector<8x8xf32>
    %101 = vector.extract_strided_slice %35 {offsets = [0, 56], sizes = [8, 8], strides = [1, 1]} : vector<8x96xf32> to vector<8x8xf32>
    %102 = vector.extract_strided_slice %35 {offsets = [0, 88], sizes = [8, 8], strides = [1, 1]} : vector<8x96xf32> to vector<8x8xf32>
    %cst_42 = arith.constant dense<0.000000e+00> : vector<8x8xf32>
    %103 = tpu.matmul %100, %101, %cst_42 {dimension_numbers = #tpu.dot_dimension_numbers<[1], [1], [0], [0], [0, 0, 1, 0], [], []>} : vector<8x8xf32>, vector<8x8xf32>, vector<8x8xf32> -> vector<8x8xf32>
    %cst_43 = arith.constant 0.353553385 : f32
    %104 = vector.broadcast %cst_43 : f32 to vector<8x8xf32>
    %105 = arith.mulf %103, %104 : vector<8x8xf32>
    %106 = arith.addf %105, %32 : vector<8x8xf32>
    %cst_44 = arith.constant dense<0xFF800000> : vector<8xf32>
    %107 = vector.multi_reduction <maximumf>, %106, %cst_44 [1] : vector<8x8xf32> to vector<8xf32>
    %108 = vector.shape_cast %107 : vector<8xf32> to vector<8x1xf32>
    %109 = vector.broadcast %108 : vector<8x1xf32> to vector<8x8xf32>
    %110 = arith.subf %106, %109 : vector<8x8xf32>
    %111 = math.exp %110 : vector<8x8xf32>
    %cst_45 = arith.constant dense<0.000000e+00> : vector<8xf32>
    %112 = vector.multi_reduction <add>, %111, %cst_45 [1] : vector<8x8xf32> to vector<8xf32>
    %113 = vector.shape_cast %112 : vector<8xf32> to vector<8x1xf32>
    %114 = tpu.reciprocal %113 {approx = true} : vector<8x1xf32> -> vector<8x1xf32>
    %115 = vector.broadcast %114 : vector<8x1xf32> to vector<8x8xf32>
    %116 = arith.mulf %111, %115 : vector<8x8xf32>
    %cst_46 = arith.constant dense<0.000000e+00> : vector<8x8xf32>
    %117 = tpu.matmul %116, %102, %cst_46 {dimension_numbers = #tpu.dot_dimension_numbers<[1], [0], [0], [1], [0, 0, 1, 1], [], []>} : vector<8x8xf32>, vector<8x8xf32>, vector<8x8xf32> -> vector<8x8xf32>
    %118 = vector.extract_strided_slice %30 {offsets = [24, 0], sizes = [8, 32], strides = [1, 1]} : vector<32x32xf32> to vector<8x32xf32>
    %cst_47 = arith.constant dense<0.000000e+00> : vector<8x32xf32>
    %119 = tpu.matmul %117, %118, %cst_47 {dimension_numbers = #tpu.dot_dimension_numbers<[1], [0], [0], [1], [0, 0, 1, 1], [], []>} : vector<8x8xf32>, vector<8x32xf32>, vector<8x32xf32> -> vector<8x32xf32>
    %120 = arith.addf %99, %119 : vector<8x32xf32>
    %c0_48 = arith.constant 0 : index
    %c0_49 = arith.constant 0 : index
    %121 = vector.load %arg9[%c0_48, %c0_49] : memref<32x32xf32, #tpu.memory_space<vmem>>, vector<32x32xf32>
    %cst_50 = arith.constant dense<0.000000e+00> : vector<8x32xf32>
    %122 = tpu.matmul %120, %121, %cst_50 {dimension_numbers = #tpu.dot_dimension_numbers<[1], [0], [0], [1], [0, 0, 1, 1], [], []>} : vector<8x32xf32>, vector<32x32xf32>, vector<8x32xf32> -> vector<8x32xf32>
    %c0_51 = arith.constant 0 : index
    %c0_52 = arith.constant 0 : index
    %123 = vector.load %arg10[%c0_51, %c0_52] : memref<1x32xf32, #tpu.memory_space<vmem>>, vector<1x32xf32>
    %124 = vector.broadcast %123 : vector<1x32xf32> to vector<8x32xf32>
    %125 = arith.addf %122, %124 : vector<8x32xf32>
    %126 = arith.addf %3, %125 : vector<8x32xf32>
    %c0_53 = arith.constant 0 : index
    %c0_54 = arith.constant 0 : index
    %127 = vector.load %arg25[%c0_53, %c0_54] : memref<10x1xf32, #tpu.memory_space<vmem>>, vector<10x1xf32>
    %128 = vector.broadcast %127 : vector<10x1xf32> to vector<10x32xf32>
    %129 = vector.broadcast %1 : vector<1x32xf32> to vector<10x32xf32>
    %130 = arith.mulf %128, %129 : vector<10x32xf32>
    %c0_55 = arith.constant 0 : index
    %c0_56 = arith.constant 0 : index
    %131 = vector.load %arg26[%c0_55, %c0_56] : memref<10x8xf32, #tpu.memory_space<vmem>>, vector<10x8xf32>
    %cst_57 = arith.constant dense<0.000000e+00> : vector<10x32xf32>
    %132 = tpu.matmul %131, %126, %cst_57 {dimension_numbers = #tpu.dot_dimension_numbers<[1], [0], [0], [1], [0, 0, 1, 1], [], []>} : vector<10x8xf32>, vector<8x32xf32>, vector<10x32xf32> -> vector<10x32xf32>
    %133 = arith.addf %130, %132 : vector<10x32xf32>
    %c0_58 = arith.constant 0 : index
    %c0_59 = arith.constant 0 : index
    %134 = vector.load %arg11[%c0_58, %c0_59] : memref<1x32xf32, #tpu.memory_space<vmem>>, vector<1x32xf32>
    %c0_60 = arith.constant 0 : index
    %c0_61 = arith.constant 0 : index
    %135 = vector.load %arg12[%c0_60, %c0_61] : memref<1x32xf32, #tpu.memory_space<vmem>>, vector<1x32xf32>
    %cst_62 = arith.constant dense<0.000000e+00> : vector<10xf32>
    %136 = vector.multi_reduction <add>, %133, %cst_62 [1] : vector<10x32xf32> to vector<10xf32>
    %137 = vector.shape_cast %136 : vector<10xf32> to vector<10x1xf32>
    %cst_63 = arith.constant 3.200000e+01 : f32
    %138 = vector.broadcast %cst_63 : f32 to vector<10x1xf32>
    %139 = arith.divf %137, %138 : vector<10x1xf32>
    %140 = vector.broadcast %139 : vector<10x1xf32> to vector<10x32xf32>
    %141 = arith.subf %133, %140 : vector<10x32xf32>
    %142 = arith.mulf %141, %141 : vector<10x32xf32>
    %cst_64 = arith.constant dense<0.000000e+00> : vector<10xf32>
    %143 = vector.multi_reduction <add>, %142, %cst_64 [1] : vector<10x32xf32> to vector<10xf32>
    %144 = vector.shape_cast %143 : vector<10xf32> to vector<10x1xf32>
    %cst_65 = arith.constant 3.200000e+01 : f32
    %145 = vector.broadcast %cst_65 : f32 to vector<10x1xf32>
    %146 = arith.divf %144, %145 : vector<10x1xf32>
    %147 = vector.broadcast %139 : vector<10x1xf32> to vector<10x32xf32>
    %148 = arith.subf %133, %147 : vector<10x32xf32>
    %cst_66 = arith.constant 9.99999997E-7 : f32
    %149 = vector.broadcast %cst_66 : f32 to vector<10x1xf32>
    %150 = arith.addf %146, %149 : vector<10x1xf32>
    %151 = math.rsqrt %150 : vector<10x1xf32>
    %152 = vector.broadcast %151 : vector<10x1xf32> to vector<10x32xf32>
    %153 = arith.mulf %148, %152 : vector<10x32xf32>
    %154 = vector.broadcast %134 : vector<1x32xf32> to vector<10x32xf32>
    %155 = arith.mulf %153, %154 : vector<10x32xf32>
    %156 = vector.broadcast %135 : vector<1x32xf32> to vector<10x32xf32>
    %157 = arith.addf %155, %156 : vector<10x32xf32>
    %c0_67 = arith.constant 0 : index
    %c0_68 = arith.constant 0 : index
    %158 = vector.load %arg13[%c0_67, %c0_68] : memref<32x96xf32, #tpu.memory_space<vmem>>, vector<32x96xf32>
    %c0_69 = arith.constant 0 : index
    %c0_70 = arith.constant 0 : index
    %159 = vector.load %arg14[%c0_69, %c0_70] : memref<1x96xf32, #tpu.memory_space<vmem>>, vector<1x96xf32>
    %c0_71 = arith.constant 0 : index
    %c0_72 = arith.constant 0 : index
    %160 = vector.load %arg15[%c0_71, %c0_72] : memref<32x32xf32, #tpu.memory_space<vmem>>, vector<32x32xf32>
    %c0_73 = arith.constant 0 : index
    %c0_74 = arith.constant 0 : index
    %161 = vector.load %arg16[%c0_73, %c0_74] : memref<1x32xf32, #tpu.memory_space<vmem>>, vector<1x32xf32>
    %c0_75 = arith.constant 0 : index
    %c0_76 = arith.constant 0 : index
    %162 = vector.load %arg24[%c0_75, %c0_76] : memref<10x10xf32, #tpu.memory_space<vmem>>, vector<10x10xf32>
    %cst_77 = arith.constant dense<0.000000e+00> : vector<10x96xf32>
    %163 = tpu.matmul %157, %158, %cst_77 {dimension_numbers = #tpu.dot_dimension_numbers<[1], [0], [0], [1], [0, 0, 1, 1], [], []>} : vector<10x32xf32>, vector<32x96xf32>, vector<10x96xf32> -> vector<10x96xf32>
    %164 = vector.broadcast %159 : vector<1x96xf32> to vector<10x96xf32>
    %165 = arith.addf %163, %164 : vector<10x96xf32>
    %166 = vector.extract_strided_slice %165 {offsets = [0, 0], sizes = [10, 8], strides = [1, 1]} : vector<10x96xf32> to vector<10x8xf32>
    %167 = vector.extract_strided_slice %165 {offsets = [0, 32], sizes = [10, 8], strides = [1, 1]} : vector<10x96xf32> to vector<10x8xf32>
    %168 = vector.extract_strided_slice %165 {offsets = [0, 64], sizes = [10, 8], strides = [1, 1]} : vector<10x96xf32> to vector<10x8xf32>
    %cst_78 = arith.constant dense<0.000000e+00> : vector<10x10xf32>
    %169 = tpu.matmul %166, %167, %cst_78 {dimension_numbers = #tpu.dot_dimension_numbers<[1], [1], [0], [0], [0, 0, 1, 0], [], []>} : vector<10x8xf32>, vector<10x8xf32>, vector<10x10xf32> -> vector<10x10xf32>
    %cst_79 = arith.constant 0.353553385 : f32
    %170 = vector.broadcast %cst_79 : f32 to vector<10x10xf32>
    %171 = arith.mulf %169, %170 : vector<10x10xf32>
    %172 = arith.addf %171, %162 : vector<10x10xf32>
    %cst_80 = arith.constant dense<0xFF800000> : vector<10xf32>
    %173 = vector.multi_reduction <maximumf>, %172, %cst_80 [1] : vector<10x10xf32> to vector<10xf32>
    %174 = vector.shape_cast %173 : vector<10xf32> to vector<10x1xf32>
    %175 = vector.broadcast %174 : vector<10x1xf32> to vector<10x10xf32>
    %176 = arith.subf %172, %175 : vector<10x10xf32>
    %177 = math.exp %176 : vector<10x10xf32>
    %cst_81 = arith.constant dense<0.000000e+00> : vector<10xf32>
    %178 = vector.multi_reduction <add>, %177, %cst_81 [1] : vector<10x10xf32> to vector<10xf32>
    %179 = vector.shape_cast %178 : vector<10xf32> to vector<10x1xf32>
    %180 = tpu.reciprocal %179 {approx = true} : vector<10x1xf32> -> vector<10x1xf32>
    %181 = vector.broadcast %180 : vector<10x1xf32> to vector<10x10xf32>
    %182 = arith.mulf %177, %181 : vector<10x10xf32>
    %cst_82 = arith.constant dense<0.000000e+00> : vector<10x8xf32>
    %183 = tpu.matmul %182, %168, %cst_82 {dimension_numbers = #tpu.dot_dimension_numbers<[1], [0], [0], [1], [0, 0, 1, 1], [], []>} : vector<10x10xf32>, vector<10x8xf32>, vector<10x8xf32> -> vector<10x8xf32>
    %184 = vector.extract_strided_slice %160 {offsets = [0, 0], sizes = [8, 32], strides = [1, 1]} : vector<32x32xf32> to vector<8x32xf32>
    %cst_83 = arith.constant dense<0.000000e+00> : vector<10x32xf32>
    %185 = tpu.matmul %183, %184, %cst_83 {dimension_numbers = #tpu.dot_dimension_numbers<[1], [0], [0], [1], [0, 0, 1, 1], [], []>} : vector<10x8xf32>, vector<8x32xf32>, vector<10x32xf32> -> vector<10x32xf32>
    %186 = vector.broadcast %161 : vector<1x32xf32> to vector<10x32xf32>
    %187 = arith.addf %186, %185 : vector<10x32xf32>
    %188 = vector.extract_strided_slice %165 {offsets = [0, 8], sizes = [10, 8], strides = [1, 1]} : vector<10x96xf32> to vector<10x8xf32>
    %189 = vector.extract_strided_slice %165 {offsets = [0, 40], sizes = [10, 8], strides = [1, 1]} : vector<10x96xf32> to vector<10x8xf32>
    %190 = vector.extract_strided_slice %165 {offsets = [0, 72], sizes = [10, 8], strides = [1, 1]} : vector<10x96xf32> to vector<10x8xf32>
    %cst_84 = arith.constant dense<0.000000e+00> : vector<10x10xf32>
    %191 = tpu.matmul %188, %189, %cst_84 {dimension_numbers = #tpu.dot_dimension_numbers<[1], [1], [0], [0], [0, 0, 1, 0], [], []>} : vector<10x8xf32>, vector<10x8xf32>, vector<10x10xf32> -> vector<10x10xf32>
    %cst_85 = arith.constant 0.353553385 : f32
    %192 = vector.broadcast %cst_85 : f32 to vector<10x10xf32>
    %193 = arith.mulf %191, %192 : vector<10x10xf32>
    %194 = arith.addf %193, %162 : vector<10x10xf32>
    %cst_86 = arith.constant dense<0xFF800000> : vector<10xf32>
    %195 = vector.multi_reduction <maximumf>, %194, %cst_86 [1] : vector<10x10xf32> to vector<10xf32>
    %196 = vector.shape_cast %195 : vector<10xf32> to vector<10x1xf32>
    %197 = vector.broadcast %196 : vector<10x1xf32> to vector<10x10xf32>
    %198 = arith.subf %194, %197 : vector<10x10xf32>
    %199 = math.exp %198 : vector<10x10xf32>
    %cst_87 = arith.constant dense<0.000000e+00> : vector<10xf32>
    %200 = vector.multi_reduction <add>, %199, %cst_87 [1] : vector<10x10xf32> to vector<10xf32>
    %201 = vector.shape_cast %200 : vector<10xf32> to vector<10x1xf32>
    %202 = tpu.reciprocal %201 {approx = true} : vector<10x1xf32> -> vector<10x1xf32>
    %203 = vector.broadcast %202 : vector<10x1xf32> to vector<10x10xf32>
    %204 = arith.mulf %199, %203 : vector<10x10xf32>
    %cst_88 = arith.constant dense<0.000000e+00> : vector<10x8xf32>
    %205 = tpu.matmul %204, %190, %cst_88 {dimension_numbers = #tpu.dot_dimension_numbers<[1], [0], [0], [1], [0, 0, 1, 1], [], []>} : vector<10x10xf32>, vector<10x8xf32>, vector<10x8xf32> -> vector<10x8xf32>
    %206 = vector.extract_strided_slice %160 {offsets = [8, 0], sizes = [8, 32], strides = [1, 1]} : vector<32x32xf32> to vector<8x32xf32>
    %cst_89 = arith.constant dense<0.000000e+00> : vector<10x32xf32>
    %207 = tpu.matmul %205, %206, %cst_89 {dimension_numbers = #tpu.dot_dimension_numbers<[1], [0], [0], [1], [0, 0, 1, 1], [], []>} : vector<10x8xf32>, vector<8x32xf32>, vector<10x32xf32> -> vector<10x32xf32>
    %208 = arith.addf %187, %207 : vector<10x32xf32>
    %209 = vector.extract_strided_slice %165 {offsets = [0, 16], sizes = [10, 8], strides = [1, 1]} : vector<10x96xf32> to vector<10x8xf32>
    %210 = vector.extract_strided_slice %165 {offsets = [0, 48], sizes = [10, 8], strides = [1, 1]} : vector<10x96xf32> to vector<10x8xf32>
    %211 = vector.extract_strided_slice %165 {offsets = [0, 80], sizes = [10, 8], strides = [1, 1]} : vector<10x96xf32> to vector<10x8xf32>
    %cst_90 = arith.constant dense<0.000000e+00> : vector<10x10xf32>
    %212 = tpu.matmul %209, %210, %cst_90 {dimension_numbers = #tpu.dot_dimension_numbers<[1], [1], [0], [0], [0, 0, 1, 0], [], []>} : vector<10x8xf32>, vector<10x8xf32>, vector<10x10xf32> -> vector<10x10xf32>
    %cst_91 = arith.constant 0.353553385 : f32
    %213 = vector.broadcast %cst_91 : f32 to vector<10x10xf32>
    %214 = arith.mulf %212, %213 : vector<10x10xf32>
    %215 = arith.addf %214, %162 : vector<10x10xf32>
    %cst_92 = arith.constant dense<0xFF800000> : vector<10xf32>
    %216 = vector.multi_reduction <maximumf>, %215, %cst_92 [1] : vector<10x10xf32> to vector<10xf32>
    %217 = vector.shape_cast %216 : vector<10xf32> to vector<10x1xf32>
    %218 = vector.broadcast %217 : vector<10x1xf32> to vector<10x10xf32>
    %219 = arith.subf %215, %218 : vector<10x10xf32>
    %220 = math.exp %219 : vector<10x10xf32>
    %cst_93 = arith.constant dense<0.000000e+00> : vector<10xf32>
    %221 = vector.multi_reduction <add>, %220, %cst_93 [1] : vector<10x10xf32> to vector<10xf32>
    %222 = vector.shape_cast %221 : vector<10xf32> to vector<10x1xf32>
    %223 = tpu.reciprocal %222 {approx = true} : vector<10x1xf32> -> vector<10x1xf32>
    %224 = vector.broadcast %223 : vector<10x1xf32> to vector<10x10xf32>
    %225 = arith.mulf %220, %224 : vector<10x10xf32>
    %cst_94 = arith.constant dense<0.000000e+00> : vector<10x8xf32>
    %226 = tpu.matmul %225, %211, %cst_94 {dimension_numbers = #tpu.dot_dimension_numbers<[1], [0], [0], [1], [0, 0, 1, 1], [], []>} : vector<10x10xf32>, vector<10x8xf32>, vector<10x8xf32> -> vector<10x8xf32>
    %227 = vector.extract_strided_slice %160 {offsets = [16, 0], sizes = [8, 32], strides = [1, 1]} : vector<32x32xf32> to vector<8x32xf32>
    %cst_95 = arith.constant dense<0.000000e+00> : vector<10x32xf32>
    %228 = tpu.matmul %226, %227, %cst_95 {dimension_numbers = #tpu.dot_dimension_numbers<[1], [0], [0], [1], [0, 0, 1, 1], [], []>} : vector<10x8xf32>, vector<8x32xf32>, vector<10x32xf32> -> vector<10x32xf32>
    %229 = arith.addf %208, %228 : vector<10x32xf32>
    %230 = vector.extract_strided_slice %165 {offsets = [0, 24], sizes = [10, 8], strides = [1, 1]} : vector<10x96xf32> to vector<10x8xf32>
    %231 = vector.extract_strided_slice %165 {offsets = [0, 56], sizes = [10, 8], strides = [1, 1]} : vector<10x96xf32> to vector<10x8xf32>
    %232 = vector.extract_strided_slice %165 {offsets = [0, 88], sizes = [10, 8], strides = [1, 1]} : vector<10x96xf32> to vector<10x8xf32>
    %cst_96 = arith.constant dense<0.000000e+00> : vector<10x10xf32>
    %233 = tpu.matmul %230, %231, %cst_96 {dimension_numbers = #tpu.dot_dimension_numbers<[1], [1], [0], [0], [0, 0, 1, 0], [], []>} : vector<10x8xf32>, vector<10x8xf32>, vector<10x10xf32> -> vector<10x10xf32>
    %cst_97 = arith.constant 0.353553385 : f32
    %234 = vector.broadcast %cst_97 : f32 to vector<10x10xf32>
    %235 = arith.mulf %233, %234 : vector<10x10xf32>
    %236 = arith.addf %235, %162 : vector<10x10xf32>
    %cst_98 = arith.constant dense<0xFF800000> : vector<10xf32>
    %237 = vector.multi_reduction <maximumf>, %236, %cst_98 [1] : vector<10x10xf32> to vector<10xf32>
    %238 = vector.shape_cast %237 : vector<10xf32> to vector<10x1xf32>
    %239 = vector.broadcast %238 : vector<10x1xf32> to vector<10x10xf32>
    %240 = arith.subf %236, %239 : vector<10x10xf32>
    %241 = math.exp %240 : vector<10x10xf32>
    %cst_99 = arith.constant dense<0.000000e+00> : vector<10xf32>
    %242 = vector.multi_reduction <add>, %241, %cst_99 [1] : vector<10x10xf32> to vector<10xf32>
    %243 = vector.shape_cast %242 : vector<10xf32> to vector<10x1xf32>
    %244 = tpu.reciprocal %243 {approx = true} : vector<10x1xf32> -> vector<10x1xf32>
    %245 = vector.broadcast %244 : vector<10x1xf32> to vector<10x10xf32>
    %246 = arith.mulf %241, %245 : vector<10x10xf32>
    %cst_100 = arith.constant dense<0.000000e+00> : vector<10x8xf32>
    %247 = tpu.matmul %246, %232, %cst_100 {dimension_numbers = #tpu.dot_dimension_numbers<[1], [0], [0], [1], [0, 0, 1, 1], [], []>} : vector<10x10xf32>, vector<10x8xf32>, vector<10x8xf32> -> vector<10x8xf32>
    %248 = vector.extract_strided_slice %160 {offsets = [24, 0], sizes = [8, 32], strides = [1, 1]} : vector<32x32xf32> to vector<8x32xf32>
    %cst_101 = arith.constant dense<0.000000e+00> : vector<10x32xf32>
    %249 = tpu.matmul %247, %248, %cst_101 {dimension_numbers = #tpu.dot_dimension_numbers<[1], [0], [0], [1], [0, 0, 1, 1], [], []>} : vector<10x8xf32>, vector<8x32xf32>, vector<10x32xf32> -> vector<10x32xf32>
    %250 = arith.addf %229, %249 : vector<10x32xf32>
    %c0_102 = arith.constant 0 : index
    %c0_103 = arith.constant 0 : index
    %251 = vector.load %arg27[%c0_102, %c0_103] : memref<1x10xf32, #tpu.memory_space<vmem>>, vector<1x10xf32>
    %cst_104 = arith.constant dense<0.000000e+00> : vector<1x32xf32>
    %252 = tpu.matmul %251, %250, %cst_104 {dimension_numbers = #tpu.dot_dimension_numbers<[1], [0], [0], [1], [0, 0, 1, 1], [], []>} : vector<1x10xf32>, vector<10x32xf32>, vector<1x32xf32> -> vector<1x32xf32>
    %c0_105 = arith.constant 0 : index
    %c0_106 = arith.constant 0 : index
    %253 = vector.load %arg28[%c0_105, %c0_106] : memref<8x10xf32, #tpu.memory_space<vmem>>, vector<8x10xf32>
    %cst_107 = arith.constant dense<0.000000e+00> : vector<8x32xf32>
    %254 = tpu.matmul %253, %250, %cst_107 {dimension_numbers = #tpu.dot_dimension_numbers<[1], [0], [0], [1], [0, 0, 1, 1], [], []>} : vector<8x10xf32>, vector<10x32xf32>, vector<8x32xf32> -> vector<8x32xf32>
    %255 = arith.addf %1, %252 : vector<1x32xf32>
    %256 = arith.addf %126, %254 : vector<8x32xf32>
    %c0_108 = arith.constant 0 : index
    %c0_109 = arith.constant 0 : index
    %257 = vector.load %arg17[%c0_108, %c0_109] : memref<1x32xf32, #tpu.memory_space<vmem>>, vector<1x32xf32>
    %c0_110 = arith.constant 0 : index
    %c0_111 = arith.constant 0 : index
    %258 = vector.load %arg18[%c0_110, %c0_111] : memref<1x32xf32, #tpu.memory_space<vmem>>, vector<1x32xf32>
    %cst_112 = arith.constant dense<0.000000e+00> : vector<1xf32>
    %259 = vector.multi_reduction <add>, %255, %cst_112 [1] : vector<1x32xf32> to vector<1xf32>
    %260 = vector.shape_cast %259 : vector<1xf32> to vector<1x1xf32>
    %cst_113 = arith.constant 3.200000e+01 : f32
    %261 = vector.broadcast %cst_113 : f32 to vector<1x1xf32>
    %262 = arith.divf %260, %261 : vector<1x1xf32>
    %263 = vector.broadcast %262 : vector<1x1xf32> to vector<1x32xf32>
    %264 = arith.subf %255, %263 : vector<1x32xf32>
    %265 = arith.mulf %264, %264 : vector<1x32xf32>
    %cst_114 = arith.constant dense<0.000000e+00> : vector<1xf32>
    %266 = vector.multi_reduction <add>, %265, %cst_114 [1] : vector<1x32xf32> to vector<1xf32>
    %267 = vector.shape_cast %266 : vector<1xf32> to vector<1x1xf32>
    %cst_115 = arith.constant 3.200000e+01 : f32
    %268 = vector.broadcast %cst_115 : f32 to vector<1x1xf32>
    %269 = arith.divf %267, %268 : vector<1x1xf32>
    %270 = vector.broadcast %262 : vector<1x1xf32> to vector<1x32xf32>
    %271 = arith.subf %255, %270 : vector<1x32xf32>
    %cst_116 = arith.constant 9.99999997E-7 : f32
    %272 = vector.broadcast %cst_116 : f32 to vector<1x1xf32>
    %273 = arith.addf %269, %272 : vector<1x1xf32>
    %274 = math.rsqrt %273 : vector<1x1xf32>
    %275 = vector.broadcast %274 : vector<1x1xf32> to vector<1x32xf32>
    %276 = arith.mulf %271, %275 : vector<1x32xf32>
    %277 = arith.mulf %276, %257 : vector<1x32xf32>
    %278 = arith.addf %277, %258 : vector<1x32xf32>
    %c0_117 = arith.constant 0 : index
    %c0_118 = arith.constant 0 : index
    %279 = vector.load %arg19[%c0_117, %c0_118] : memref<32x64xf32, #tpu.memory_space<vmem>>, vector<32x64xf32>
    %cst_119 = arith.constant dense<0.000000e+00> : vector<1x64xf32>
    %280 = tpu.matmul %278, %279, %cst_119 {dimension_numbers = #tpu.dot_dimension_numbers<[1], [0], [0], [1], [0, 0, 1, 1], [], []>} : vector<1x32xf32>, vector<32x64xf32>, vector<1x64xf32> -> vector<1x64xf32>
    %c0_120 = arith.constant 0 : index
    %c0_121 = arith.constant 0 : index
    %281 = vector.load %arg20[%c0_120, %c0_121] : memref<1x64xf32, #tpu.memory_space<vmem>>, vector<1x64xf32>
    %282 = arith.addf %280, %281 : vector<1x64xf32>
    %cst_122 = arith.constant 5.000000e-01 : f32
    %283 = vector.broadcast %cst_122 : f32 to vector<1x64xf32>
    %284 = arith.mulf %283, %282 : vector<1x64xf32>
    %cst_123 = arith.constant 0.707106769 : f32
    %285 = vector.broadcast %cst_123 : f32 to vector<1x64xf32>
    %286 = arith.mulf %282, %285 : vector<1x64xf32>
    %287 = math.erf %286 : vector<1x64xf32>
    %cst_124 = arith.constant 1.000000e+00 : f32
    %288 = vector.broadcast %cst_124 : f32 to vector<1x64xf32>
    %289 = arith.addf %288, %287 : vector<1x64xf32>
    %290 = arith.mulf %284, %289 : vector<1x64xf32>
    %c0_125 = arith.constant 0 : index
    %c0_126 = arith.constant 0 : index
    %291 = vector.load %arg21[%c0_125, %c0_126] : memref<64x32xf32, #tpu.memory_space<vmem>>, vector<64x32xf32>
    %cst_127 = arith.constant dense<0.000000e+00> : vector<1x32xf32>
    %292 = tpu.matmul %290, %291, %cst_127 {dimension_numbers = #tpu.dot_dimension_numbers<[1], [0], [0], [1], [0, 0, 1, 1], [], []>} : vector<1x64xf32>, vector<64x32xf32>, vector<1x32xf32> -> vector<1x32xf32>
    %c0_128 = arith.constant 0 : index
    %c0_129 = arith.constant 0 : index
    %293 = vector.load %arg22[%c0_128, %c0_129] : memref<1x32xf32, #tpu.memory_space<vmem>>, vector<1x32xf32>
    %294 = arith.addf %292, %293 : vector<1x32xf32>
    %295 = arith.addf %255, %294 : vector<1x32xf32>
    %c0_130 = arith.constant 0 : index
    %c0_131 = arith.constant 0 : index
    %c0_132 = arith.constant 0 : index
    %296 = vector.load %arg29[%c0_130, %c0_131, %c0_132] : memref<1x1x32xf32, #tpu.memory_space<vmem>>, vector<1x1x32xf32>
    %297 = vector.shape_cast %296 : vector<1x1x32xf32> to vector<1x32xf32>
    %298 = vector.shape_cast %295 : vector<1x32xf32> to vector<1x1x32xf32>
    tpu.vector_store %arg29[%c0_130, %c0_131, %c0_132], %298 {strides = array<i32>} : memref<1x1x32xf32, #tpu.memory_space<vmem>>, vector<1x1x32xf32>,
    %c0_133 = arith.constant 0 : index
    %c0_134 = arith.constant 0 : index
    %299 = vector.load %arg17[%c0_133, %c0_134] : memref<1x32xf32, #tpu.memory_space<vmem>>, vector<1x32xf32>
    %c0_135 = arith.constant 0 : index
    %c0_136 = arith.constant 0 : index
    %300 = vector.load %arg18[%c0_135, %c0_136] : memref<1x32xf32, #tpu.memory_space<vmem>>, vector<1x32xf32>
    %cst_137 = arith.constant dense<0.000000e+00> : vector<8xf32>
    %301 = vector.multi_reduction <add>, %256, %cst_137 [1] : vector<8x32xf32> to vector<8xf32>
    %302 = vector.shape_cast %301 : vector<8xf32> to vector<8x1xf32>
    %cst_138 = arith.constant 3.200000e+01 : f32
    %303 = vector.broadcast %cst_138 : f32 to vector<8x1xf32>
    %304 = arith.divf %302, %303 : vector<8x1xf32>
    %305 = vector.broadcast %304 : vector<8x1xf32> to vector<8x32xf32>
    %306 = arith.subf %256, %305 : vector<8x32xf32>
    %307 = arith.mulf %306, %306 : vector<8x32xf32>
    %cst_139 = arith.constant dense<0.000000e+00> : vector<8xf32>
    %308 = vector.multi_reduction <add>, %307, %cst_139 [1] : vector<8x32xf32> to vector<8xf32>
    %309 = vector.shape_cast %308 : vector<8xf32> to vector<8x1xf32>
    %cst_140 = arith.constant 3.200000e+01 : f32
    %310 = vector.broadcast %cst_140 : f32 to vector<8x1xf32>
    %311 = arith.divf %309, %310 : vector<8x1xf32>
    %312 = vector.broadcast %304 : vector<8x1xf32> to vector<8x32xf32>
    %313 = arith.subf %256, %312 : vector<8x32xf32>
    %cst_141 = arith.constant 9.99999997E-7 : f32
    %314 = vector.broadcast %cst_141 : f32 to vector<8x1xf32>
    %315 = arith.addf %311, %314 : vector<8x1xf32>
    %316 = math.rsqrt %315 : vector<8x1xf32>
    %317 = vector.broadcast %316 : vector<8x1xf32> to vector<8x32xf32>
    %318 = arith.mulf %313, %317 : vector<8x32xf32>
    %319 = vector.broadcast %299 : vector<1x32xf32> to vector<8x32xf32>
    %320 = arith.mulf %318, %319 : vector<8x32xf32>
    %321 = vector.broadcast %300 : vector<1x32xf32> to vector<8x32xf32>
    %322 = arith.addf %320, %321 : vector<8x32xf32>
    %c0_142 = arith.constant 0 : index
    %c0_143 = arith.constant 0 : index
    %323 = vector.load %arg19[%c0_142, %c0_143] : memref<32x64xf32, #tpu.memory_space<vmem>>, vector<32x64xf32>
    %cst_144 = arith.constant dense<0.000000e+00> : vector<8x64xf32>
    %324 = tpu.matmul %322, %323, %cst_144 {dimension_numbers = #tpu.dot_dimension_numbers<[1], [0], [0], [1], [0, 0, 1, 1], [], []>} : vector<8x32xf32>, vector<32x64xf32>, vector<8x64xf32> -> vector<8x64xf32>
    %c0_145 = arith.constant 0 : index
    %c0_146 = arith.constant 0 : index
    %325 = vector.load %arg20[%c0_145, %c0_146] : memref<1x64xf32, #tpu.memory_space<vmem>>, vector<1x64xf32>
    %326 = vector.broadcast %325 : vector<1x64xf32> to vector<8x64xf32>
    %327 = arith.addf %324, %326 : vector<8x64xf32>
    %cst_147 = arith.constant 5.000000e-01 : f32
    %328 = vector.broadcast %cst_147 : f32 to vector<8x64xf32>
    %329 = arith.mulf %328, %327 : vector<8x64xf32>
    %cst_148 = arith.constant 0.707106769 : f32
    %330 = vector.broadcast %cst_148 : f32 to vector<8x64xf32>
    %331 = arith.mulf %327, %330 : vector<8x64xf32>
    %332 = math.erf %331 : vector<8x64xf32>
    %cst_149 = arith.constant 1.000000e+00 : f32
    %333 = vector.broadcast %cst_149 : f32 to vector<8x64xf32>
    %334 = arith.addf %333, %332 : vector<8x64xf32>
    %335 = arith.mulf %329, %334 : vector<8x64xf32>
    %c0_150 = arith.constant 0 : index
    %c0_151 = arith.constant 0 : index
    %336 = vector.load %arg21[%c0_150, %c0_151] : memref<64x32xf32, #tpu.memory_space<vmem>>, vector<64x32xf32>
    %cst_152 = arith.constant dense<0.000000e+00> : vector<8x32xf32>
    %337 = tpu.matmul %335, %336, %cst_152 {dimension_numbers = #tpu.dot_dimension_numbers<[1], [0], [0], [1], [0, 0, 1, 1], [], []>} : vector<8x64xf32>, vector<64x32xf32>, vector<8x32xf32> -> vector<8x32xf32>
    %c0_153 = arith.constant 0 : index
    %c0_154 = arith.constant 0 : index
    %338 = vector.load %arg22[%c0_153, %c0_154] : memref<1x32xf32, #tpu.memory_space<vmem>>, vector<1x32xf32>
    %339 = vector.broadcast %338 : vector<1x32xf32> to vector<8x32xf32>
    %340 = arith.addf %337, %339 : vector<8x32xf32>
    %341 = arith.addf %256, %340 : vector<8x32xf32>
    %c0_155 = arith.constant 0 : index
    %c0_156 = arith.constant 0 : index
    %c0_157 = arith.constant 0 : index
    %342 = vector.load %arg30[%c0_155, %c0_156, %c0_157] : memref<1x8x32xf32, #tpu.memory_space<vmem>>, vector<1x8x32xf32>
    %343 = vector.shape_cast %342 : vector<1x8x32xf32> to vector<8x32xf32>
    %344 = vector.shape_cast %341 : vector<8x32xf32> to vector<1x8x32xf32>
    tpu.vector_store %arg30[%c0_155, %c0_156, %c0_157], %344 {strides = array<i32>} : memref<1x8x32xf32, #tpu.memory_space<vmem>>, vector<1x8x32xf32>,
    return
  }
  func.func @transform_0(%arg0: i32) -> (i32, i32, i32) {
    %c0_i32 = arith.constant 0 : i32
    %c0_i32_0 = arith.constant 0 : i32
    %c0_i32_1 = arith.constant 0 : i32
    return %arg0, %c0_i32, %c0_i32_0 : i32, i32, i32
  }
  func.func @transform_1(%arg0: i32) -> (i32, i32, i32) {
    %c0_i32 = arith.constant 0 : i32
    %c0_i32_0 = arith.constant 0 : i32
    %c0_i32_1 = arith.constant 0 : i32
    return %arg0, %c0_i32, %c0_i32_0 : i32, i32, i32
  }
  func.func @transform_2(%arg0: i32) -> (i32, i32) {
    %c0_i32 = arith.constant 0 : i32
    %c0_i32_0 = arith.constant 0 : i32
    %c0_i32_1 = arith.constant 0 : i32
    return %c0_i32, %c0_i32_0 : i32, i32
  }
  func.func @transform_3(%arg0: i32) -> (i32, i32) {
    %c0_i32 = arith.constant 0 : i32
    %c0_i32_0 = arith.constant 0 : i32
    %c0_i32_1 = arith.constant 0 : i32
    return %c0_i32, %c0_i32_0 : i32, i32
  }
  func.func @transform_4(%arg0: i32) -> (i32, i32) {
    %c0_i32 = arith.constant 0 : i32
    %c0_i32_0 = arith.constant 0 : i32
    %c0_i32_1 = arith.constant 0 : i32
    return %c0_i32, %c0_i32_0 : i32, i32
  }
  func.func @transform_5(%arg0: i32) -> (i32, i32) {
    %c0_i32 = arith.constant 0 : i32
    %c0_i32_0 = arith.constant 0 : i32
    %c0_i32_1 = arith.constant 0 : i32
    return %c0_i32, %c0_i32_0 : i32, i32
  }
  func.func @transform_6(%arg0: i32) -> (i32, i32) {
    %c0_i32 = arith.constant 0 : i32
    %c0_i32_0 = arith.constant 0 : i32
    %c0_i32_1 = arith.constant 0 : i32
    return %c0_i32, %c0_i32_0 : i32, i32
  }
  func.func @transform_7(%arg0: i32) -> (i32, i32) {
    %c0_i32 = arith.constant 0 : i32
    %c0_i32_0 = arith.constant 0 : i32
    %c0_i32_1 = arith.constant 0 : i32
    return %c0_i32, %c0_i32_0 : i32, i32
  }
  func.func @transform_8(%arg0: i32) -> (i32, i32) {
    %c0_i32 = arith.constant 0 : i32
    %c0_i32_0 = arith.constant 0 : i32
    %c0_i32_1 = arith.constant 0 : i32
    return %c0_i32, %c0_i32_0 : i32, i32
  }
  func.func @transform_9(%arg0: i32) -> (i32, i32) {
    %c0_i32 = arith.constant 0 : i32
    %c0_i32_0 = arith.constant 0 : i32
    %c0_i32_1 = arith.constant 0 : i32
    return %c0_i32, %c0_i32_0 : i32, i32
  }
  func.func @transform_10(%arg0: i32) -> (i32, i32) {
    %c0_i32 = arith.constant 0 : i32
    %c0_i32_0 = arith.constant 0 : i32
    %c0_i32_1 = arith.constant 0 : i32
    return %c0_i32, %c0_i32_0 : i32, i32
  }
  func.func @transform_11(%arg0: i32) -> (i32, i32) {
    %c0_i32 = arith.constant 0 : i32
    %c0_i32_0 = arith.constant 0 : i32
    %c0_i32_1 = arith.constant 0 : i32
    return %c0_i32, %c0_i32_0 : i32, i32
  }
  func.func @transform_12(%arg0: i32) -> (i32, i32) {
    %c0_i32 = arith.constant 0 : i32
    %c0_i32_0 = arith.constant 0 : i32
    %c0_i32_1 = arith.constant 0 : i32
    return %c0_i32, %c0_i32_0 : i32, i32
  }
  func.func @transform_13(%arg0: i32) -> (i32, i32) {
    %c0_i32 = arith.constant 0 : i32
    %c0_i32_0 = arith.constant 0 : i32
    %c0_i32_1 = arith.constant 0 : i32
    return %c0_i32, %c0_i32_0 : i32, i32
  }
  func.func @transform_14(%arg0: i32) -> (i32, i32) {
    %c0_i32 = arith.constant 0 : i32
    %c0_i32_0 = arith.constant 0 : i32
    %c0_i32_1 = arith.constant 0 : i32
    return %c0_i32, %c0_i32_0 : i32, i32
  }
  func.func @transform_15(%arg0: i32) -> (i32, i32) {
    %c0_i32 = arith.constant 0 : i32
    %c0_i32_0 = arith.constant 0 : i32
    %c0_i32_1 = arith.constant 0 : i32
    return %c0_i32, %c0_i32_0 : i32, i32
  }
  func.func @transform_16(%arg0: i32) -> (i32, i32) {
    %c0_i32 = arith.constant 0 : i32
    %c0_i32_0 = arith.constant 0 : i32
    %c0_i32_1 = arith.constant 0 : i32
    return %c0_i32, %c0_i32_0 : i32, i32
  }
  func.func @transform_17(%arg0: i32) -> (i32, i32) {
    %c0_i32 = arith.constant 0 : i32
    %c0_i32_0 = arith.constant 0 : i32
    %c0_i32_1 = arith.constant 0 : i32
    return %c0_i32, %c0_i32_0 : i32, i32
  }
  func.func @transform_18(%arg0: i32) -> (i32, i32) {
    %c0_i32 = arith.constant 0 : i32
    %c0_i32_0 = arith.constant 0 : i32
    %c0_i32_1 = arith.constant 0 : i32
    return %c0_i32, %c0_i32_0 : i32, i32
  }
  func.func @transform_19(%arg0: i32) -> (i32, i32) {
    %c0_i32 = arith.constant 0 : i32
    %c0_i32_0 = arith.constant 0 : i32
    %c0_i32_1 = arith.constant 0 : i32
    return %c0_i32, %c0_i32_0 : i32, i32
  }
  func.func @transform_20(%arg0: i32) -> (i32, i32) {
    %c0_i32 = arith.constant 0 : i32
    %c0_i32_0 = arith.constant 0 : i32
    %c0_i32_1 = arith.constant 0 : i32
    return %c0_i32, %c0_i32_0 : i32, i32
  }
  func.func @transform_21(%arg0: i32) -> (i32, i32) {
    %c0_i32 = arith.constant 0 : i32
    %c0_i32_0 = arith.constant 0 : i32
    %c0_i32_1 = arith.constant 0 : i32
    return %c0_i32, %c0_i32_0 : i32, i32
  }
  func.func @transform_22(%arg0: i32) -> (i32, i32) {
    %c0_i32 = arith.constant 0 : i32
    %c0_i32_0 = arith.constant 0 : i32
    %c0_i32_1 = arith.constant 0 : i32
    return %c0_i32, %c0_i32_0 : i32, i32
  }
  func.func @transform_23(%arg0: i32) -> (i32, i32) {
    %c0_i32 = arith.constant 0 : i32
    %c0_i32_0 = arith.constant 0 : i32
    %c0_i32_1 = arith.constant 0 : i32
    return %c0_i32, %c0_i32_0 : i32, i32
  }
  func.func @transform_24(%arg0: i32) -> (i32, i32) {
    %c0_i32 = arith.constant 0 : i32
    %c0_i32_0 = arith.constant 0 : i32
    %c0_i32_1 = arith.constant 0 : i32
    return %c0_i32, %c0_i32_0 : i32, i32
  }
  func.func @transform_25(%arg0: i32) -> (i32, i32) {
    %c0_i32 = arith.constant 0 : i32
    %c0_i32_0 = arith.constant 0 : i32
    %c0_i32_1 = arith.constant 0 : i32
    return %c0_i32, %c0_i32_0 : i32, i32
  }
  func.func @transform_26(%arg0: i32) -> (i32, i32) {
    %c0_i32 = arith.constant 0 : i32
    %c0_i32_0 = arith.constant 0 : i32
    %c0_i32_1 = arith.constant 0 : i32
    return %c0_i32, %c0_i32_0 : i32, i32
  }
  func.func @transform_27(%arg0: i32) -> (i32, i32) {
    %c0_i32 = arith.constant 0 : i32
    %c0_i32_0 = arith.constant 0 : i32
    %c0_i32_1 = arith.constant 0 : i32
    return %c0_i32, %c0_i32_0 : i32, i32
  }
  func.func @transform_28(%arg0: i32) -> (i32, i32, i32) {
    %c0_i32 = arith.constant 0 : i32
    %c0_i32_0 = arith.constant 0 : i32
    %c0_i32_1 = arith.constant 0 : i32
    return %arg0, %c0_i32, %c0_i32_0 : i32, i32, i32
  }
  func.func @transform_29(%arg0: i32) -> (i32, i32, i32) {
    %c0_i32 = arith.constant 0 : i32
    %c0_i32_0 = arith.constant 0 : i32
    %c0_i32_1 = arith.constant 0 : i32
    return %arg0, %c0_i32, %c0_i32_0 : i32, i32, i32
  }
}

module attributes {stable_mosaic.version = 11 : i64} {
  func.func @_layer_kernel(%arg0: i32, %arg1: memref<1x1x32xf32, #tpu.memory_space<vmem>>, %arg2: memref<1x8x32xf32, #tpu.memory_space<vmem>>, %arg3: memref<1x32xf32, #tpu.memory_space<vmem>>, %arg4: memref<1x32xf32, #tpu.memory_space<vmem>>, %arg5: memref<32x96xf32, #tpu.memory_space<vmem>>, %arg6: memref<1x96xf32, #tpu.memory_space<vmem>>, %arg7: memref<32x32xf32, #tpu.memory_space<vmem>>, %arg8: memref<1x32xf32, #tpu.memory_space<vmem>>, %arg9: memref<32x32xf32, #tpu.memory_space<vmem>>, %arg10: memref<1x32xf32, #tpu.memory_space<vmem>>, %arg11: memref<1x32xf32, #tpu.memory_space<vmem>>, %arg12: memref<1x32xf32, #tpu.memory_space<vmem>>, %arg13: memref<32x96xf32, #tpu.memory_space<vmem>>, %arg14: memref<1x96xf32, #tpu.memory_space<vmem>>, %arg15: memref<32x32xf32, #tpu.memory_space<vmem>>, %arg16: memref<1x32xf32, #tpu.memory_space<vmem>>, %arg17: memref<1x32xf32, #tpu.memory_space<vmem>>, %arg18: memref<1x32xf32, #tpu.memory_space<vmem>>, %arg19: memref<32x64xf32, #tpu.memory_space<vmem>>, %arg20: memref<1x64xf32, #tpu.memory_space<vmem>>, %arg21: memref<64x32xf32, #tpu.memory_space<vmem>>, %arg22: memref<1x32xf32, #tpu.memory_space<vmem>>, %arg23: memref<8x8xf32, #tpu.memory_space<vmem>>, %arg24: memref<10x10xf32, #tpu.memory_space<vmem>>, %arg25: memref<10x1xf32, #tpu.memory_space<vmem>>, %arg26: memref<10x8xf32, #tpu.memory_space<vmem>>, %arg27: memref<1x10xf32, #tpu.memory_space<vmem>>, %arg28: memref<8x10xf32, #tpu.memory_space<vmem>>, %arg29: memref<1x1x32xf32, #tpu.memory_space<vmem>>, %arg30: memref<1x8x32xf32, #tpu.memory_space<vmem>>) attributes {dimension_semantics = [#tpu.dimension_semantics<parallel>], iteration_bounds = array<i64: 2>, scalar_prefetch = 0 : i64, scratch_operands = 0 : i64, tpu.core_type = #tpu.core_type<tc>, window_params = [{transform_indices = @transform_0, window_bounds = array<i64: 1, 1, 32>}, {transform_indices = @transform_1, window_bounds = array<i64: 1, 8, 32>}, {pipeline_mode = #tpu.pipeline_mode<synchronous>, transform_indices = @transform_2, window_bounds = array<i64: 1, 32>}, {pipeline_mode = #tpu.pipeline_mode<synchronous>, transform_indices = @transform_3, window_bounds = array<i64: 1, 32>}, {pipeline_mode = #tpu.pipeline_mode<synchronous>, transform_indices = @transform_4, window_bounds = array<i64: 32, 96>}, {pipeline_mode = #tpu.pipeline_mode<synchronous>, transform_indices = @transform_5, window_bounds = array<i64: 1, 96>}, {pipeline_mode = #tpu.pipeline_mode<synchronous>, transform_indices = @transform_6, window_bounds = array<i64: 32, 32>}, {pipeline_mode = #tpu.pipeline_mode<synchronous>, transform_indices = @transform_7, window_bounds = array<i64: 1, 32>}, {pipeline_mode = #tpu.pipeline_mode<synchronous>, transform_indices = @transform_8, window_bounds = array<i64: 32, 32>}, {pipeline_mode = #tpu.pipeline_mode<synchronous>, transform_indices = @transform_9, window_bounds = array<i64: 1, 32>}, {pipeline_mode = #tpu.pipeline_mode<synchronous>, transform_indices = @transform_10, window_bounds = array<i64: 1, 32>}, {pipeline_mode = #tpu.pipeline_mode<synchronous>, transform_indices = @transform_11, window_bounds = array<i64: 1, 32>}, {pipeline_mode = #tpu.pipeline_mode<synchronous>, transform_indices = @transform_12, window_bounds = array<i64: 32, 96>}, {pipeline_mode = #tpu.pipeline_mode<synchronous>, transform_indices = @transform_13, window_bounds = array<i64: 1, 96>}, {pipeline_mode = #tpu.pipeline_mode<synchronous>, transform_indices = @transform_14, window_bounds = array<i64: 32, 32>}, {pipeline_mode = #tpu.pipeline_mode<synchronous>, transform_indices = @transform_15, window_bounds = array<i64: 1, 32>}, {pipeline_mode = #tpu.pipeline_mode<synchronous>, transform_indices = @transform_16, window_bounds = array<i64: 1, 32>}, {pipeline_mode = #tpu.pipeline_mode<synchronous>, transform_indices = @transform_17, window_bounds = array<i64: 1, 32>}, {pipeline_mode = #tpu.pipeline_mode<synchronous>, transform_indices = @transform_18, window_bounds = array<i64: 32, 64>}, {pipeline_mode = #tpu.pipeline_mode<synchronous>, transform_indices = @transform_19, window_bounds = array<i64: 1, 64>}, {pipeline_mode = #tpu.pipeline_mode<synchronous>, transform_indices = @transform_20, window_bounds = array<i64: 64, 32>}, {pipeline_mode = #tpu.pipeline_mode<synchronous>, transform_indices = @transform_21, window_bounds = array<i64: 1, 32>}, {pipeline_mode = #tpu.pipeline_mode<synchronous>, transform_indices = @transform_22, window_bounds = array<i64: 8, 8>}, {pipeline_mode = #tpu.pipeline_mode<synchronous>, transform_indices = @transform_23, window_bounds = array<i64: 10, 10>}, {pipeline_mode = #tpu.pipeline_mode<synchronous>, transform_indices = @transform_24, window_bounds = array<i64: 10, 1>}, {pipeline_mode = #tpu.pipeline_mode<synchronous>, transform_indices = @transform_25, window_bounds = array<i64: 10, 8>}, {pipeline_mode = #tpu.pipeline_mode<synchronous>, transform_indices = @transform_26, window_bounds = array<i64: 1, 10>}, {pipeline_mode = #tpu.pipeline_mode<synchronous>, transform_indices = @transform_27, window_bounds = array<i64: 8, 10>}, {transform_indices = @transform_28, window_bounds = array<i64: 1, 1, 32>}, {transform_indices = @transform_29, window_bounds = array<i64: 1, 8, 32>}]} {
    %c0 = arith.constant 0 : index
    %c0_0 = arith.constant 0 : index
    %c0_1 = arith.constant 0 : index
    %0 = vector.load %arg1[%c0, %c0_0, %c0_1] : memref<1x1x32xf32, #tpu.memory_space<vmem>>, vector<1x1x32xf32>
    %1 = vector.shape_cast %0 : vector<1x1x32xf32> to vector<1x32xf32>
    %c0_2 = arith.constant 0 : index
    %c0_3 = arith.constant 0 : index
    %c0_4 = arith.constant 0 : index
    %2 = vector.load %arg2[%c0_2, %c0_3, %c0_4] : memref<1x8x32xf32, #tpu.memory_space<vmem>>, vector<1x8x32xf32>
    %3 = vector.shape_cast %2 : vector<1x8x32xf32> to vector<8x32xf32>
    %c0_5 = arith.constant 0 : index
    %c0_6 = arith.constant 0 : index
    %4 = vector.load %arg3[%c0_5, %c0_6] : memref<1x32xf32, #tpu.memory_space<vmem>>, vector<1x32xf32>
    %c0_7 = arith.constant 0 : index
    %c0_8 = arith.constant 0 : index
    %5 = vector.load %arg4[%c0_7, %c0_8] : memref<1x32xf32, #tpu.memory_space<vmem>>, vector<1x32xf32>
    %cst = arith.constant dense<0.000000e+00> : vector<8xf32>
    %6 = vector.multi_reduction <add>, %3, %cst [1] : vector<8x32xf32> to vector<8xf32>
    %7 = vector.shape_cast %6 : vector<8xf32> to vector<8x1xf32>
    %cst_9 = arith.constant 3.200000e+01 : f32
    %8 = vector.broadcast %cst_9 : f32 to vector<8x1xf32>
    %9 = arith.divf %7, %8 : vector<8x1xf32>
    %10 = vector.broadcast %9 : vector<8x1xf32> to vector<8x32xf32>
    %11 = arith.subf %3, %10 : vector<8x32xf32>
    %12 = arith.mulf %11, %11 : vector<8x32xf32>
    %cst_10 = arith.constant dense<0.000000e+00> : vector<8xf32>
    %13 = vector.multi_reduction <add>, %12, %cst_10 [1] : vector<8x32xf32> to vector<8xf32>
    %14 = vector.shape_cast %13 : vector<8xf32> to vector<8x1xf32>
    %cst_11 = arith.constant 3.200000e+01 : f32
    %15 = vector.broadcast %cst_11 : f32 to vector<8x1xf32>
    %16 = arith.divf %14, %15 : vector<8x1xf32>
    %17 = vector.broadcast %9 : vector<8x1xf32> to vector<8x32xf32>
    %18 = arith.subf %3, %17 : vector<8x32xf32>
    %cst_12 = arith.constant 9.99999997E-7 : f32
    %19 = vector.broadcast %cst_12 : f32 to vector<8x1xf32>
    %20 = arith.addf %16, %19 : vector<8x1xf32>
    %21 = math.rsqrt %20 : vector<8x1xf32>
    %22 = vector.broadcast %21 : vector<8x1xf32> to vector<8x32xf32>
    %23 = arith.mulf %18, %22 : vector<8x32xf32>
    %24 = vector.broadcast %4 : vector<1x32xf32> to vector<8x32xf32>
    %25 = arith.mulf %23, %24 : vector<8x32xf32>
    %26 = vector.broadcast %5 : vector<1x32xf32> to vector<8x32xf32>
    %27 = arith.addf %25, %26 : vector<8x32xf32>
    %c0_13 = arith.constant 0 : index
    %c0_14 = arith.constant 0 : index
    %28 = vector.load %arg5[%c0_13, %c0_14] : memref<32x96xf32, #tpu.memory_space<vmem>>, vector<32x96xf32>
    %c0_15 = arith.constant 0 : index
    %c0_16 = arith.constant 0 : index
    %29 = vector.load %arg6[%c0_15, %c0_16] : memref<1x96xf32, #tpu.memory_space<vmem>>, vector<1x96xf32>
    %c0_17 = arith.constant 0 : index
    %c0_18 = arith.constant 0 : index
    %30 = vector.load %arg7[%c0_17, %c0_18] : memref<32x32xf32, #tpu.memory_space<vmem>>, vector<32x32xf32>
    %c0_19 = arith.constant 0 : index
    %c0_20 = arith.constant 0 : index
    %31 = vector.load %arg8[%c0_19, %c0_20] : memref<1x32xf32, #tpu.memory_space<vmem>>, vector<1x32xf32>
    %c0_21 = arith.constant 0 : index
    %c0_22 = arith.constant 0 : index
    %32 = vector.load %arg23[%c0_21, %c0_22] : memref<8x8xf32, #tpu.memory_space<vmem>>, vector<8x8xf32>
    %cst_23 = arith.constant dense<0.000000e+00> : vector<8x96xf32>
    %33 = tpu.matmul %27, %28, %cst_23 {dimension_numbers = #tpu.dot_dimension_numbers<[1], [0], [0], [1], [0, 0, 1, 1], [], []>} : vector<8x32xf32>, vector<32x96xf32>, vector<8x96xf32> -> vector<8x96xf32>
    %34 = vector.broadcast %29 : vector<1x96xf32> to vector<8x96xf32>
    %35 = arith.addf %33, %34 : vector<8x96xf32>
    %36 = vector.extract_strided_slice %35 {offsets = [0, 0], sizes = [8, 8], strides = [1, 1]} : vector<8x96xf32> to vector<8x8xf32>
    %37 = vector.extract_strided_slice %35 {offsets = [0, 32], sizes = [8, 8], strides = [1, 1]} : vector<8x96xf32> to vector<8x8xf32>
    %38 = vector.extract_strided_slice %35 {offsets = [0, 64], sizes = [8, 8], strides = [1, 1]} : vector<8x96xf32> to vector<8x8xf32>
    %cst_24 = arith.constant dense<0.000000e+00> : vector<8x8xf32>
    %39 = tpu.matmul %36, %37, %cst_24 {dimension_numbers = #tpu.dot_dimension_numbers<[1], [1], [0], [0], [0, 0, 1, 0], [], []>} : vector<8x8xf32>, vector<8x8xf32>, vector<8x8xf32> -> vector<8x8xf32>
    %cst_25 = arith.constant 0.353553385 : f32
    %40 = vector.broadcast %cst_25 : f32 to vector<8x8xf32>
    %41 = arith.mulf %39, %40 : vector<8x8xf32>
    %42 = arith.addf %41, %32 : vector<8x8xf32>
    %cst_26 = arith.constant dense<0xFF800000> : vector<8xf32>
    %43 = vector.multi_reduction <maximumf>, %42, %cst_26 [1] : vector<8x8xf32> to vector<8xf32>
    %44 = vector.shape_cast %43 : vector<8xf32> to vector<8x1xf32>
    %45 = vector.broadcast %44 : vector<8x1xf32> to vector<8x8xf32>
    %46 = arith.subf %42, %45 : vector<8x8xf32>
    %47 = math.exp %46 : vector<8x8xf32>
    %cst_27 = arith.constant dense<0.000000e+00> : vector<8xf32>
    %48 = vector.multi_reduction <add>, %47, %cst_27 [1] : vector<8x8xf32> to vector<8xf32>
    %49 = vector.shape_cast %48 : vector<8xf32> to vector<8x1xf32>
    %50 = tpu.reciprocal %49 {approx = true} : vector<8x1xf32> -> vector<8x1xf32>
    %51 = vector.broadcast %50 : vector<8x1xf32> to vector<8x8xf32>
    %52 = arith.mulf %47, %51 : vector<8x8xf32>
    %cst_28 = arith.constant dense<0.000000e+00> : vector<8x8xf32>
    %53 = tpu.matmul %52, %38, %cst_28 {dimension_numbers = #tpu.dot_dimension_numbers<[1], [0], [0], [1], [0, 0, 1, 1], [], []>} : vector<8x8xf32>, vector<8x8xf32>, vector<8x8xf32> -> vector<8x8xf32>
    %54 = vector.extract_strided_slice %30 {offsets = [0, 0], sizes = [8, 32], strides = [1, 1]} : vector<32x32xf32> to vector<8x32xf32>
    %cst_29 = arith.constant dense<0.000000e+00> : vector<8x32xf32>
    %55 = tpu.matmul %53, %54, %cst_29 {dimension_numbers = #tpu.dot_dimension_numbers<[1], [0], [0], [1], [0, 0, 1, 1], [], []>} : vector<8x8xf32>, vector<8x32xf32>, vector<8x32xf32> -> vector<8x32xf32>
    %56 = vector.broadcast %31 : vector<1x32xf32> to vector<8x32xf32>
    %57 = arith.addf %56, %55 : vector<8x32xf32>
    %58 = vector.extract_strided_slice %35 {offsets = [0, 8], sizes = [8, 8], strides = [1, 1]} : vector<8x96xf32> to vector<8x8xf32>
    %59 = vector.extract_strided_slice %35 {offsets = [0, 40], sizes = [8, 8], strides = [1, 1]} : vector<8x96xf32> to vector<8x8xf32>
    %60 = vector.extract_strided_slice %35 {offsets = [0, 72], sizes = [8, 8], strides = [1, 1]} : vector<8x96xf32> to vector<8x8xf32>
    %cst_30 = arith.constant dense<0.000000e+00> : vector<8x8xf32>
    %61 = tpu.matmul %58, %59, %cst_30 {dimension_numbers = #tpu.dot_dimension_numbers<[1], [1], [0], [0], [0, 0, 1, 0], [], []>} : vector<8x8xf32>, vector<8x8xf32>, vector<8x8xf32> -> vector<8x8xf32>
    %cst_31 = arith.constant 0.353553385 : f32
    %62 = vector.broadcast %cst_31 : f32 to vector<8x8xf32>
    %63 = arith.mulf %61, %62 : vector<8x8xf32>
    %64 = arith.addf %63, %32 : vector<8x8xf32>
    %cst_32 = arith.constant dense<0xFF800000> : vector<8xf32>
    %65 = vector.multi_reduction <maximumf>, %64, %cst_32 [1] : vector<8x8xf32> to vector<8xf32>
    %66 = vector.shape_cast %65 : vector<8xf32> to vector<8x1xf32>
    %67 = vector.broadcast %66 : vector<8x1xf32> to vector<8x8xf32>
    %68 = arith.subf %64, %67 : vector<8x8xf32>
    %69 = math.exp %68 : vector<8x8xf32>
    %cst_33 = arith.constant dense<0.000000e+00> : vector<8xf32>
    %70 = vector.multi_reduction <add>, %69, %cst_33 [1] : vector<8x8xf32> to vector<8xf32>
    %71 = vector.shape_cast %70 : vector<8xf32> to vector<8x1xf32>
    %72 = tpu.reciprocal %71 {approx = true} : vector<8x1xf32> -> vector<8x1xf32>
    %73 = vector.broadcast %72 : vector<8x1xf32> to vector<8x8xf32>
    %74 = arith.mulf %69, %73 : vector<8x8xf32>
    %cst_34 = arith.constant dense<0.000000e+00> : vector<8x8xf32>
    %75 = tpu.matmul %74, %60, %cst_34 {dimension_numbers = #tpu.dot_dimension_numbers<[1], [0], [0], [1], [0, 0, 1, 1], [], []>} : vector<8x8xf32>, vector<8x8xf32>, vector<8x8xf32> -> vector<8x8xf32>
    %76 = vector.extract_strided_slice %30 {offsets = [8, 0], sizes = [8, 32], strides = [1, 1]} : vector<32x32xf32> to vector<8x32xf32>
    %cst_35 = arith.constant dense<0.000000e+00> : vector<8x32xf32>
    %77 = tpu.matmul %75, %76, %cst_35 {dimension_numbers = #tpu.dot_dimension_numbers<[1], [0], [0], [1], [0, 0, 1, 1], [], []>} : vector<8x8xf32>, vector<8x32xf32>, vector<8x32xf32> -> vector<8x32xf32>
    %78 = arith.addf %57, %77 : vector<8x32xf32>
    %79 = vector.extract_strided_slice %35 {offsets = [0, 16], sizes = [8, 8], strides = [1, 1]} : vector<8x96xf32> to vector<8x8xf32>
    %80 = vector.extract_strided_slice %35 {offsets = [0, 48], sizes = [8, 8], strides = [1, 1]} : vector<8x96xf32> to vector<8x8xf32>
    %81 = vector.extract_strided_slice %35 {offsets = [0, 80], sizes = [8, 8], strides = [1, 1]} : vector<8x96xf32> to vector<8x8xf32>
    %cst_36 = arith.constant dense<0.000000e+00> : vector<8x8xf32>
    %82 = tpu.matmul %79, %80, %cst_36 {dimension_numbers = #tpu.dot_dimension_numbers<[1], [1], [0], [0], [0, 0, 1, 0], [], []>} : vector<8x8xf32>, vector<8x8xf32>, vector<8x8xf32> -> vector<8x8xf32>
    %cst_37 = arith.constant 0.353553385 : f32
    %83 = vector.broadcast %cst_37 : f32 to vector<8x8xf32>
    %84 = arith.mulf %82, %83 : vector<8x8xf32>
    %85 = arith.addf %84, %32 : vector<8x8xf32>
    %cst_38 = arith.constant dense<0xFF800000> : vector<8xf32>
    %86 = vector.multi_reduction <maximumf>, %85, %cst_38 [1] : vector<8x8xf32> to vector<8xf32>
    %87 = vector.shape_cast %86 : vector<8xf32> to vector<8x1xf32>
    %88 = vector.broadcast %87 : vector<8x1xf32> to vector<8x8xf32>
    %89 = arith.subf %85, %88 : vector<8x8xf32>
    %90 = math.exp %89 : vector<8x8xf32>
    %cst_39 = arith.constant dense<0.000000e+00> : vector<8xf32>
    %91 = vector.multi_reduction <add>, %90, %cst_39 [1] : vector<8x8xf32> to vector<8xf32>
    %92 = vector.shape_cast %91 : vector<8xf32> to vector<8x1xf32>
    %93 = tpu.reciprocal %92 {approx = true} : vector<8x1xf32> -> vector<8x1xf32>
    %94 = vector.broadcast %93 : vector<8x1xf32> to vector<8x8xf32>
    %95 = arith.mulf %90, %94 : vector<8x8xf32>
    %cst_40 = arith.constant dense<0.000000e+00> : vector<8x8xf32>
    %96 = tpu.matmul %95, %81, %cst_40 {dimension_numbers = #tpu.dot_dimension_numbers<[1], [0], [0], [1], [0, 0, 1, 1], [], []>} : vector<8x8xf32>, vector<8x8xf32>, vector<8x8xf32> -> vector<8x8xf32>
    %97 = vector.extract_strided_slice %30 {offsets = [16, 0], sizes = [8, 32], strides = [1, 1]} : vector<32x32xf32> to vector<8x32xf32>
    %cst_41 = arith.constant dense<0.000000e+00> : vector<8x32xf32>
    %98 = tpu.matmul %96, %97, %cst_41 {dimension_numbers = #tpu.dot_dimension_numbers<[1], [0], [0], [1], [0, 0, 1, 1], [], []>} : vector<8x8xf32>, vector<8x32xf32>, vector<8x32xf32> -> vector<8x32xf32>
    %99 = arith.addf %78, %98 : vector<8x32xf32>
    %100 = vector.extract_strided_slice %35 {offsets = [0, 24], sizes = [8, 8], strides = [1, 1]} : vector<8x96xf32> to vector<8x8xf32>
    %101 = vector.extract_strided_slice %35 {offsets = [0, 56], sizes = [8, 8], strides = [1, 1]} : vector<8x96xf32> to vector<8x8xf32>
    %102 = vector.extract_strided_slice %35 {offsets = [0, 88], sizes = [8, 8], strides = [1, 1]} : vector<8x96xf32> to vector<8x8xf32>
    %cst_42 = arith.constant dense<0.000000e+00> : vector<8x8xf32>
    %103 = tpu.matmul %100, %101, %cst_42 {dimension_numbers = #tpu.dot_dimension_numbers<[1], [1], [0], [0], [0, 0, 1, 0], [], []>} : vector<8x8xf32>, vector<8x8xf32>, vector<8x8xf32> -> vector<8x8xf32>
    %cst_43 = arith.constant 0.353553385 : f32
    %104 = vector.broadcast %cst_43 : f32 to vector<8x8xf32>
    %105 = arith.mulf %103, %104 : vector<8x8xf32>
    %106 = arith.addf %105, %32 : vector<8x8xf32>
    %cst_44 = arith.constant dense<0xFF800000> : vector<8xf32>
    %107 = vector.multi_reduction <maximumf>, %106, %cst_44 [1] : vector<8x8xf32> to vector<8xf32>
    %108 = vector.shape_cast %107 : vector<8xf32> to vector<8x1xf32>
    %109 = vector.broadcast %108 : vector<8x1xf32> to vector<8x8xf32>
    %110 = arith.subf %106, %109 : vector<8x8xf32>
    %111 = math.exp %110 : vector<8x8xf32>
    %cst_45 = arith.constant dense<0.000000e+00> : vector<8xf32>
    %112 = vector.multi_reduction <add>, %111, %cst_45 [1] : vector<8x8xf32> to vector<8xf32>
    %113 = vector.shape_cast %112 : vector<8xf32> to vector<8x1xf32>
    %114 = tpu.reciprocal %113 {approx = true} : vector<8x1xf32> -> vector<8x1xf32>
    %115 = vector.broadcast %114 : vector<8x1xf32> to vector<8x8xf32>
    %116 = arith.mulf %111, %115 : vector<8x8xf32>
    %cst_46 = arith.constant dense<0.000000e+00> : vector<8x8xf32>
    %117 = tpu.matmul %116, %102, %cst_46 {dimension_numbers = #tpu.dot_dimension_numbers<[1], [0], [0], [1], [0, 0, 1, 1], [], []>} : vector<8x8xf32>, vector<8x8xf32>, vector<8x8xf32> -> vector<8x8xf32>
    %118 = vector.extract_strided_slice %30 {offsets = [24, 0], sizes = [8, 32], strides = [1, 1]} : vector<32x32xf32> to vector<8x32xf32>
    %cst_47 = arith.constant dense<0.000000e+00> : vector<8x32xf32>
    %119 = tpu.matmul %117, %118, %cst_47 {dimension_numbers = #tpu.dot_dimension_numbers<[1], [0], [0], [1], [0, 0, 1, 1], [], []>} : vector<8x8xf32>, vector<8x32xf32>, vector<8x32xf32> -> vector<8x32xf32>
    %120 = arith.addf %99, %119 : vector<8x32xf32>
    %c0_48 = arith.constant 0 : index
    %c0_49 = arith.constant 0 : index
    %121 = vector.load %arg9[%c0_48, %c0_49] : memref<32x32xf32, #tpu.memory_space<vmem>>, vector<32x32xf32>
    %cst_50 = arith.constant dense<0.000000e+00> : vector<8x32xf32>
    %122 = tpu.matmul %120, %121, %cst_50 {dimension_numbers = #tpu.dot_dimension_numbers<[1], [0], [0], [1], [0, 0, 1, 1], [], []>} : vector<8x32xf32>, vector<32x32xf32>, vector<8x32xf32> -> vector<8x32xf32>
    %c0_51 = arith.constant 0 : index
    %c0_52 = arith.constant 0 : index
    %123 = vector.load %arg10[%c0_51, %c0_52] : memref<1x32xf32, #tpu.memory_space<vmem>>, vector<1x32xf32>
    %124 = vector.broadcast %123 : vector<1x32xf32> to vector<8x32xf32>
    %125 = arith.addf %122, %124 : vector<8x32xf32>
    %126 = arith.addf %3, %125 : vector<8x32xf32>
    %c0_53 = arith.constant 0 : index
    %c0_54 = arith.constant 0 : index
    %127 = vector.load %arg25[%c0_53, %c0_54] : memref<10x1xf32, #tpu.memory_space<vmem>>, vector<10x1xf32>
    %128 = vector.broadcast %127 : vector<10x1xf32> to vector<10x32xf32>
    %129 = vector.broadcast %1 : vector<1x32xf32> to vector<10x32xf32>
    %130 = arith.mulf %128, %129 : vector<10x32xf32>
    %c0_55 = arith.constant 0 : index
    %c0_56 = arith.constant 0 : index
    %131 = vector.load %arg26[%c0_55, %c0_56] : memref<10x8xf32, #tpu.memory_space<vmem>>, vector<10x8xf32>
    %cst_57 = arith.constant dense<0.000000e+00> : vector<10x32xf32>
    %132 = tpu.matmul %131, %126, %cst_57 {dimension_numbers = #tpu.dot_dimension_numbers<[1], [0], [0], [1], [0, 0, 1, 1], [], []>} : vector<10x8xf32>, vector<8x32xf32>, vector<10x32xf32> -> vector<10x32xf32>
    %133 = arith.addf %130, %132 : vector<10x32xf32>
    %c0_58 = arith.constant 0 : index
    %c0_59 = arith.constant 0 : index
    %134 = vector.load %arg11[%c0_58, %c0_59] : memref<1x32xf32, #tpu.memory_space<vmem>>, vector<1x32xf32>
    %c0_60 = arith.constant 0 : index
    %c0_61 = arith.constant 0 : index
    %135 = vector.load %arg12[%c0_60, %c0_61] : memref<1x32xf32, #tpu.memory_space<vmem>>, vector<1x32xf32>
    %cst_62 = arith.constant dense<0.000000e+00> : vector<10xf32>
    %136 = vector.multi_reduction <add>, %133, %cst_62 [1] : vector<10x32xf32> to vector<10xf32>
    %137 = vector.shape_cast %136 : vector<10xf32> to vector<10x1xf32>
    %cst_63 = arith.constant 3.200000e+01 : f32
    %138 = vector.broadcast %cst_63 : f32 to vector<10x1xf32>
    %139 = arith.divf %137, %138 : vector<10x1xf32>
    %140 = vector.broadcast %139 : vector<10x1xf32> to vector<10x32xf32>
    %141 = arith.subf %133, %140 : vector<10x32xf32>
    %142 = arith.mulf %141, %141 : vector<10x32xf32>
    %cst_64 = arith.constant dense<0.000000e+00> : vector<10xf32>
    %143 = vector.multi_reduction <add>, %142, %cst_64 [1] : vector<10x32xf32> to vector<10xf32>
    %144 = vector.shape_cast %143 : vector<10xf32> to vector<10x1xf32>
    %cst_65 = arith.constant 3.200000e+01 : f32
    %145 = vector.broadcast %cst_65 : f32 to vector<10x1xf32>
    %146 = arith.divf %144, %145 : vector<10x1xf32>
    %147 = vector.broadcast %139 : vector<10x1xf32> to vector<10x32xf32>
    %148 = arith.subf %133, %147 : vector<10x32xf32>
    %cst_66 = arith.constant 9.99999997E-7 : f32
    %149 = vector.broadcast %cst_66 : f32 to vector<10x1xf32>
    %150 = arith.addf %146, %149 : vector<10x1xf32>
    %151 = math.rsqrt %150 : vector<10x1xf32>
    %152 = vector.broadcast %151 : vector<10x1xf32> to vector<10x32xf32>
    %153 = arith.mulf %148, %152 : vector<10x32xf32>
    %154 = vector.broadcast %134 : vector<1x32xf32> to vector<10x32xf32>
    %155 = arith.mulf %153, %154 : vector<10x32xf32>
    %156 = vector.broadcast %135 : vector<1x32xf32> to vector<10x32xf32>
    %157 = arith.addf %155, %156 : vector<10x32xf32>
    %c0_67 = arith.constant 0 : index
    %c0_68 = arith.constant 0 : index
    %158 = vector.load %arg13[%c0_67, %c0_68] : memref<32x96xf32, #tpu.memory_space<vmem>>, vector<32x96xf32>
    %c0_69 = arith.constant 0 : index
    %c0_70 = arith.constant 0 : index
    %159 = vector.load %arg14[%c0_69, %c0_70] : memref<1x96xf32, #tpu.memory_space<vmem>>, vector<1x96xf32>
    %c0_71 = arith.constant 0 : index
    %c0_72 = arith.constant 0 : index
    %160 = vector.load %arg15[%c0_71, %c0_72] : memref<32x32xf32, #tpu.memory_space<vmem>>, vector<32x32xf32>
    %c0_73 = arith.constant 0 : index
    %c0_74 = arith.constant 0 : index
    %161 = vector.load %arg16[%c0_73, %c0_74] : memref<1x32xf32, #tpu.memory_space<vmem>>, vector<1x32xf32>
    %c0_75 = arith.constant 0 : index
    %c0_76 = arith.constant 0 : index
    %162 = vector.load %arg24[%c0_75, %c0_76] : memref<10x10xf32, #tpu.memory_space<vmem>>, vector<10x10xf32>
    %cst_77 = arith.constant dense<0.000000e+00> : vector<10x96xf32>
    %163 = tpu.matmul %157, %158, %cst_77 {dimension_numbers = #tpu.dot_dimension_numbers<[1], [0], [0], [1], [0, 0, 1, 1], [], []>} : vector<10x32xf32>, vector<32x96xf32>, vector<10x96xf32> -> vector<10x96xf32>
    %164 = vector.broadcast %159 : vector<1x96xf32> to vector<10x96xf32>
    %165 = arith.addf %163, %164 : vector<10x96xf32>
    %166 = vector.extract_strided_slice %165 {offsets = [0, 0], sizes = [10, 8], strides = [1, 1]} : vector<10x96xf32> to vector<10x8xf32>
    %167 = vector.extract_strided_slice %165 {offsets = [0, 32], sizes = [10, 8], strides = [1, 1]} : vector<10x96xf32> to vector<10x8xf32>
    %168 = vector.extract_strided_slice %165 {offsets = [0, 64], sizes = [10, 8], strides = [1, 1]} : vector<10x96xf32> to vector<10x8xf32>
    %cst_78 = arith.constant dense<0.000000e+00> : vector<10x10xf32>
    %169 = tpu.matmul %166, %167, %cst_78 {dimension_numbers = #tpu.dot_dimension_numbers<[1], [1], [0], [0], [0, 0, 1, 0], [], []>} : vector<10x8xf32>, vector<10x8xf32>, vector<10x10xf32> -> vector<10x10xf32>
    %cst_79 = arith.constant 0.353553385 : f32
    %170 = vector.broadcast %cst_79 : f32 to vector<10x10xf32>
    %171 = arith.mulf %169, %170 : vector<10x10xf32>
    %172 = arith.addf %171, %162 : vector<10x10xf32>
    %cst_80 = arith.constant dense<0xFF800000> : vector<10xf32>
    %173 = vector.multi_reduction <maximumf>, %172, %cst_80 [1] : vector<10x10xf32> to vector<10xf32>
    %174 = vector.shape_cast %173 : vector<10xf32> to vector<10x1xf32>
    %175 = vector.broadcast %174 : vector<10x1xf32> to vector<10x10xf32>
    %176 = arith.subf %172, %175 : vector<10x10xf32>
    %177 = math.exp %176 : vector<10x10xf32>
    %cst_81 = arith.constant dense<0.000000e+00> : vector<10xf32>
    %178 = vector.multi_reduction <add>, %177, %cst_81 [1] : vector<10x10xf32> to vector<10xf32>
    %179 = vector.shape_cast %178 : vector<10xf32> to vector<10x1xf32>
    %180 = tpu.reciprocal %179 {approx = true} : vector<10x1xf32> -> vector<10x1xf32>
    %181 = vector.broadcast %180 : vector<10x1xf32> to vector<10x10xf32>
    %182 = arith.mulf %177, %181 : vector<10x10xf32>
    %cst_82 = arith.constant dense<0.000000e+00> : vector<10x8xf32>
    %183 = tpu.matmul %182, %168, %cst_82 {dimension_numbers = #tpu.dot_dimension_numbers<[1], [0], [0], [1], [0, 0, 1, 1], [], []>} : vector<10x10xf32>, vector<10x8xf32>, vector<10x8xf32> -> vector<10x8xf32>
    %184 = vector.extract_strided_slice %160 {offsets = [0, 0], sizes = [8, 32], strides = [1, 1]} : vector<32x32xf32> to vector<8x32xf32>
    %cst_83 = arith.constant dense<0.000000e+00> : vector<10x32xf32>
    %185 = tpu.matmul %183, %184, %cst_83 {dimension_numbers = #tpu.dot_dimension_numbers<[1], [0], [0], [1], [0, 0, 1, 1], [], []>} : vector<10x8xf32>, vector<8x32xf32>, vector<10x32xf32> -> vector<10x32xf32>
    %186 = vector.broadcast %161 : vector<1x32xf32> to vector<10x32xf32>
    %187 = arith.addf %186, %185 : vector<10x32xf32>
    %188 = vector.extract_strided_slice %165 {offsets = [0, 8], sizes = [10, 8], strides = [1, 1]} : vector<10x96xf32> to vector<10x8xf32>
    %189 = vector.extract_strided_slice %165 {offsets = [0, 40], sizes = [10, 8], strides = [1, 1]} : vector<10x96xf32> to vector<10x8xf32>
    %190 = vector.extract_strided_slice %165 {offsets = [0, 72], sizes = [10, 8], strides = [1, 1]} : vector<10x96xf32> to vector<10x8xf32>
    %cst_84 = arith.constant dense<0.000000e+00> : vector<10x10xf32>
    %191 = tpu.matmul %188, %189, %cst_84 {dimension_numbers = #tpu.dot_dimension_numbers<[1], [1], [0], [0], [0, 0, 1, 0], [], []>} : vector<10x8xf32>, vector<10x8xf32>, vector<10x10xf32> -> vector<10x10xf32>
    %cst_85 = arith.constant 0.353553385 : f32
    %192 = vector.broadcast %cst_85 : f32 to vector<10x10xf32>
    %193 = arith.mulf %191, %192 : vector<10x10xf32>
    %194 = arith.addf %193, %162 : vector<10x10xf32>
    %cst_86 = arith.constant dense<0xFF800000> : vector<10xf32>
    %195 = vector.multi_reduction <maximumf>, %194, %cst_86 [1] : vector<10x10xf32> to vector<10xf32>
    %196 = vector.shape_cast %195 : vector<10xf32> to vector<10x1xf32>
    %197 = vector.broadcast %196 : vector<10x1xf32> to vector<10x10xf32>
    %198 = arith.subf %194, %197 : vector<10x10xf32>
    %199 = math.exp %198 : vector<10x10xf32>
    %cst_87 = arith.constant dense<0.000000e+00> : vector<10xf32>
    %200 = vector.multi_reduction <add>, %199, %cst_87 [1] : vector<10x10xf32> to vector<10xf32>
    %201 = vector.shape_cast %200 : vector<10xf32> to vector<10x1xf32>
    %202 = tpu.reciprocal %201 {approx = true} : vector<10x1xf32> -> vector<10x1xf32>
    %203 = vector.broadcast %202 : vector<10x1xf32> to vector<10x10xf32>
    %204 = arith.mulf %199, %203 : vector<10x10xf32>
    %cst_88 = arith.constant dense<0.000000e+00> : vector<10x8xf32>
    %205 = tpu.matmul %204, %190, %cst_88 {dimension_numbers = #tpu.dot_dimension_numbers<[1], [0], [0], [1], [0, 0, 1, 1], [], []>} : vector<10x10xf32>, vector<10x8xf32>, vector<10x8xf32> -> vector<10x8xf32>
    %206 = vector.extract_strided_slice %160 {offsets = [8, 0], sizes = [8, 32], strides = [1, 1]} : vector<32x32xf32> to vector<8x32xf32>
    %cst_89 = arith.constant dense<0.000000e+00> : vector<10x32xf32>
    %207 = tpu.matmul %205, %206, %cst_89 {dimension_numbers = #tpu.dot_dimension_numbers<[1], [0], [0], [1], [0, 0, 1, 1], [], []>} : vector<10x8xf32>, vector<8x32xf32>, vector<10x32xf32> -> vector<10x32xf32>
    %208 = arith.addf %187, %207 : vector<10x32xf32>
    %209 = vector.extract_strided_slice %165 {offsets = [0, 16], sizes = [10, 8], strides = [1, 1]} : vector<10x96xf32> to vector<10x8xf32>
    %210 = vector.extract_strided_slice %165 {offsets = [0, 48], sizes = [10, 8], strides = [1, 1]} : vector<10x96xf32> to vector<10x8xf32>
    %211 = vector.extract_strided_slice %165 {offsets = [0, 80], sizes = [10, 8], strides = [1, 1]} : vector<10x96xf32> to vector<10x8xf32>
    %cst_90 = arith.constant dense<0.000000e+00> : vector<10x10xf32>
    %212 = tpu.matmul %209, %210, %cst_90 {dimension_numbers = #tpu.dot_dimension_numbers<[1], [1], [0], [0], [0, 0, 1, 0], [], []>} : vector<10x8xf32>, vector<10x8xf32>, vector<10x10xf32> -> vector<10x10xf32>
    %cst_91 = arith.constant 0.353553385 : f32
    %213 = vector.broadcast %cst_91 : f32 to vector<10x10xf32>
    %214 = arith.mulf %212, %213 : vector<10x10xf32>
    %215 = arith.addf %214, %162 : vector<10x10xf32>
    %cst_92 = arith.constant dense<0xFF800000> : vector<10xf32>
    %216 = vector.multi_reduction <maximumf>, %215, %cst_92 [1] : vector<10x10xf32> to vector<10xf32>
    %217 = vector.shape_cast %216 : vector<10xf32> to vector<10x1xf32>
    %218 = vector.broadcast %217 : vector<10x1xf32> to vector<10x10xf32>
    %219 = arith.subf %215, %218 : vector<10x10xf32>
    %220 = math.exp %219 : vector<10x10xf32>
    %cst_93 = arith.constant dense<0.000000e+00> : vector<10xf32>
    %221 = vector.multi_reduction <add>, %220, %cst_93 [1] : vector<10x10xf32> to vector<10xf32>
    %222 = vector.shape_cast %221 : vector<10xf32> to vector<10x1xf32>
    %223 = tpu.reciprocal %222 {approx = true} : vector<10x1xf32> -> vector<10x1xf32>
    %224 = vector.broadcast %223 : vector<10x1xf32> to vector<10x10xf32>
    %225 = arith.mulf %220, %224 : vector<10x10xf32>
    %cst_94 = arith.constant dense<0.000000e+00> : vector<10x8xf32>
    %226 = tpu.matmul %225, %211, %cst_94 {dimension_numbers = #tpu.dot_dimension_numbers<[1], [0], [0], [1], [0, 0, 1, 1], [], []>} : vector<10x10xf32>, vector<10x8xf32>, vector<10x8xf32> -> vector<10x8xf32>
    %227 = vector.extract_strided_slice %160 {offsets = [16, 0], sizes = [8, 32], strides = [1, 1]} : vector<32x32xf32> to vector<8x32xf32>
    %cst_95 = arith.constant dense<0.000000e+00> : vector<10x32xf32>
    %228 = tpu.matmul %226, %227, %cst_95 {dimension_numbers = #tpu.dot_dimension_numbers<[1], [0], [0], [1], [0, 0, 1, 1], [], []>} : vector<10x8xf32>, vector<8x32xf32>, vector<10x32xf32> -> vector<10x32xf32>
    %229 = arith.addf %208, %228 : vector<10x32xf32>
    %230 = vector.extract_strided_slice %165 {offsets = [0, 24], sizes = [10, 8], strides = [1, 1]} : vector<10x96xf32> to vector<10x8xf32>
    %231 = vector.extract_strided_slice %165 {offsets = [0, 56], sizes = [10, 8], strides = [1, 1]} : vector<10x96xf32> to vector<10x8xf32>
    %232 = vector.extract_strided_slice %165 {offsets = [0, 88], sizes = [10, 8], strides = [1, 1]} : vector<10x96xf32> to vector<10x8xf32>
    %cst_96 = arith.constant dense<0.000000e+00> : vector<10x10xf32>
    %233 = tpu.matmul %230, %231, %cst_96 {dimension_numbers = #tpu.dot_dimension_numbers<[1], [1], [0], [0], [0, 0, 1, 0], [], []>} : vector<10x8xf32>, vector<10x8xf32>, vector<10x10xf32> -> vector<10x10xf32>
    %cst_97 = arith.constant 0.353553385 : f32
    %234 = vector.broadcast %cst_97 : f32 to vector<10x10xf32>
    %235 = arith.mulf %233, %234 : vector<10x10xf32>
    %236 = arith.addf %235, %162 : vector<10x10xf32>
    %cst_98 = arith.constant dense<0xFF800000> : vector<10xf32>
    %237 = vector.multi_reduction <maximumf>, %236, %cst_98 [1] : vector<10x10xf32> to vector<10xf32>
    %238 = vector.shape_cast %237 : vector<10xf32> to vector<10x1xf32>
    %239 = vector.broadcast %238 : vector<10x1xf32> to vector<10x10xf32>
    %240 = arith.subf %236, %239 : vector<10x10xf32>
    %241 = math.exp %240 : vector<10x10xf32>
    %cst_99 = arith.constant dense<0.000000e+00> : vector<10xf32>
    %242 = vector.multi_reduction <add>, %241, %cst_99 [1] : vector<10x10xf32> to vector<10xf32>
    %243 = vector.shape_cast %242 : vector<10xf32> to vector<10x1xf32>
    %244 = tpu.reciprocal %243 {approx = true} : vector<10x1xf32> -> vector<10x1xf32>
    %245 = vector.broadcast %244 : vector<10x1xf32> to vector<10x10xf32>
    %246 = arith.mulf %241, %245 : vector<10x10xf32>
    %cst_100 = arith.constant dense<0.000000e+00> : vector<10x8xf32>
    %247 = tpu.matmul %246, %232, %cst_100 {dimension_numbers = #tpu.dot_dimension_numbers<[1], [0], [0], [1], [0, 0, 1, 1], [], []>} : vector<10x10xf32>, vector<10x8xf32>, vector<10x8xf32> -> vector<10x8xf32>
    %248 = vector.extract_strided_slice %160 {offsets = [24, 0], sizes = [8, 32], strides = [1, 1]} : vector<32x32xf32> to vector<8x32xf32>
    %cst_101 = arith.constant dense<0.000000e+00> : vector<10x32xf32>
    %249 = tpu.matmul %247, %248, %cst_101 {dimension_numbers = #tpu.dot_dimension_numbers<[1], [0], [0], [1], [0, 0, 1, 1], [], []>} : vector<10x8xf32>, vector<8x32xf32>, vector<10x32xf32> -> vector<10x32xf32>
    %250 = arith.addf %229, %249 : vector<10x32xf32>
    %c0_102 = arith.constant 0 : index
    %c0_103 = arith.constant 0 : index
    %251 = vector.load %arg27[%c0_102, %c0_103] : memref<1x10xf32, #tpu.memory_space<vmem>>, vector<1x10xf32>
    %cst_104 = arith.constant dense<0.000000e+00> : vector<1x32xf32>
    %252 = tpu.matmul %251, %250, %cst_104 {dimension_numbers = #tpu.dot_dimension_numbers<[1], [0], [0], [1], [0, 0, 1, 1], [], []>} : vector<1x10xf32>, vector<10x32xf32>, vector<1x32xf32> -> vector<1x32xf32>
    %c0_105 = arith.constant 0 : index
    %c0_106 = arith.constant 0 : index
    %253 = vector.load %arg28[%c0_105, %c0_106] : memref<8x10xf32, #tpu.memory_space<vmem>>, vector<8x10xf32>
    %cst_107 = arith.constant dense<0.000000e+00> : vector<8x32xf32>
    %254 = tpu.matmul %253, %250, %cst_107 {dimension_numbers = #tpu.dot_dimension_numbers<[1], [0], [0], [1], [0, 0, 1, 1], [], []>} : vector<8x10xf32>, vector<10x32xf32>, vector<8x32xf32> -> vector<8x32xf32>
    %255 = arith.addf %1, %252 : vector<1x32xf32>
    %256 = arith.addf %126, %254 : vector<8x32xf32>
    %c0_108 = arith.constant 0 : index
    %c0_109 = arith.constant 0 : index
    %257 = vector.load %arg17[%c0_108, %c0_109] : memref<1x32xf32, #tpu.memory_space<vmem>>, vector<1x32xf32>
    %c0_110 = arith.constant 0 : index
    %c0_111 = arith.constant 0 : index
    %258 = vector.load %arg18[%c0_110, %c0_111] : memref<1x32xf32, #tpu.memory_space<vmem>>, vector<1x32xf32>
    %cst_112 = arith.constant dense<0.000000e+00> : vector<1xf32>
    %259 = vector.multi_reduction <add>, %255, %cst_112 [1] : vector<1x32xf32> to vector<1xf32>
    %260 = vector.shape_cast %259 : vector<1xf32> to vector<1x1xf32>
    %cst_113 = arith.constant 3.200000e+01 : f32
    %261 = vector.broadcast %cst_113 : f32 to vector<1x1xf32>
    %262 = arith.divf %260, %261 : vector<1x1xf32>
    %263 = vector.broadcast %262 : vector<1x1xf32> to vector<1x32xf32>
    %264 = arith.subf %255, %263 : vector<1x32xf32>
    %265 = arith.mulf %264, %264 : vector<1x32xf32>
    %cst_114 = arith.constant dense<0.000000e+00> : vector<1xf32>
    %266 = vector.multi_reduction <add>, %265, %cst_114 [1] : vector<1x32xf32> to vector<1xf32>
    %267 = vector.shape_cast %266 : vector<1xf32> to vector<1x1xf32>
    %cst_115 = arith.constant 3.200000e+01 : f32
    %268 = vector.broadcast %cst_115 : f32 to vector<1x1xf32>
    %269 = arith.divf %267, %268 : vector<1x1xf32>
    %270 = vector.broadcast %262 : vector<1x1xf32> to vector<1x32xf32>
    %271 = arith.subf %255, %270 : vector<1x32xf32>
    %cst_116 = arith.constant 9.99999997E-7 : f32
    %272 = vector.broadcast %cst_116 : f32 to vector<1x1xf32>
    %273 = arith.addf %269, %272 : vector<1x1xf32>
    %274 = math.rsqrt %273 : vector<1x1xf32>
    %275 = vector.broadcast %274 : vector<1x1xf32> to vector<1x32xf32>
    %276 = arith.mulf %271, %275 : vector<1x32xf32>
    %277 = arith.mulf %276, %257 : vector<1x32xf32>
    %278 = arith.addf %277, %258 : vector<1x32xf32>
    %c0_117 = arith.constant 0 : index
    %c0_118 = arith.constant 0 : index
    %279 = vector.load %arg19[%c0_117, %c0_118] : memref<32x64xf32, #tpu.memory_space<vmem>>, vector<32x64xf32>
    %cst_119 = arith.constant dense<0.000000e+00> : vector<1x64xf32>
    %280 = tpu.matmul %278, %279, %cst_119 {dimension_numbers = #tpu.dot_dimension_numbers<[1], [0], [0], [1], [0, 0, 1, 1], [], []>} : vector<1x32xf32>, vector<32x64xf32>, vector<1x64xf32> -> vector<1x64xf32>
    %c0_120 = arith.constant 0 : index
    %c0_121 = arith.constant 0 : index
    %281 = vector.load %arg20[%c0_120, %c0_121] : memref<1x64xf32, #tpu.memory_space<vmem>>, vector<1x64xf32>
    %282 = arith.addf %280, %281 : vector<1x64xf32>
    %cst_122 = arith.constant 5.000000e-01 : f32
    %283 = vector.broadcast %cst_122 : f32 to vector<1x64xf32>
    %284 = arith.mulf %283, %282 : vector<1x64xf32>
    %cst_123 = arith.constant 0.707106769 : f32
    %285 = vector.broadcast %cst_123 : f32 to vector<1x64xf32>
    %286 = arith.mulf %282, %285 : vector<1x64xf32>
    %287 = math.erf %286 : vector<1x64xf32>
    %cst_124 = arith.constant 1.000000e+00 : f32
    %288 = vector.broadcast %cst_124 : f32 to vector<1x64xf32>
    %289 = arith.addf %288, %287 : vector<1x64xf32>
    %290 = arith.mulf %284, %289 : vector<1x64xf32>
    %c0_125 = arith.constant 0 : index
    %c0_126 = arith.constant 0 : index
    %291 = vector.load %arg21[%c0_125, %c0_126] : memref<64x32xf32, #tpu.memory_space<vmem>>, vector<64x32xf32>
    %cst_127 = arith.constant dense<0.000000e+00> : vector<1x32xf32>
    %292 = tpu.matmul %290, %291, %cst_127 {dimension_numbers = #tpu.dot_dimension_numbers<[1], [0], [0], [1], [0, 0, 1, 1], [], []>} : vector<1x64xf32>, vector<64x32xf32>, vector<1x32xf32> -> vector<1x32xf32>
    %c0_128 = arith.constant 0 : index
    %c0_129 = arith.constant 0 : index
    %293 = vector.load %arg22[%c0_128, %c0_129] : memref<1x32xf32, #tpu.memory_space<vmem>>, vector<1x32xf32>
    %294 = arith.addf %292, %293 : vector<1x32xf32>
    %295 = arith.addf %255, %294 : vector<1x32xf32>
    %c0_130 = arith.constant 0 : index
    %c0_131 = arith.constant 0 : index
    %c0_132 = arith.constant 0 : index
    %296 = vector.load %arg29[%c0_130, %c0_131, %c0_132] : memref<1x1x32xf32, #tpu.memory_space<vmem>>, vector<1x1x32xf32>
    %297 = vector.shape_cast %296 : vector<1x1x32xf32> to vector<1x32xf32>
    %298 = vector.shape_cast %295 : vector<1x32xf32> to vector<1x1x32xf32>
    tpu.vector_store %arg29[%c0_130, %c0_131, %c0_132], %298 {strides = array<i32>} : memref<1x1x32xf32, #tpu.memory_space<vmem>>, vector<1x1x32xf32>,
    %c0_133 = arith.constant 0 : index
    %c0_134 = arith.constant 0 : index
    %299 = vector.load %arg17[%c0_133, %c0_134] : memref<1x32xf32, #tpu.memory_space<vmem>>, vector<1x32xf32>
    %c0_135 = arith.constant 0 : index
    %c0_136 = arith.constant 0 : index
    %300 = vector.load %arg18[%c0_135, %c0_136] : memref<1x32xf32, #tpu.memory_space<vmem>>, vector<1x32xf32>
    %cst_137 = arith.constant dense<0.000000e+00> : vector<8xf32>
    %301 = vector.multi_reduction <add>, %256, %cst_137 [1] : vector<8x32xf32> to vector<8xf32>
    %302 = vector.shape_cast %301 : vector<8xf32> to vector<8x1xf32>
    %cst_138 = arith.constant 3.200000e+01 : f32
    %303 = vector.broadcast %cst_138 : f32 to vector<8x1xf32>
    %304 = arith.divf %302, %303 : vector<8x1xf32>
    %305 = vector.broadcast %304 : vector<8x1xf32> to vector<8x32xf32>
    %306 = arith.subf %256, %305 : vector<8x32xf32>
    %307 = arith.mulf %306, %306 : vector<8x32xf32>
    %cst_139 = arith.constant dense<0.000000e+00> : vector<8xf32>
    %308 = vector.multi_reduction <add>, %307, %cst_139 [1] : vector<8x32xf32> to vector<8xf32>
    %309 = vector.shape_cast %308 : vector<8xf32> to vector<8x1xf32>
    %cst_140 = arith.constant 3.200000e+01 : f32
    %310 = vector.broadcast %cst_140 : f32 to vector<8x1xf32>
    %311 = arith.divf %309, %310 : vector<8x1xf32>
    %312 = vector.broadcast %304 : vector<8x1xf32> to vector<8x32xf32>
    %313 = arith.subf %256, %312 : vector<8x32xf32>
    %cst_141 = arith.constant 9.99999997E-7 : f32
    %314 = vector.broadcast %cst_141 : f32 to vector<8x1xf32>
    %315 = arith.addf %311, %314 : vector<8x1xf32>
    %316 = math.rsqrt %315 : vector<8x1xf32>
    %317 = vector.broadcast %316 : vector<8x1xf32> to vector<8x32xf32>
    %318 = arith.mulf %313, %317 : vector<8x32xf32>
    %319 = vector.broadcast %299 : vector<1x32xf32> to vector<8x32xf32>
    %320 = arith.mulf %318, %319 : vector<8x32xf32>
    %321 = vector.broadcast %300 : vector<1x32xf32> to vector<8x32xf32>
    %322 = arith.addf %320, %321 : vector<8x32xf32>
    %c0_142 = arith.constant 0 : index
    %c0_143 = arith.constant 0 : index
    %323 = vector.load %arg19[%c0_142, %c0_143] : memref<32x64xf32, #tpu.memory_space<vmem>>, vector<32x64xf32>
    %cst_144 = arith.constant dense<0.000000e+00> : vector<8x64xf32>
    %324 = tpu.matmul %322, %323, %cst_144 {dimension_numbers = #tpu.dot_dimension_numbers<[1], [0], [0], [1], [0, 0, 1, 1], [], []>} : vector<8x32xf32>, vector<32x64xf32>, vector<8x64xf32> -> vector<8x64xf32>
    %c0_145 = arith.constant 0 : index
    %c0_146 = arith.constant 0 : index
    %325 = vector.load %arg20[%c0_145, %c0_146] : memref<1x64xf32, #tpu.memory_space<vmem>>, vector<1x64xf32>
    %326 = vector.broadcast %325 : vector<1x64xf32> to vector<8x64xf32>
    %327 = arith.addf %324, %326 : vector<8x64xf32>
    %cst_147 = arith.constant 5.000000e-01 : f32
    %328 = vector.broadcast %cst_147 : f32 to vector<8x64xf32>
    %329 = arith.mulf %328, %327 : vector<8x64xf32>
    %cst_148 = arith.constant 0.707106769 : f32
    %330 = vector.broadcast %cst_148 : f32 to vector<8x64xf32>
    %331 = arith.mulf %327, %330 : vector<8x64xf32>
    %332 = math.erf %331 : vector<8x64xf32>
    %cst_149 = arith.constant 1.000000e+00 : f32
    %333 = vector.broadcast %cst_149 : f32 to vector<8x64xf32>
    %334 = arith.addf %333, %332 : vector<8x64xf32>
    %335 = arith.mulf %329, %334 : vector<8x64xf32>
    %c0_150 = arith.constant 0 : index
    %c0_151 = arith.constant 0 : index
    %336 = vector.load %arg21[%c0_150, %c0_151] : memref<64x32xf32, #tpu.memory_space<vmem>>, vector<64x32xf32>
    %cst_152 = arith.constant dense<0.000000e+00> : vector<8x32xf32>
    %337 = tpu.matmul %335, %336, %cst_152 {dimension_numbers = #tpu.dot_dimension_numbers<[1], [0], [0], [1], [0, 0, 1, 1], [], []>} : vector<8x64xf32>, vector<64x32xf32>, vector<8x32xf32> -> vector<8x32xf32>
    %c0_153 = arith.constant 0 : index
    %c0_154 = arith.constant 0 : index
    %338 = vector.load %arg22[%c0_153, %c0_154] : memref<1x32xf32, #tpu.memory_space<vmem>>, vector<1x32xf32>
    %339 = vector.broadcast %338 : vector<1x32xf32> to vector<8x32xf32>
    %340 = arith.addf %337, %339 : vector<8x32xf32>
    %341 = arith.addf %256, %340 : vector<8x32xf32>
    %c0_155 = arith.constant 0 : index
    %c0_156 = arith.constant 0 : index
    %c0_157 = arith.constant 0 : index
    %342 = vector.load %arg30[%c0_155, %c0_156, %c0_157] : memref<1x8x32xf32, #tpu.memory_space<vmem>>, vector<1x8x32xf32>
    %343 = vector.shape_cast %342 : vector<1x8x32xf32> to vector<8x32xf32>
    %344 = vector.shape_cast %341 : vector<8x32xf32> to vector<1x8x32xf32>
    tpu.vector_store %arg30[%c0_155, %c0_156, %c0_157], %344 {strides = array<i32>} : memref<1x8x32xf32, #tpu.memory_space<vmem>>, vector<1x8x32xf32>,
    return
  }
  func.func @transform_0(%arg0: i32) -> (i32, i32, i32) {
    %c0_i32 = arith.constant 0 : i32
    %c0_i32_0 = arith.constant 0 : i32
    %c0_i32_1 = arith.constant 0 : i32
    return %arg0, %c0_i32, %c0_i32_0 : i32, i32, i32
  }
  func.func @transform_1(%arg0: i32) -> (i32, i32, i32) {
    %c0_i32 = arith.constant 0 : i32
    %c0_i32_0 = arith.constant 0 : i32
    %c0_i32_1 = arith.constant 0 : i32
    return %arg0, %c0_i32, %c0_i32_0 : i32, i32, i32
  }
  func.func @transform_2(%arg0: i32) -> (i32, i32) {
    %c0_i32 = arith.constant 0 : i32
    %c0_i32_0 = arith.constant 0 : i32
    %c0_i32_1 = arith.constant 0 : i32
    return %c0_i32, %c0_i32_0 : i32, i32
  }
  func.func @transform_3(%arg0: i32) -> (i32, i32) {
    %c0_i32 = arith.constant 0 : i32
    %c0_i32_0 = arith.constant 0 : i32
    %c0_i32_1 = arith.constant 0 : i32
    return %c0_i32, %c0_i32_0 : i32, i32
  }
  func.func @transform_4(%arg0: i32) -> (i32, i32) {
    %c0_i32 = arith.constant 0 : i32
    %c0_i32_0 = arith.constant 0 : i32
    %c0_i32_1 = arith.constant 0 : i32
    return %c0_i32, %c0_i32_0 : i32, i32
  }
  func.func @transform_5(%arg0: i32) -> (i32, i32) {
    %c0_i32 = arith.constant 0 : i32
    %c0_i32_0 = arith.constant 0 : i32
    %c0_i32_1 = arith.constant 0 : i32
    return %c0_i32, %c0_i32_0 : i32, i32
  }
  func.func @transform_6(%arg0: i32) -> (i32, i32) {
    %c0_i32 = arith.constant 0 : i32
    %c0_i32_0 = arith.constant 0 : i32
    %c0_i32_1 = arith.constant 0 : i32
    return %c0_i32, %c0_i32_0 : i32, i32
  }
  func.func @transform_7(%arg0: i32) -> (i32, i32) {
    %c0_i32 = arith.constant 0 : i32
    %c0_i32_0 = arith.constant 0 : i32
    %c0_i32_1 = arith.constant 0 : i32
    return %c0_i32, %c0_i32_0 : i32, i32
  }
  func.func @transform_8(%arg0: i32) -> (i32, i32) {
    %c0_i32 = arith.constant 0 : i32
    %c0_i32_0 = arith.constant 0 : i32
    %c0_i32_1 = arith.constant 0 : i32
    return %c0_i32, %c0_i32_0 : i32, i32
  }
  func.func @transform_9(%arg0: i32) -> (i32, i32) {
    %c0_i32 = arith.constant 0 : i32
    %c0_i32_0 = arith.constant 0 : i32
    %c0_i32_1 = arith.constant 0 : i32
    return %c0_i32, %c0_i32_0 : i32, i32
  }
  func.func @transform_10(%arg0: i32) -> (i32, i32) {
    %c0_i32 = arith.constant 0 : i32
    %c0_i32_0 = arith.constant 0 : i32
    %c0_i32_1 = arith.constant 0 : i32
    return %c0_i32, %c0_i32_0 : i32, i32
  }
  func.func @transform_11(%arg0: i32) -> (i32, i32) {
    %c0_i32 = arith.constant 0 : i32
    %c0_i32_0 = arith.constant 0 : i32
    %c0_i32_1 = arith.constant 0 : i32
    return %c0_i32, %c0_i32_0 : i32, i32
  }
  func.func @transform_12(%arg0: i32) -> (i32, i32) {
    %c0_i32 = arith.constant 0 : i32
    %c0_i32_0 = arith.constant 0 : i32
    %c0_i32_1 = arith.constant 0 : i32
    return %c0_i32, %c0_i32_0 : i32, i32
  }
  func.func @transform_13(%arg0: i32) -> (i32, i32) {
    %c0_i32 = arith.constant 0 : i32
    %c0_i32_0 = arith.constant 0 : i32
    %c0_i32_1 = arith.constant 0 : i32
    return %c0_i32, %c0_i32_0 : i32, i32
  }
  func.func @transform_14(%arg0: i32) -> (i32, i32) {
    %c0_i32 = arith.constant 0 : i32
    %c0_i32_0 = arith.constant 0 : i32
    %c0_i32_1 = arith.constant 0 : i32
    return %c0_i32, %c0_i32_0 : i32, i32
  }
  func.func @transform_15(%arg0: i32) -> (i32, i32) {
    %c0_i32 = arith.constant 0 : i32
    %c0_i32_0 = arith.constant 0 : i32
    %c0_i32_1 = arith.constant 0 : i32
    return %c0_i32, %c0_i32_0 : i32, i32
  }
  func.func @transform_16(%arg0: i32) -> (i32, i32) {
    %c0_i32 = arith.constant 0 : i32
    %c0_i32_0 = arith.constant 0 : i32
    %c0_i32_1 = arith.constant 0 : i32
    return %c0_i32, %c0_i32_0 : i32, i32
  }
  func.func @transform_17(%arg0: i32) -> (i32, i32) {
    %c0_i32 = arith.constant 0 : i32
    %c0_i32_0 = arith.constant 0 : i32
    %c0_i32_1 = arith.constant 0 : i32
    return %c0_i32, %c0_i32_0 : i32, i32
  }
  func.func @transform_18(%arg0: i32) -> (i32, i32) {
    %c0_i32 = arith.constant 0 : i32
    %c0_i32_0 = arith.constant 0 : i32
    %c0_i32_1 = arith.constant 0 : i32
    return %c0_i32, %c0_i32_0 : i32, i32
  }
  func.func @transform_19(%arg0: i32) -> (i32, i32) {
    %c0_i32 = arith.constant 0 : i32
    %c0_i32_0 = arith.constant 0 : i32
    %c0_i32_1 = arith.constant 0 : i32
    return %c0_i32, %c0_i32_0 : i32, i32
  }
  func.func @transform_20(%arg0: i32) -> (i32, i32) {
    %c0_i32 = arith.constant 0 : i32
    %c0_i32_0 = arith.constant 0 : i32
    %c0_i32_1 = arith.constant 0 : i32
    return %c0_i32, %c0_i32_0 : i32, i32
  }
  func.func @transform_21(%arg0: i32) -> (i32, i32) {
    %c0_i32 = arith.constant 0 : i32
    %c0_i32_0 = arith.constant 0 : i32
    %c0_i32_1 = arith.constant 0 : i32
    return %c0_i32, %c0_i32_0 : i32, i32
  }
  func.func @transform_22(%arg0: i32) -> (i32, i32) {
    %c0_i32 = arith.constant 0 : i32
    %c0_i32_0 = arith.constant 0 : i32
    %c0_i32_1 = arith.constant 0 : i32
    return %c0_i32, %c0_i32_0 : i32, i32
  }
  func.func @transform_23(%arg0: i32) -> (i32, i32) {
    %c0_i32 = arith.constant 0 : i32
    %c0_i32_0 = arith.constant 0 : i32
    %c0_i32_1 = arith.constant 0 : i32
    return %c0_i32, %c0_i32_0 : i32, i32
  }
  func.func @transform_24(%arg0: i32) -> (i32, i32) {
    %c0_i32 = arith.constant 0 : i32
    %c0_i32_0 = arith.constant 0 : i32
    %c0_i32_1 = arith.constant 0 : i32
    return %c0_i32, %c0_i32_0 : i32, i32
  }
  func.func @transform_25(%arg0: i32) -> (i32, i32) {
    %c0_i32 = arith.constant 0 : i32
    %c0_i32_0 = arith.constant 0 : i32
    %c0_i32_1 = arith.constant 0 : i32
    return %c0_i32, %c0_i32_0 : i32, i32
  }
  func.func @transform_26(%arg0: i32) -> (i32, i32) {
    %c0_i32 = arith.constant 0 : i32
    %c0_i32_0 = arith.constant 0 : i32
    %c0_i32_1 = arith.constant 0 : i32
    return %c0_i32, %c0_i32_0 : i32, i32
  }
  func.func @transform_27(%arg0: i32) -> (i32, i32) {
    %c0_i32 = arith.constant 0 : i32
    %c0_i32_0 = arith.constant 0 : i32
    %c0_i32_1 = arith.constant 0 : i32
    return %c0_i32, %c0_i32_0 : i32, i32
  }
  func.func @transform_28(%arg0: i32) -> (i32, i32, i32) {
    %c0_i32 = arith.constant 0 : i32
    %c0_i32_0 = arith.constant 0 : i32
    %c0_i32_1 = arith.constant 0 : i32
    return %arg0, %c0_i32, %c0_i32_0 : i32, i32, i32
  }
  func.func @transform_29(%arg0: i32) -> (i32, i32, i32) {
    %c0_i32 = arith.constant 0 : i32
    %c0_i32_0 = arith.constant 0 : i32
    %c0_i32_1 = arith.constant 0 : i32
    return %arg0, %c0_i32, %c0_i32_0 : i32, i32, i32
  }
}

module attributes {stable_mosaic.version = 11 : i64} {
  func.func @_head_kernel(%arg0: i32, %arg1: memref<2x32xf32, #tpu.memory_space<vmem>>, %arg2: memref<1x32xf32, #tpu.memory_space<vmem>>, %arg3: memref<1x32xf32, #tpu.memory_space<vmem>>, %arg4: memref<32x16xf32, #tpu.memory_space<vmem>>, %arg5: memref<1x16xf32, #tpu.memory_space<vmem>>, %arg6: memref<1x16xf32, #tpu.memory_space<vmem>>, %arg7: memref<1x16xf32, #tpu.memory_space<vmem>>, %arg8: memref<16x8xf32, #tpu.memory_space<vmem>>, %arg9: memref<1x8xf32, #tpu.memory_space<vmem>>, %arg10: memref<1x8xf32, #tpu.memory_space<vmem>>, %arg11: memref<1x8xf32, #tpu.memory_space<vmem>>, %arg12: memref<8x4xf32, #tpu.memory_space<vmem>>, %arg13: memref<1x4xf32, #tpu.memory_space<vmem>>, %arg14: memref<1x4xf32, #tpu.memory_space<vmem>>, %arg15: memref<1x4xf32, #tpu.memory_space<vmem>>, %arg16: memref<4x2xf32, #tpu.memory_space<vmem>>, %arg17: memref<1x2xf32, #tpu.memory_space<vmem>>, %arg18: memref<1x2xf32, #tpu.memory_space<vmem>>, %arg19: memref<1x2xf32, #tpu.memory_space<vmem>>, %arg20: memref<2x13xf32, #tpu.memory_space<vmem>>, %arg21: memref<1x13xf32, #tpu.memory_space<vmem>>, %arg22: memref<2x13xf32, #tpu.memory_space<vmem>>) attributes {dimension_semantics = [#tpu.dimension_semantics<arbitrary>], iteration_bounds = array<i64: 1>, scalar_prefetch = 0 : i64, scratch_operands = 0 : i64, tpu.core_type = #tpu.core_type<tc>, window_params = [{pipeline_mode = #tpu.pipeline_mode<synchronous>, transform_indices = @transform_0, window_bounds = array<i64: 2, 32>}, {pipeline_mode = #tpu.pipeline_mode<synchronous>, transform_indices = @transform_1, window_bounds = array<i64: 1, 32>}, {pipeline_mode = #tpu.pipeline_mode<synchronous>, transform_indices = @transform_2, window_bounds = array<i64: 1, 32>}, {pipeline_mode = #tpu.pipeline_mode<synchronous>, transform_indices = @transform_3, window_bounds = array<i64: 32, 16>}, {pipeline_mode = #tpu.pipeline_mode<synchronous>, transform_indices = @transform_4, window_bounds = array<i64: 1, 16>}, {pipeline_mode = #tpu.pipeline_mode<synchronous>, transform_indices = @transform_5, window_bounds = array<i64: 1, 16>}, {pipeline_mode = #tpu.pipeline_mode<synchronous>, transform_indices = @transform_6, window_bounds = array<i64: 1, 16>}, {pipeline_mode = #tpu.pipeline_mode<synchronous>, transform_indices = @transform_7, window_bounds = array<i64: 16, 8>}, {pipeline_mode = #tpu.pipeline_mode<synchronous>, transform_indices = @transform_8, window_bounds = array<i64: 1, 8>}, {pipeline_mode = #tpu.pipeline_mode<synchronous>, transform_indices = @transform_9, window_bounds = array<i64: 1, 8>}, {pipeline_mode = #tpu.pipeline_mode<synchronous>, transform_indices = @transform_10, window_bounds = array<i64: 1, 8>}, {pipeline_mode = #tpu.pipeline_mode<synchronous>, transform_indices = @transform_11, window_bounds = array<i64: 8, 4>}, {pipeline_mode = #tpu.pipeline_mode<synchronous>, transform_indices = @transform_12, window_bounds = array<i64: 1, 4>}, {pipeline_mode = #tpu.pipeline_mode<synchronous>, transform_indices = @transform_13, window_bounds = array<i64: 1, 4>}, {pipeline_mode = #tpu.pipeline_mode<synchronous>, transform_indices = @transform_14, window_bounds = array<i64: 1, 4>}, {pipeline_mode = #tpu.pipeline_mode<synchronous>, transform_indices = @transform_15, window_bounds = array<i64: 4, 2>}, {pipeline_mode = #tpu.pipeline_mode<synchronous>, transform_indices = @transform_16, window_bounds = array<i64: 1, 2>}, {pipeline_mode = #tpu.pipeline_mode<synchronous>, transform_indices = @transform_17, window_bounds = array<i64: 1, 2>}, {pipeline_mode = #tpu.pipeline_mode<synchronous>, transform_indices = @transform_18, window_bounds = array<i64: 1, 2>}, {pipeline_mode = #tpu.pipeline_mode<synchronous>, transform_indices = @transform_19, window_bounds = array<i64: 2, 13>}, {pipeline_mode = #tpu.pipeline_mode<synchronous>, transform_indices = @transform_20, window_bounds = array<i64: 1, 13>}, {pipeline_mode = #tpu.pipeline_mode<synchronous>, transform_indices = @transform_21, window_bounds = array<i64: 2, 13>}]} {
    %c0 = arith.constant 0 : index
    %c0_0 = arith.constant 0 : index
    %0 = vector.load %arg1[%c0, %c0_0] : memref<2x32xf32, #tpu.memory_space<vmem>>, vector<2x32xf32>
    %c0_1 = arith.constant 0 : index
    %c0_2 = arith.constant 0 : index
    %1 = vector.load %arg2[%c0_1, %c0_2] : memref<1x32xf32, #tpu.memory_space<vmem>>, vector<1x32xf32>
    %c0_3 = arith.constant 0 : index
    %c0_4 = arith.constant 0 : index
    %2 = vector.load %arg3[%c0_3, %c0_4] : memref<1x32xf32, #tpu.memory_space<vmem>>, vector<1x32xf32>
    %cst = arith.constant dense<0.000000e+00> : vector<2xf32>
    %3 = vector.multi_reduction <add>, %0, %cst [1] : vector<2x32xf32> to vector<2xf32>
    %4 = vector.shape_cast %3 : vector<2xf32> to vector<2x1xf32>
    %cst_5 = arith.constant 3.200000e+01 : f32
    %5 = vector.broadcast %cst_5 : f32 to vector<2x1xf32>
    %6 = arith.divf %4, %5 : vector<2x1xf32>
    %7 = vector.broadcast %6 : vector<2x1xf32> to vector<2x32xf32>
    %8 = arith.subf %0, %7 : vector<2x32xf32>
    %9 = arith.mulf %8, %8 : vector<2x32xf32>
    %cst_6 = arith.constant dense<0.000000e+00> : vector<2xf32>
    %10 = vector.multi_reduction <add>, %9, %cst_6 [1] : vector<2x32xf32> to vector<2xf32>
    %11 = vector.shape_cast %10 : vector<2xf32> to vector<2x1xf32>
    %cst_7 = arith.constant 3.200000e+01 : f32
    %12 = vector.broadcast %cst_7 : f32 to vector<2x1xf32>
    %13 = arith.divf %11, %12 : vector<2x1xf32>
    %14 = vector.broadcast %6 : vector<2x1xf32> to vector<2x32xf32>
    %15 = arith.subf %0, %14 : vector<2x32xf32>
    %cst_8 = arith.constant 9.99999997E-7 : f32
    %16 = vector.broadcast %cst_8 : f32 to vector<2x1xf32>
    %17 = arith.addf %13, %16 : vector<2x1xf32>
    %18 = math.rsqrt %17 : vector<2x1xf32>
    %19 = vector.broadcast %18 : vector<2x1xf32> to vector<2x32xf32>
    %20 = arith.mulf %15, %19 : vector<2x32xf32>
    %21 = vector.broadcast %1 : vector<1x32xf32> to vector<2x32xf32>
    %22 = arith.mulf %20, %21 : vector<2x32xf32>
    %23 = vector.broadcast %2 : vector<1x32xf32> to vector<2x32xf32>
    %24 = arith.addf %22, %23 : vector<2x32xf32>
    %c0_9 = arith.constant 0 : index
    %c0_10 = arith.constant 0 : index
    %25 = vector.load %arg4[%c0_9, %c0_10] : memref<32x16xf32, #tpu.memory_space<vmem>>, vector<32x16xf32>
    %cst_11 = arith.constant dense<0.000000e+00> : vector<2x16xf32>
    %26 = tpu.matmul %24, %25, %cst_11 {dimension_numbers = #tpu.dot_dimension_numbers<[1], [0], [0], [1], [0, 0, 1, 1], [], []>} : vector<2x32xf32>, vector<32x16xf32>, vector<2x16xf32> -> vector<2x16xf32>
    %c0_12 = arith.constant 0 : index
    %c0_13 = arith.constant 0 : index
    %27 = vector.load %arg5[%c0_12, %c0_13] : memref<1x16xf32, #tpu.memory_space<vmem>>, vector<1x16xf32>
    %28 = vector.broadcast %27 : vector<1x16xf32> to vector<2x16xf32>
    %29 = arith.addf %26, %28 : vector<2x16xf32>
    %c0_14 = arith.constant 0 : index
    %c0_15 = arith.constant 0 : index
    %30 = vector.load %arg6[%c0_14, %c0_15] : memref<1x16xf32, #tpu.memory_space<vmem>>, vector<1x16xf32>
    %31 = vector.broadcast %30 : vector<1x16xf32> to vector<2x16xf32>
    %32 = arith.mulf %29, %31 : vector<2x16xf32>
    %c0_16 = arith.constant 0 : index
    %c0_17 = arith.constant 0 : index
    %33 = vector.load %arg7[%c0_16, %c0_17] : memref<1x16xf32, #tpu.memory_space<vmem>>, vector<1x16xf32>
    %34 = vector.broadcast %33 : vector<1x16xf32> to vector<2x16xf32>
    %35 = arith.addf %32, %34 : vector<2x16xf32>
    %cst_18 = arith.constant 0.000000e+00 : f32
    %36 = vector.broadcast %cst_18 : f32 to vector<2x16xf32>
    %37 = arith.maximumf %35, %36 : vector<2x16xf32>
    %c0_19 = arith.constant 0 : index
    %c0_20 = arith.constant 0 : index
    %38 = vector.load %arg8[%c0_19, %c0_20] : memref<16x8xf32, #tpu.memory_space<vmem>>, vector<16x8xf32>
    %cst_21 = arith.constant dense<0.000000e+00> : vector<2x8xf32>
    %39 = tpu.matmul %37, %38, %cst_21 {dimension_numbers = #tpu.dot_dimension_numbers<[1], [0], [0], [1], [0, 0, 1, 1], [], []>} : vector<2x16xf32>, vector<16x8xf32>, vector<2x8xf32> -> vector<2x8xf32>
    %c0_22 = arith.constant 0 : index
    %c0_23 = arith.constant 0 : index
    %40 = vector.load %arg9[%c0_22, %c0_23] : memref<1x8xf32, #tpu.memory_space<vmem>>, vector<1x8xf32>
    %41 = vector.broadcast %40 : vector<1x8xf32> to vector<2x8xf32>
    %42 = arith.addf %39, %41 : vector<2x8xf32>
    %c0_24 = arith.constant 0 : index
    %c0_25 = arith.constant 0 : index
    %43 = vector.load %arg10[%c0_24, %c0_25] : memref<1x8xf32, #tpu.memory_space<vmem>>, vector<1x8xf32>
    %44 = vector.broadcast %43 : vector<1x8xf32> to vector<2x8xf32>
    %45 = arith.mulf %42, %44 : vector<2x8xf32>
    %c0_26 = arith.constant 0 : index
    %c0_27 = arith.constant 0 : index
    %46 = vector.load %arg11[%c0_26, %c0_27] : memref<1x8xf32, #tpu.memory_space<vmem>>, vector<1x8xf32>
    %47 = vector.broadcast %46 : vector<1x8xf32> to vector<2x8xf32>
    %48 = arith.addf %45, %47 : vector<2x8xf32>
    %cst_28 = arith.constant 0.000000e+00 : f32
    %49 = vector.broadcast %cst_28 : f32 to vector<2x8xf32>
    %50 = arith.maximumf %48, %49 : vector<2x8xf32>
    %c0_29 = arith.constant 0 : index
    %c0_30 = arith.constant 0 : index
    %51 = vector.load %arg12[%c0_29, %c0_30] : memref<8x4xf32, #tpu.memory_space<vmem>>, vector<8x4xf32>
    %cst_31 = arith.constant dense<0.000000e+00> : vector<2x4xf32>
    %52 = tpu.matmul %50, %51, %cst_31 {dimension_numbers = #tpu.dot_dimension_numbers<[1], [0], [0], [1], [0, 0, 1, 1], [], []>} : vector<2x8xf32>, vector<8x4xf32>, vector<2x4xf32> -> vector<2x4xf32>
    %c0_32 = arith.constant 0 : index
    %c0_33 = arith.constant 0 : index
    %53 = vector.load %arg13[%c0_32, %c0_33] : memref<1x4xf32, #tpu.memory_space<vmem>>, vector<1x4xf32>
    %54 = vector.broadcast %53 : vector<1x4xf32> to vector<2x4xf32>
    %55 = arith.addf %52, %54 : vector<2x4xf32>
    %c0_34 = arith.constant 0 : index
    %c0_35 = arith.constant 0 : index
    %56 = vector.load %arg14[%c0_34, %c0_35] : memref<1x4xf32, #tpu.memory_space<vmem>>, vector<1x4xf32>
    %57 = vector.broadcast %56 : vector<1x4xf32> to vector<2x4xf32>
    %58 = arith.mulf %55, %57 : vector<2x4xf32>
    %c0_36 = arith.constant 0 : index
    %c0_37 = arith.constant 0 : index
    %59 = vector.load %arg15[%c0_36, %c0_37] : memref<1x4xf32, #tpu.memory_space<vmem>>, vector<1x4xf32>
    %60 = vector.broadcast %59 : vector<1x4xf32> to vector<2x4xf32>
    %61 = arith.addf %58, %60 : vector<2x4xf32>
    %cst_38 = arith.constant 0.000000e+00 : f32
    %62 = vector.broadcast %cst_38 : f32 to vector<2x4xf32>
    %63 = arith.maximumf %61, %62 : vector<2x4xf32>
    %c0_39 = arith.constant 0 : index
    %c0_40 = arith.constant 0 : index
    %64 = vector.load %arg16[%c0_39, %c0_40] : memref<4x2xf32, #tpu.memory_space<vmem>>, vector<4x2xf32>
    %cst_41 = arith.constant dense<0.000000e+00> : vector<2x2xf32>
    %65 = tpu.matmul %63, %64, %cst_41 {dimension_numbers = #tpu.dot_dimension_numbers<[1], [0], [0], [1], [0, 0, 1, 1], [], []>} : vector<2x4xf32>, vector<4x2xf32>, vector<2x2xf32> -> vector<2x2xf32>
    %c0_42 = arith.constant 0 : index
    %c0_43 = arith.constant 0 : index
    %66 = vector.load %arg17[%c0_42, %c0_43] : memref<1x2xf32, #tpu.memory_space<vmem>>, vector<1x2xf32>
    %67 = vector.broadcast %66 : vector<1x2xf32> to vector<2x2xf32>
    %68 = arith.addf %65, %67 : vector<2x2xf32>
    %c0_44 = arith.constant 0 : index
    %c0_45 = arith.constant 0 : index
    %69 = vector.load %arg18[%c0_44, %c0_45] : memref<1x2xf32, #tpu.memory_space<vmem>>, vector<1x2xf32>
    %70 = vector.broadcast %69 : vector<1x2xf32> to vector<2x2xf32>
    %71 = arith.mulf %68, %70 : vector<2x2xf32>
    %c0_46 = arith.constant 0 : index
    %c0_47 = arith.constant 0 : index
    %72 = vector.load %arg19[%c0_46, %c0_47] : memref<1x2xf32, #tpu.memory_space<vmem>>, vector<1x2xf32>
    %73 = vector.broadcast %72 : vector<1x2xf32> to vector<2x2xf32>
    %74 = arith.addf %71, %73 : vector<2x2xf32>
    %cst_48 = arith.constant 0.000000e+00 : f32
    %75 = vector.broadcast %cst_48 : f32 to vector<2x2xf32>
    %76 = arith.maximumf %74, %75 : vector<2x2xf32>
    %c0_49 = arith.constant 0 : index
    %c0_50 = arith.constant 0 : index
    %77 = vector.load %arg20[%c0_49, %c0_50] : memref<2x13xf32, #tpu.memory_space<vmem>>, vector<2x13xf32>
    %cst_51 = arith.constant dense<0.000000e+00> : vector<2x13xf32>
    %78 = tpu.matmul %76, %77, %cst_51 {dimension_numbers = #tpu.dot_dimension_numbers<[1], [0], [0], [1], [0, 0, 1, 1], [], []>} : vector<2x2xf32>, vector<2x13xf32>, vector<2x13xf32> -> vector<2x13xf32>
    %c0_52 = arith.constant 0 : index
    %c0_53 = arith.constant 0 : index
    %79 = vector.load %arg21[%c0_52, %c0_53] : memref<1x13xf32, #tpu.memory_space<vmem>>, vector<1x13xf32>
    %80 = vector.broadcast %79 : vector<1x13xf32> to vector<2x13xf32>
    %81 = arith.addf %78, %80 : vector<2x13xf32>
    %c0_54 = arith.constant 0 : index
    %c0_55 = arith.constant 0 : index
    %82 = vector.load %arg22[%c0_54, %c0_55] : memref<2x13xf32, #tpu.memory_space<vmem>>, vector<2x13xf32>
    tpu.vector_store %arg22[%c0_54, %c0_55], %81 {strides = array<i32>} : memref<2x13xf32, #tpu.memory_space<vmem>>, vector<2x13xf32>,
    return
  }
  func.func @transform_0(%arg0: i32) -> (i32, i32) {
    %c0_i32 = arith.constant 0 : i32
    %c0_i32_0 = arith.constant 0 : i32
    %c0_i32_1 = arith.constant 0 : i32
    return %c0_i32, %c0_i32_0 : i32, i32
  }
  func.func @transform_1(%arg0: i32) -> (i32, i32) {
    %c0_i32 = arith.constant 0 : i32
    %c0_i32_0 = arith.constant 0 : i32
    %c0_i32_1 = arith.constant 0 : i32
    return %c0_i32, %c0_i32_0 : i32, i32
  }
  func.func @transform_2(%arg0: i32) -> (i32, i32) {
    %c0_i32 = arith.constant 0 : i32
    %c0_i32_0 = arith.constant 0 : i32
    %c0_i32_1 = arith.constant 0 : i32
    return %c0_i32, %c0_i32_0 : i32, i32
  }
  func.func @transform_3(%arg0: i32) -> (i32, i32) {
    %c0_i32 = arith.constant 0 : i32
    %c0_i32_0 = arith.constant 0 : i32
    %c0_i32_1 = arith.constant 0 : i32
    return %c0_i32, %c0_i32_0 : i32, i32
  }
  func.func @transform_4(%arg0: i32) -> (i32, i32) {
    %c0_i32 = arith.constant 0 : i32
    %c0_i32_0 = arith.constant 0 : i32
    %c0_i32_1 = arith.constant 0 : i32
    return %c0_i32, %c0_i32_0 : i32, i32
  }
  func.func @transform_5(%arg0: i32) -> (i32, i32) {
    %c0_i32 = arith.constant 0 : i32
    %c0_i32_0 = arith.constant 0 : i32
    %c0_i32_1 = arith.constant 0 : i32
    return %c0_i32, %c0_i32_0 : i32, i32
  }
  func.func @transform_6(%arg0: i32) -> (i32, i32) {
    %c0_i32 = arith.constant 0 : i32
    %c0_i32_0 = arith.constant 0 : i32
    %c0_i32_1 = arith.constant 0 : i32
    return %c0_i32, %c0_i32_0 : i32, i32
  }
  func.func @transform_7(%arg0: i32) -> (i32, i32) {
    %c0_i32 = arith.constant 0 : i32
    %c0_i32_0 = arith.constant 0 : i32
    %c0_i32_1 = arith.constant 0 : i32
    return %c0_i32, %c0_i32_0 : i32, i32
  }
  func.func @transform_8(%arg0: i32) -> (i32, i32) {
    %c0_i32 = arith.constant 0 : i32
    %c0_i32_0 = arith.constant 0 : i32
    %c0_i32_1 = arith.constant 0 : i32
    return %c0_i32, %c0_i32_0 : i32, i32
  }
  func.func @transform_9(%arg0: i32) -> (i32, i32) {
    %c0_i32 = arith.constant 0 : i32
    %c0_i32_0 = arith.constant 0 : i32
    %c0_i32_1 = arith.constant 0 : i32
    return %c0_i32, %c0_i32_0 : i32, i32
  }
  func.func @transform_10(%arg0: i32) -> (i32, i32) {
    %c0_i32 = arith.constant 0 : i32
    %c0_i32_0 = arith.constant 0 : i32
    %c0_i32_1 = arith.constant 0 : i32
    return %c0_i32, %c0_i32_0 : i32, i32
  }
  func.func @transform_11(%arg0: i32) -> (i32, i32) {
    %c0_i32 = arith.constant 0 : i32
    %c0_i32_0 = arith.constant 0 : i32
    %c0_i32_1 = arith.constant 0 : i32
    return %c0_i32, %c0_i32_0 : i32, i32
  }
  func.func @transform_12(%arg0: i32) -> (i32, i32) {
    %c0_i32 = arith.constant 0 : i32
    %c0_i32_0 = arith.constant 0 : i32
    %c0_i32_1 = arith.constant 0 : i32
    return %c0_i32, %c0_i32_0 : i32, i32
  }
  func.func @transform_13(%arg0: i32) -> (i32, i32) {
    %c0_i32 = arith.constant 0 : i32
    %c0_i32_0 = arith.constant 0 : i32
    %c0_i32_1 = arith.constant 0 : i32
    return %c0_i32, %c0_i32_0 : i32, i32
  }
  func.func @transform_14(%arg0: i32) -> (i32, i32) {
    %c0_i32 = arith.constant 0 : i32
    %c0_i32_0 = arith.constant 0 : i32
    %c0_i32_1 = arith.constant 0 : i32
    return %c0_i32, %c0_i32_0 : i32, i32
  }
  func.func @transform_15(%arg0: i32) -> (i32, i32) {
    %c0_i32 = arith.constant 0 : i32
    %c0_i32_0 = arith.constant 0 : i32
    %c0_i32_1 = arith.constant 0 : i32
    return %c0_i32, %c0_i32_0 : i32, i32
  }
  func.func @transform_16(%arg0: i32) -> (i32, i32) {
    %c0_i32 = arith.constant 0 : i32
    %c0_i32_0 = arith.constant 0 : i32
    %c0_i32_1 = arith.constant 0 : i32
    return %c0_i32, %c0_i32_0 : i32, i32
  }
  func.func @transform_17(%arg0: i32) -> (i32, i32) {
    %c0_i32 = arith.constant 0 : i32
    %c0_i32_0 = arith.constant 0 : i32
    %c0_i32_1 = arith.constant 0 : i32
    return %c0_i32, %c0_i32_0 : i32, i32
  }
  func.func @transform_18(%arg0: i32) -> (i32, i32) {
    %c0_i32 = arith.constant 0 : i32
    %c0_i32_0 = arith.constant 0 : i32
    %c0_i32_1 = arith.constant 0 : i32
    return %c0_i32, %c0_i32_0 : i32, i32
  }
  func.func @transform_19(%arg0: i32) -> (i32, i32) {
    %c0_i32 = arith.constant 0 : i32
    %c0_i32_0 = arith.constant 0 : i32
    %c0_i32_1 = arith.constant 0 : i32
    return %c0_i32, %c0_i32_0 : i32, i32
  }
  func.func @transform_20(%arg0: i32) -> (i32, i32) {
    %c0_i32 = arith.constant 0 : i32
    %c0_i32_0 = arith.constant 0 : i32
    %c0_i32_1 = arith.constant 0 : i32
    return %c0_i32, %c0_i32_0 : i32, i32
  }
  func.func @transform_21(%arg0: i32) -> (i32, i32) {
    %c0_i32 = arith.constant 0 : i32
    %c0_i32_0 = arith.constant 0 : i32
    %c0_i32_1 = arith.constant 0 : i32
    return %c0_i32, %c0_i32_0 : i32, i32
  }
}

</mosaic_0001>

<bundles_post_ra>
// kernel: eden_forward.4
= control target key start
LH: loop header
LB: loop body
LE: loop exit
PB: predicated region body
PF: predicated region fallthrough
CT: control target
= control target key end

     0   :  { %v197_v0 = vmov 0.0   ;;  %vm52_vm0 = vcmask 523264   ;;  %vm138_vm1 = vcmask 261120   ;;  %s370_s1 = inlined_call_operand.vmem [shape: f32[192,32], index: 1, kind: input, shape index: {}]   ;;  %s371_s0 = inlined_call_operand.vmem [shape: f32[16,192], index: 0, kind: input, shape index: {}]   ;;  %s372_s2 = inlined_call_operand.vmem [shape: f32[1,32], index: 2, kind: input, shape index: {}]   ;;  %s373_s3 = inlined_call_operand.vmem [shape: f32[16,32], index: 3, kind: input, shape index: {}]   ;;  %s374_s4 = inlined_call_operand.vmem [shape: f32[16,32], index: 4, kind: output, shape index: {}]  }
   0x1   :  { %59 = vmatprep.subr.mxu0 %v197_v0  ;;  %148 = vmatprep.subr.mxu1 %v197_v0  ;;  %v36_v1 = vld [vmem:[%s370_s1 + $0x78] sm:$0xff]  ;;  %v35_v2 = vld [vmem:[%s370_s1 + $0x70] sm:$0xff]  ;;  %v34_v3 = vld [vmem:[%s370_s1 + $0x68] sm:$0xff] }
   0x2   :  { %60 = vmatpush1.msra.mxu0 %v36_v1  ;;  %172 = vmatpush1.msra.mxu1 %v36_v1  ;;  %v33_v4 = vld [vmem:[%s370_s1 + $0x60] sm:$0xff]  ;;  %v32_v5 = vld [vmem:[%s370_s1 + $0x58] sm:$0xff]  ;;  %v31_v6 = vld [vmem:[%s370_s1 + $0x50] sm:$0xff] }
   0x3   :  { %61 = vmatprep.subr.mxu0 %v197_v0  ;;  %149 = vmatprep.subr.mxu1 %v197_v0  ;;  %v30_v7 = vld [vmem:[%s370_s1 + $0x48] sm:$0xff]  ;;  %v29_v8 = vld [vmem:[%s370_s1 + $0x40] sm:$0xff]  ;;  %v28_v9 = vld [vmem:[%s370_s1 + $0x38] sm:$0xff] }
   0x4   :  { %62 = vmatpush1.msra.mxu0 %v35_v2  ;;  %173 = vmatpush1.msra.mxu1 %v35_v2  ;;  %v27_v10 = vld [vmem:[%s370_s1 + $0x30] sm:$0xff]  ;;  %v26_v11 = vld [vmem:[%s370_s1 + $0x28] sm:$0xff]  ;;  %v25_v12 = vld [vmem:[%s370_s1 + $0x20] sm:$0xff] }
   0x5   :  { %63 = vmatprep.subr.mxu0 %v197_v0  ;;  %150 = vmatprep.subr.mxu1 %v197_v0  ;;  %v24_v13 = vld [vmem:[%s370_s1 + $0x18] sm:$0xff]  ;;  %v23_v14 = vld [vmem:[%s370_s1 + $0x10] sm:$0xff]  ;;  %v22_v15 = vld [vmem:[%s370_s1 + $0x8] sm:$0xff] }
   0x6   :  { %64 = vmatpush1.msra.mxu0 %v34_v3  ;;  %174 = vmatpush1.msra.mxu1 %v34_v3  ;;  %v21_v16 = vld [vmem:[%s370_s1] sm:$0xff]  ;;  %v44_v17 = vld [vmem:[%s370_s1 + $0xb8] sm:$0xff]  ;;  %v43_v18 = vld [vmem:[%s370_s1 + $0xb0] sm:$0xff] }
   0x7   :  { %65 = vmatprep.subr.mxu0 %v197_v0  ;;  %151 = vmatprep.subr.mxu1 %v197_v0  ;;  %v42_v19 = vld [vmem:[%s370_s1 + $0xa8] sm:$0xff]  ;;  %v41_v20 = vld [vmem:[%s370_s1 + $0xa0] sm:$0xff]  ;;  %v40_v21 = vld [vmem:[%s370_s1 + $0x98] sm:$0xff] }
   0x8   :  { %66 = vmatpush1.msra.mxu0 %v33_v4  ;;  %175 = vmatpush1.msra.mxu1 %v33_v4  ;;  %v39_v22 = vld [vmem:[%s370_s1 + $0x90] sm:$0xff]  ;;  %v38_v23 = vld [vmem:[%s370_s1 + $0x88] sm:$0xff]  ;;  %v37_v24 = vld [vmem:[%s370_s1 + $0x80] sm:$0xff] }
   0x9   :  { %67 = vmatprep.subr.mxu0 %v197_v0  ;;  %152 = vmatprep.subr.mxu1 %v197_v0  ;;  %v18_v25 = vld [vmem:[%s371_s0 + $0x8] sm:$0xff]  ;;  %v20_v26 = vld [vmem:[%s371_s0 + $0x18] sm:$0xff]  ;;  %v17_v27 = vld [vmem:[%s371_s0] sm:$0xff] }
   0xa   :  { %68 = vmatpush1.msra.mxu0 %v32_v5  ;;  %176 = vmatpush1.msra.mxu1 %v32_v5  ;;  %v19_v28 = vld [vmem:[%s371_s0 + $0x10] sm:$0xff]  ;;  %v145_v29 = vld [vmem:[%s372_s2] ss:$0 sm:$0xff]  ;;  %v135_v33 = vld [vmem:[%s373_s3 + $0x8] sm:$0xff] }
   0xb   :  { %69 = vmatprep.subr.mxu0 %v197_v0  ;;  %153 = vmatprep.subr.mxu1 %v197_v0  ;;  %v134_v31 = vld [vmem:[%s373_s3] sm:$0xff] }
   0xc   :  { %70 = vmatpush1.msra.mxu0 %v31_v6  ;;  %177 = vmatpush1.msra.mxu1 %v31_v6 }
   0xd   :  { %71 = vmatprep.subr.mxu0 %v197_v0  ;;  %154 = vmatprep.subr.mxu1 %v197_v0 }
   0xe   :  { %72 = vmatpush1.msra.mxu0 %v30_v7  ;;  %178 = vmatpush1.msra.mxu1 %v30_v7 }
   0xf   :  { %73 = vmatprep.subr.mxu0 %v197_v0  ;;  %155 = vmatprep.subr.mxu1 %v197_v0 }
  0x10   :  { %74 = vmatpush1.msra.mxu0 %v29_v8  ;;  %179 = vmatpush1.msra.mxu1 %v29_v8 }
  0x11   :  { %75 = vmatprep.subr.mxu0 %v197_v0  ;;  %156 = vmatprep.subr.mxu1 %v197_v0 }
  0x12   :  { %76 = vmatpush1.msra.mxu0 %v28_v9  ;;  %180 = vmatpush1.msra.mxu1 %v28_v9 }
  0x13   :  { %77 = vmatprep.subr.mxu0 %v197_v0  ;;  %157 = vmatprep.subr.mxu1 %v197_v0 }
  0x14   :  { %78 = vmatpush1.msra.mxu0 %v27_v10  ;;  %181 = vmatpush1.msra.mxu1 %v27_v10 }
  0x15   :  { %79 = vmatprep.subr.mxu0 %v197_v0  ;;  %158 = vmatprep.subr.mxu1 %v197_v0 }
  0x16   :  { %80 = vmatpush1.msra.mxu0 %v26_v11  ;;  %182 = vmatpush1.msra.mxu1 %v26_v11 }
  0x17   :  { %81 = vmatprep.subr.mxu0 %v197_v0  ;;  %159 = vmatprep.subr.mxu1 %v197_v0 }
  0x18   :  { %82 = vmatpush1.msra.mxu0 %v25_v12  ;;  %183 = vmatpush1.msra.mxu1 %v25_v12 }
  0x19   :  { %83 = vmatprep.subr.mxu0 %v197_v0  ;;  %160 = vmatprep.subr.mxu1 %v197_v0 }
  0x1a   :  { %84 = vmatpush1.msra.mxu0 %v24_v13  ;;  %184 = vmatpush1.msra.mxu1 %v24_v13 }
  0x1b   :  { %85 = vmatprep.subr.mxu0 %v197_v0  ;;  %161 = vmatprep.subr.mxu1 %v197_v0 }
  0x1c   :  { %86 = vmatpush1.msra.mxu0 %v23_v14  ;;  %185 = vmatpush1.msra.mxu1 %v23_v14 }
  0x1d   :  { %87 = vmatprep.subr.mxu0 %v197_v0  ;;  %162 = vmatprep.subr.mxu1 %v197_v0 }
  0x1e   :  { %88 = vmatpush1.msra.mxu0 %v22_v15  ;;  %186 = vmatpush1.msra.mxu1 %v22_v15 }
  0x1f   :  { %89 = vmatprep.subr.mxu0 %v197_v0  ;;  %163 = vmatprep.subr.mxu1 %v197_v0 }
  0x20   :  { %90 = vmatpush1.msra.mxu0 %v21_v16  ;;  %187 = vmatpush1.msra.mxu1 %v21_v16 }
  0x21   :  { %107 = vmatprep.subr.mxu0 %v197_v0  ;;  %164 = vmatprep.subr.mxu1 %v197_v0 }
  0x22   :  { %108 = vmatpush2.msra.mxu0 %v44_v17  ;;  %188 = vmatpush2.msra.mxu1 %v44_v17 }
  0x23   :  { %109 = vmatprep.subr.mxu0 %v197_v0  ;;  %165 = vmatprep.subr.mxu1 %v197_v0 }
  0x24   :  { %110 = vmatpush2.msra.mxu0 %v43_v18  ;;  %189 = vmatpush2.msra.mxu1 %v43_v18 }
  0x25   :  { %111 = vmatprep.subr.mxu0 %v197_v0  ;;  %166 = vmatprep.subr.mxu1 %v197_v0 }
  0x26   :  { %112 = vmatpush2.msra.mxu0 %v42_v19  ;;  %190 = vmatpush2.msra.mxu1 %v42_v19 }
  0x27   :  { %113 = vmatprep.subr.mxu0 %v197_v0  ;;  %167 = vmatprep.subr.mxu1 %v197_v0 }
  0x28   :  { %114 = vmatpush2.msra.mxu0 %v41_v20  ;;  %191 = vmatpush2.msra.mxu1 %v41_v20 }
  0x29   :  { %115 = vmatprep.subr.mxu0 %v197_v0  ;;  %168 = vmatprep.subr.mxu1 %v197_v0 }
  0x2a   :  { %116 = vmatpush2.msra.mxu0 %v40_v21  ;;  %192 = vmatpush2.msra.mxu1 %v40_v21 }
  0x2b   :  { %117 = vmatprep.subr.mxu0 %v197_v0  ;;  %169 = vmatprep.subr.mxu1 %v197_v0 }
  0x2c   :  { %118 = vmatpush2.msra.mxu0 %v39_v22  ;;  %193 = vmatpush2.msra.mxu1 %v39_v22 }
  0x2d   :  { %119 = vmatprep.subr.mxu0 %v197_v0  ;;  %170 = vmatprep.subr.mxu1 %v197_v0 }
  0x2e   :  { %120 = vmatpush2.msra.mxu0 %v38_v23  ;;  %194 = vmatpush2.msra.mxu1 %v38_v23 }
  0x2f   :  { %121 = vmatprep.subr.mxu0 %v197_v0  ;;  %171 = vmatprep.subr.mxu1 %v197_v0 }
  0x30   :  { %122 = vmatpush2.msra.mxu0 %v37_v24  ;;  %195 = vmatpush2.msra.mxu1 %v37_v24 }
  0x31   :  { %146 = vmatprep.mubr.msk.f32.mxu0 %vm52_vm0, %v18_v25  ;;  %147 = vmatprep.mubr.msk.f32.mxu1 %vm52_vm0, %v20_v26 }
  0x32   :  { %124 = vmatmul.mubr.f32.vlgmr.msra.gmra.mxu0 %v17_v27  ;;  %129 = vmatmul.mubr.f32.vlgmr.msra.gmra.mxu1 %v19_v28 }
  0xf2   :  { %v125_v30 = vpop.f32.mrf.mxu0  ;;  %v130_v32 = vpop.f32.mrf.mxu1 }
  0xf3   :  { %v126_v34 = vadd.f32 %v145_v29, %v125_v30  ;;  %v131_v35 = vadd.f32 %v145_v29, %v130_v32 }
  0xf4   :  { %v127_v36 = vpop.f32.mrf.mxu0  ;;  %v132_v37 = vpop.f32.mrf.mxu1 }
  0xf5   :  { %v136_v38 = vadd.f32 %v134_v31, %v126_v34  ;;  %v137_v39 = vadd.f32 %v135_v33, %v131_v35 }
  0xf7   :  { %139 = vst.msk [vmem:[%s374_s4] sm:$0xff] %vm138_vm1, %v136_v38  ;;  %140 = vst.msk [vmem:[%s374_s4 + $0x8] sm:$0xff] %vm138_vm1, %v137_v39 }

// kernel: eden_forward.7
= control target key start
LH: loop header
LB: loop body
LE: loop exit
PB: predicated region body
PF: predicated region fallthrough
CT: control target
= control target key end

     0   :  { %s899_s0 = inlined_call_operand.vmem [shape: f32[2,32], index: 0, kind: input, shape index: {}]   ;;  %s900_s1 = inlined_call_operand.vmem [shape: f32[1,32], index: 1, kind: input, shape index: {}]   ;;  %s901_s2 = inlined_call_operand.vmem [shape: f32[1,32], index: 2, kind: input, shape index: {}]   ;;  %s902_s3 = inlined_call_operand.vmem [shape: f32[32,16], index: 3, kind: input, shape index: {}]   ;;  %s903_s4 = inlined_call_operand.vmem [shape: f32[1,16], index: 4, kind: input, shape index: {}]   ;;  %s904_s5 = inlined_call_operand.vmem [shape: f32[1,16], index: 5, kind: input, shape index: {}]   ;;  %s905_s6 = inlined_call_operand.vmem [shape: f32[1,16], index: 6, kind: input, shape index: {}]   ;;  %s906_s7 = inlined_call_operand.vmem [shape: f32[16,8], index: 7, kind: input, shape index: {}]   ;;  %s907_s8 = inlined_call_operand.vmem [shape: f32[1,8], index: 8, kind: input, shape index: {}]   ;;  %s908_s9 = inlined_call_operand.vmem [shape: f32[1,8], index: 9, kind: input, shape index: {}]   ;;  %s909_s10 = inlined_call_operand.vmem [shape: f32[1,8], index: 10, kind: input, shape index: {}]   ;;  %s910_s11 = inlined_call_operand.vmem [shape: f32[8,4], index: 11, kind: input, shape index: {}]   ;;  %s911_s12 = inlined_call_operand.vmem [shape: f32[1,4], index: 12, kind: input, shape index: {}]   ;;  %s912_s13 = inlined_call_operand.vmem [shape: f32[1,4], index: 13, kind: input, shape index: {}]   ;;  %s913_s14 = inlined_call_operand.vmem [shape: f32[1,4], index: 14, kind: input, shape index: {}]   ;;  %s914_s15 = inlined_call_operand.vmem [shape: f32[4,2], index: 15, kind: input, shape index: {}]   ;;  %s915_s16 = inlined_call_operand.vmem [shape: f32[1,2], index: 16, kind: input, shape index: {}]   ;;  %s916_s17 = inlined_call_operand.vmem [shape: f32[1,2], index: 17, kind: input, shape index: {}]   ;;  %s917_s18 = inlined_call_operand.vmem [shape: f32[1,2], index: 18, kind: input, shape index: {}]   ;;  %s918_s19 = inlined_call_operand.vmem [shape: f32[2,13], index: 19, kind: input, shape index: {}]   ;;  %s919_s20 = inlined_call_operand.vmem [shape: f32[1,13], index: 20, kind: input, shape index: {}]   ;;  %s920_s21 = inlined_call_operand.hbm [shape: f32[2,13], index: 21, kind: output, shape index: {}]  }
   0x1   :  { %922 = sst [smem:[#allocation5_spill]] %s899_s0 }
   0x2   :  { %923 = sst [smem:[#allocation6_spill]] %s900_s1 }
   0x3   :  { %924 = sst [smem:[#allocation7_spill]] %s901_s2 }
   0x4   :  { %925 = sst [smem:[#allocation8_spill]] %s902_s3 }
   0x5   :  { %926 = sst [smem:[#allocation9_spill]] %s903_s4 }
   0x6   :  { %927 = sst [smem:[#allocation10_spill]] %s904_s5 }
   0x7   :  { %s928_s26 = sld [smem:[#allocation5_spill]]  ;;  %vm72_vm0 = vcmask 254976  }
   0xd   :  { %v69_v0 = vld [vmem:[%s928_s26] sm:$0x3] }
   0xe   :  { %26 = vsyncpa [#allocation3], 0  ;;  %v73_v1 = vsel %vm72_vm0, %v69_v0, 0.0  ;;  %s929_s28 = sld [smem:[#allocation8_spill]]  ;;  %v703_v8 = vmov 0.0   ;;  %vm704_vm1 = vmmov 0  }
   0xf   :  { %74 = vadd.xlane.f32.xlu0 %v73_v1  ;;  %643 = vmatprep.subr.mxu0 %v703_v8  ;;  %s930_s24 = sld [smem:[#allocation6_spill]]  ;;  %vm112_vm2 = vcmask 261120   ;;  %v204_v21 = vld [vmem:[%s906_s7 + $0x8] sm:$0xff]  ;;  %v203_v22 = vld [vmem:[%s906_s7] sm:$0xff]  ;;  %vm212_vm3 = vcmask 130048   ;;  %vm311_vm4 = vcmask 64512  }
  0x10   :  { %651 = vmatprep.mubr.msk.f32.mxu0 %vm704_vm1, %v703_v8  ;;  %654 = vmatprep.subr.mxu1 %v703_v8  ;;  %s931_s26 = sld [smem:[#allocation7_spill]]  ;;  %v612_v27 = vld [vmem:[%s905_s6] ss:$0 sm:$0xff]  ;;  %vm414_vm5 = vcmask 1043456   ;;  %vm410_vm6 = vcmask 31744   ;;  %vm517_vm7 = vcmask 1041408  }
  0x11   :  { %658 = vmatprep.mubr.msk.f32.mxu1 %vm704_vm1, %v703_v8  ;;  %655 = vmatpush3.msra.mxu1 %v204_v21  ;;  %s932_s30 = sld [smem:[#allocation9_spill]]  ;;  %v303_v32 = vld [vmem:[%s910_s11] sm:$0xff]  ;;  %vm513_vm8 = vcmask 15360   ;;  %vm591_vm9 = vcmask 99328  }
  0x12   :  { %656 = vmatprep.subr.mxu1 %v703_v8  ;;  %s933_s23 = sld [smem:[#allocation10_spill]]  ;;  %v613_v33 = vld [vmem:[%s907_s8] ss:$0 sm:$0xff] }
  0x13   :  { %657 = vmatpush3.msra.mxu1 %v203_v22  ;;  %v615_v35 = vld [vmem:[%s908_s9] ss:$0 sm:$0xff] }
  0x14   :  { %v104_v7 = vld [vmem:[%s929_s28 + $0x18] sm:$0xff]  ;;  %v103_v9 = vld [vmem:[%s929_s28 + $0x10] sm:$0xff]  ;;  %v102_v10 = vld [vmem:[%s929_s28 + $0x8] sm:$0xff]  ;;  %661 = vmatprep.subr.mxu1 %v703_v8 }
  0x15   :  { %644 = vmatpush3.msra.mxu0 %v104_v7  ;;  %v101_v11 = vld [vmem:[%s929_s28] sm:$0xff] }
  0x16   :  { %645 = vmatprep.subr.mxu0 %v703_v8  ;;  %v607_v16 = vld [vmem:[%s930_s24] ss:$0 sm:$0xff] }
  0x17   :  { %646 = vmatpush3.msra.mxu0 %v103_v9  ;;  %v608_v18 = vld [vmem:[%s931_s26] ss:$0 sm:$0xff] }
  0x18   :  { %647 = vmatprep.subr.mxu0 %v703_v8  ;;  %v609_v23 = vld [vmem:[%s932_s30] ss:$0 sm:$0xff] }
  0x19   :  { %648 = vmatpush3.msra.mxu0 %v102_v10  ;;  %v611_v25 = vld [vmem:[%s933_s23] ss:$0 sm:$0xff] }
  0x1a   :  { %649 = vmatprep.subr.mxu0 %v703_v8  ;;  %v616_v37 = vld [vmem:[%s909_s10] ss:$0 sm:$0xff] }
  0x1b   :  { %650 = vmatpush3.msra.mxu0 %v101_v11  ;;  %v402_v42 = vld [vmem:[%s914_s15] sm:$0xf] }
  0x1c   :  { %666 = vmatprep.subr.mxu0 %v703_v8  ;;  %v617_v43 = vld [vmem:[%s911_s12] ss:$0 sm:$0xff] }
  0x1d   :  { %v619_v45 = vld [vmem:[%s912_s13] ss:$0 sm:$0xff] }
  0x1e   :  { %v620_v47 = vld [vmem:[%s913_s14] ss:$0 sm:$0xff] }
  0x1f   :  { %v505_v52 = vld [vmem:[%s918_s19] sm:$0x3] }
  0x20   :  { %v621_v53 = vld [vmem:[%s915_s16] ss:$0 sm:$0xff]  ;;  %s705_s16 = smov [#allocation2]  }
  0x21   :  { %v624_v55 = vld [vmem:[%s916_s17] ss:$0 sm:$0xff]  ;;  %s599_s7 = sshll.u32 %s705_s16, 4  ;;  %s600_s7 = int_to_ptr.vmem [resolvable:$true] %s599_s7 }
  0x22   :  { %v625_v57 = vld [vmem:[%s917_s18] ss:$0 sm:$0xff]  ;;  %s681_s17 = scalar_lea.vmem %s600_s7, 32  ;;  %p686_p1 = scmp.lt.s32.totalorder %s600_s7, %s600_s7 }
  0x23   :  { %v626_v62 = vld [vmem:[%s919_s20] ss:$0 sm:$0xff]  ;;  %p682_p0 = scmp.ne.s32.totalorder %s600_s7, %s681_s17  ;;  %p687_p2 = scmp.lt.s32.totalorder %s681_s17, %s681_s17 }
  0x25   :  { %p688_p3 = por %p687_p2, %p686_p1 }
  0x27   :  { %p689_p4 = pnand %p688_p3, %p682_p0 }
  0x98   :  { %v75_v2 = vpop.xlane.xlu0 %74 }
  0x99   :  { %v77_v3 = vmul.f32 0.03125, %v75_v2 }
  0x9b   :  { %v78_v4 = vsub.f32 %v69_v0, %v77_v3 }
  0x9d   :  { %v79_v5 = vmul.f32 %v78_v4, %v78_v4 }
  0x9f   :  { %v80_v6 = vsel %vm72_vm0, %v79_v5, 0.0 }
  0xa0   :  { %81 = vadd.xlane.f32.xlu0 %v80_v6 }
 0x129   :  { %v82_v12 = vpop.xlane.xlu0 %81 }
 0x12a   :  { %v83_v13 = vmul.f32 0.03125, %v82_v12 }
 0x12c   :  { %v84_v14 = vadd.f32 1e-06, %v83_v13 }
 0x12e   :  { %679 = vrsqrt.f32 %v84_v14 }
 0x13b   :  { %v680_v15 = vpop.eup %679 }
 0x13c   :  { %v86_v17 = vmul.f32 %v680_v15, %v78_v4 }
 0x13e   :  { %v93_v19 = vmul.f32 %v607_v16, %v86_v17 }
 0x140   :  { %v100_v20 = vadd.f32 %v608_v18, %v93_v19 }
 0x142   :  { %652 = vmatmul.mubr.msk.f32.vlgmr.msra.gmra.mxu0 %vm112_vm2, %v100_v20 }
 0x143   :  { %668 = vmatprep.mubr.msk.f32.mxu0 %vm704_vm1, %v703_v8  ;;  %667 = vmatpush3.msk.msra.mxu0 %vm414_vm5, %v402_v42 }
 0x202   :  { %v182_v24 = vpop.f32.mrf.mxu0 }
 0x203   :  { %v183_v26 = vadd.f32 %v609_v23, %v182_v24 }
 0x204   :  { %v653_v28 = vpop.f32.mrf.mxu0 }
 0x205   :  { %v193_v29 = vmul.f32 %v611_v25, %v183_v26 }
 0x207   :  { %v201_v30 = vadd.f32 %v612_v27, %v193_v29 }
 0x209   :  { %v202_v31 = vmax.f32 %v201_v30, 0.0 }
 0x20b   :  { %659 = vmatmul.mubr.msk.f32.vlgmr.msra.gmra.mxu1 %vm212_vm3, %v202_v31 }
 0x20c   :  { %663 = vmatprep.mubr.msk.f32.mxu1 %vm704_vm1, %v703_v8  ;;  %662 = vmatpush3.msra.mxu1 %v303_v32 }
 0x20d   :  { %671 = vmatprep.subr.mxu1 %v703_v8 }
 0x2cb   :  { %v282_v34 = vpop.f32.mrf.mxu1 }
 0x2cc   :  { %v283_v36 = vadd.f32 %v613_v33, %v282_v34 }
 0x2cd   :  { %v660_v38 = vpop.f32.mrf.mxu1 }
 0x2ce   :  { %v293_v39 = vmul.f32 %v615_v35, %v283_v36 }
 0x2d0   :  { %v301_v40 = vadd.f32 %v616_v37, %v293_v39 }
 0x2d2   :  { %v302_v41 = vmax.f32 %v301_v40, 0.0 }
 0x2d4   :  { %664 = vmatmul.mubr.msk.f32.vlgmr.msra.gmra.mxu1 %vm311_vm4, %v302_v41 }
 0x2d5   :  { %673 = vmatprep.mubr.msk.f32.mxu1 %vm704_vm1, %v703_v8  ;;  %672 = vmatpush3.msk.msra.mxu1 %vm517_vm7, %v505_v52 }
 0x394   :  { %v381_v44 = vpop.f32.mrf.mxu1 }
 0x395   :  { %v382_v46 = vadd.f32 %v617_v43, %v381_v44 }
 0x396   :  { %v665_v48 = vpop.f32.mrf.mxu1 }
 0x397   :  { %v392_v49 = vmul.f32 %v619_v45, %v382_v46 }
 0x399   :  { %v400_v50 = vadd.f32 %v620_v47, %v392_v49 }
 0x39b   :  { %v401_v51 = vmax.f32 %v400_v50, 0.0 }
 0x39d   :  { %669 = vmatmul.mubr.msk.f32.vlgmr.msra.gmra.mxu0 %vm410_vm6, %v401_v51 }
 0x45d   :  { %v484_v54 = vpop.f32.mrf.mxu0 }
 0x45e   :  { %v485_v56 = vadd.f32 %v621_v53, %v484_v54 }
 0x45f   :  { %v670_v58 = vpop.f32.mrf.mxu0 }
 0x460   :  { %v495_v59 = vmul.f32 %v624_v55, %v485_v56 }
 0x462   :  { %v503_v60 = vadd.f32 %v625_v57, %v495_v59 }
 0x464   :  { %v504_v61 = vmax.f32 %v503_v60, 0.0 }
 0x466   :  { %674 = vmatmul.mubr.msk.f32.vlgmr.msra.gmra.mxu1 %vm513_vm8, %v504_v61 }
 0x526   :  { %v587_v63 = vpop.f32.mrf.mxu1 }
 0x527   :  { %v588_v0 = vadd.f32 %v626_v62, %v587_v63 }
 0x528   :  { %v675_v1 = vpop.f32.mrf.mxu1 }
 0x529   :  { %592 = vst.msk [vmem:[#allocation2] sm:$0x3] %vm591_vm9, %v588_v0 }
 0x52a   :  { %692 = shalt.err (!%p689_p4)
}
 0x52b   :  { %602 = dma.vmem_to_hbm [thread:$0]  %s600_s7, 32, %s920_s21, [#allocation3]  }
 0x52c   :  { %701 = dma.done.wait [#allocation3], 32  }
 0x52d   :  { %702 = vsyncadd [#allocation3], 4294967264 }
 0x52e   :  { %606 = vsyncpa [#allocation3], 1 }

// kernel: eden_forward.6
= control target key start
LH: loop header
LB: loop body
LE: loop exit
PB: predicated region body
PF: predicated region fallthrough
CT: control target
= control target key end

     0   :  { %s4856_s6 = smov 1   ;;  %s4857_s10 = smov 2   ;;  %s5519_s0 = inlined_call_operand.smem [shape: u32[30], index: -1, kind: input, shape index: {}] }
   0x1   :  { %s4908_s5 = sld [smem:[%s5519_s0]]   ;;  %s4858_s14 = smov 3  }
   0x2   :  { %s4913_s9 = sld [smem:[%s5519_s0 + %s4856_s6]]   ;;  %s4859_s18 = smov 4  }
   0x3   :  { %s4918_s13 = sld [smem:[%s5519_s0 + %s4857_s10]]   ;;  %s4860_s22 = smov 5  }
   0x4   :  { %s4923_s17 = sld [smem:[%s5519_s0 + %s4858_s14]]   ;;  %s4861_s26 = smov 6  }
   0x5   :  { %s4928_s21 = sld [smem:[%s5519_s0 + %s4859_s18]]   ;;  %s4862_s30 = smov 7  }
   0x6   :  { %s4933_s25 = sld [smem:[%s5519_s0 + %s4860_s22]]   ;;  %s4863_s4 = smov 8  }
   0x7   :  { %5557 = sst [smem:[#allocation5_spill]] %s4908_s5  ;;  %s4864_s10 = smov 9  }
   0x8   :  { %5558 = sst [smem:[#allocation6_spill]] %s4913_s9  ;;  %s4865_s15 = smov 10  }
   0x9   :  { %5559 = sst [smem:[#allocation7_spill]] %s4918_s13  ;;  %s4866_s20 = smov 11  }
   0xa   :  { %s4938_s29 = sld [smem:[%s5519_s0 + %s4861_s26]]   ;;  %s4867_s26 = smov 12  }
   0xb   :  { %s4943_s3 = sld [smem:[%s5519_s0 + %s4862_s30]]   ;;  %s4868_s1 = smov 13  }
   0xc   :  { %s4948_s8 = sld [smem:[%s5519_s0 + %s4863_s4]]   ;;  %s4869_s7 = smov 14  }
   0xd   :  { %s4953_s14 = sld [smem:[%s5519_s0 + %s4864_s10]]   ;;  %s4871_s22 = smov 16  }
   0xe   :  { %s4958_s19 = sld [smem:[%s5519_s0 + %s4865_s15]]   ;;  %s4870_s15 = smov 15  }
   0xf   :  { %s4963_s24 = sld [smem:[%s5519_s0 + %s4866_s20]]   ;;  %s4872_s28 = smov 17  }
  0x10   :  { %s4968_s30 = sld [smem:[%s5519_s0 + %s4867_s26]]  }
  0x11   :  { %5560 = sst [smem:[#allocation8_spill]] %s4943_s3 }
  0x12   :  { %5561 = sst [smem:[#allocation9_spill]] %s4948_s8 }
  0x13   :  { %5562 = sst [smem:[#allocation10_spill]] %s4953_s14 }
  0x14   :  { %5563 = sst [smem:[#allocation11_spill]] %s4958_s19 }
  0x15   :  { %5564 = sst [smem:[#allocation12_spill]] %s4963_s24 }
  0x16   :  { %s4973_s6 = sld [smem:[%s5519_s0 + %s4868_s1]]  }
  0x17   :  { %s4978_s12 = sld [smem:[%s5519_s0 + %s4869_s7]]   ;;  %s4873_s7 = smov 18  }
  0x18   :  { %s4983_s20 = sld [smem:[%s5519_s0 + %s4870_s15]]   ;;  %s4874_s15 = smov 19  }
  0x19   :  { %s4988_s27 = sld [smem:[%s5519_s0 + %s4871_s22]]   ;;  %s4875_s22 = smov 20  }
  0x1a   :  { %s4993_s4 = sld [smem:[%s5519_s0 + %s4872_s28]]   ;;  %s4876_s28 = smov 21  }
  0x1c   :  { %5565 = sst [smem:[#allocation13_spill]] %s4973_s6 }
  0x1d   :  { %5566 = sst [smem:[#allocation14_spill]] %s4978_s12 }
  0x1e   :  { %5567 = sst [smem:[#allocation15_spill]] %s4983_s20 }
  0x1f   :  { %5568 = sst [smem:[#allocation16_spill]] %s4988_s27 }
  0x20   :  { %5569 = sst [smem:[#allocation17_spill]] %s4993_s4 }
  0x21   :  { %s4998_s12 = sld [smem:[%s5519_s0 + %s4873_s7]]   ;;  %s4877_s7 = smov 22  }
  0x22   :  { %s5003_s20 = sld [smem:[%s5519_s0 + %s4874_s15]]   ;;  %s4878_s15 = smov 23  }
  0x23   :  { %s5008_s27 = sld [smem:[%s5519_s0 + %s4875_s22]]   ;;  %s4879_s22 = smov 24  }
  0x24   :  { %s5013_s4 = sld [smem:[%s5519_s0 + %s4876_s28]]   ;;  %s4880_s28 = smov 25  }
  0x27   :  { %5570 = sst [smem:[#allocation18_spill]] %s4998_s12 }
  0x28   :  { %5571 = sst [smem:[#allocation19_spill]] %s5003_s20 }
  0x29   :  { %5572 = sst [smem:[#allocation20_spill]] %s5008_s27 }
  0x2a   :  { %5573 = sst [smem:[#allocation21_spill]] %s5013_s4 }
  0x2b   :  { %s5018_s12 = sld [smem:[%s5519_s0 + %s4877_s7]]   ;;  %s4881_s7 = smov 26  }
  0x2c   :  { %s5023_s20 = sld [smem:[%s5519_s0 + %s4878_s15]]   ;;  %s4882_s15 = smov 27  }
  0x2d   :  { %s5028_s27 = sld [smem:[%s5519_s0 + %s4879_s22]]   ;;  %s4883_s22 = smov 28  }
  0x2e   :  { %s5033_s4 = sld [smem:[%s5519_s0 + %s4880_s28]]   ;;  %s4884_s28 = smov 29  }
  0x2f   :  { %s5038_s6 = sld [smem:[%s5519_s0 + %s4881_s7]]  }
  0x30   :  { %s5048_s24 = sld [smem:[%s5519_s0 + %s4883_s22]]  }
  0x31   :  { %5574 = sst [smem:[#allocation22_spill]] %s5018_s12 }
  0x32   :  { %5575 = sst [smem:[#allocation23_spill]] %s5023_s20 }
  0x33   :  { %s5043_s20 = sld [smem:[%s5519_s0 + %s4882_s15]]  }
  0x34   :  { %5576 = sst [smem:[#allocation24_spill]] %s5033_s4 }
  0x35   :  { %5577 = sst [smem:[#allocation25_spill]] %s5038_s6 }
  0x36   :  { %s5053_s19 = sld [smem:[%s5519_s0 + %s4884_s28]]  }
  0x37   :  { %65 = vsyncpa [#allocation3], 0 }
  0x38   :  { %67 = vsyncpa [#allocation3 + $0x1], 0  ;;  %s5055_s7 = smov 0   ;;  %s5057_s10 = smov 0  }
  0x39   :  { %s5059_s11 = smov 0   ;;  %s5061_s15 = smov 0  }
  0x3a LB: > { %s5578_s8 = sld [smem:[#allocation9_spill]]  ;;  %s5076_s0 = sadd.s32 4294967295, %s4854_s15   ;;  %s4846_s10 = sphi %s5057_s10, %s5613_s10   ;;  %s4842_s7 = sphi %s5055_s7, %s5612_s7   ;;  %s4854_s15 = sphi %s5061_s15, %s5615_s15   ;;  %s4850_s11 = sphi %s5059_s11, %s5614_s11  }
  0x3b   : > { %s5579_s4 = sld [smem:[#allocation24_spill]]  ;;  %s4190_s16 = sadd.s32 4294967294, %s4854_s15  }
  0x3c   : > { %s5080_s18 = sadd.s32 1, %s4854_s15   ;;  %s704_s22 = sadd.s32 1, %s4850_s11 }
  0x3d   : > { %s701_s23 = ssub.s32 %s4854_s15, %s5080_s18  ;;  %p714_p0 = scmp.ne.s32.totalorder %s4850_s11, %s4846_s10 }
  0x3e   : > { %p702_p1 = scmp.eq.s32.totalorder %s701_s23, 0  ;;  %p715_p2 = scmp.eq.s32.totalorder %s5076_s0, 1 }
  0x3f   : > { %p720_p3 = scmp.ne.s32.totalorder %s4846_s10, %s4842_s7  ;;  %p721_p4 = scmp.eq.s32.totalorder %s4190_s16, 1 }
  0x40   : > { %s5091_s26 = scalar_select %p702_p1, %s4850_s11, %s704_s22  }
  0x41   : > { %p5093_p5 = por %p715_p2, %p714_p0  ;;  %p5097_p6 = por %p721_p4, %p720_p3 }
  0x42   : > { %p4193_p7 = scmp.ge.s32.totalorder %s4854_s15, 1  ;;  %p830_p8 = scmp.lt.s32.totalorder %s4854_s15, 3 }
  0x44   : > { %p831_p9 = pnand %p4193_p7, %p830_p8 }
  0x45   : > { %s5582_s9 = sld [smem:[#allocation6_spill]] (!%p831_p9)  ;;  %p911_p10 = scmp.lt.s32.totalorder (!%p831_p9), %s5076_s0, 1 }
  0x46   : > { %834 = sbr.rel (%p831_p9) target bundleno = 7032 (0x1b78), region = 132  ;;  %s5583_s13 = sld [smem:[#allocation7_spill]] (!%p831_p9) }
  0x47   : > { %s5584_s12 = sld [smem:[#allocation22_spill]] (!%p831_p9)  ;;  %s5528_s23 = smov (!%p831_p9), 64  }
  0x48   : > { %s5585_s3 = sld [smem:[#allocation8_spill]] (!%p831_p9) }
  0x49   : > { %s5586_s14 = sld [smem:[#allocation10_spill]] (!%p831_p9) }
  0x4a   : > { %s5587_s5 = sld [smem:[#allocation5_spill]] (!%p831_p9) }
  0x4b   : > { %s5105_s2 = scalar_select %p911_p10, %s5076_s0, 1  ;;  %vm925_vm0 = vcmask 261120   ;;  %v957_v7 = vld [vmem:[%s4928_s21 + $0x18] sm:$0xff]  ;;  %v4885_v8 = vmov 0.0   ;;  %v956_v9 = vld [vmem:[%s4928_s21 + $0x10] sm:$0xff]  ;;  %vm4886_vm1 = vmmov 0  }
  0x4c   : > { %4400 = vmatprep.subr.mxu0 %v4885_v8  ;;  %4408 = vmatprep.mubr.msk.f32.mxu0 %vm4886_vm1, %v4885_v8  ;;  %v955_v10 = vld [vmem:[%s4928_s21 + $0x8] sm:$0xff]  ;;  %v954_v11 = vld [vmem:[%s4928_s21] sm:$0xff]  ;;  %vm1047_vm2 = vcmask 64512   ;;  %vm2209_vm3 = vcmask 254976   ;;  %vm2445_vm4 = vcmask 74752   ;;  %vm2441_vm5 = vcmask 80896  }
  0x4d   : > { %s4195_s16 = sshll.u32 %s5105_s2, 3  ;;  %4401 = vmatpush3.msra.mxu0 %v957_v7  ;;  %4416 = vmatprep.subr.mxu1 %v4885_v8  ;;  %v4196_v16 = vld [vmem:[%s5583_s13] ss:$0 sm:$0xff]  ;;  %v960_v59 = vld [vmem:[%s4938_s29 + $0x8] sm:$0xff]  ;;  %vm2476_vm6 = vcmask 1041408   ;;  %s5605_s6 = sld [smem:[#allocation25_spill]] }
  0x4e   : > { %s917_s22 = scalar_lea.vmem %s5582_s9, %s4195_s16  ;;  %4402 = vmatprep.subr.mxu0 %v4885_v8  ;;  %4418 = vmatprep.mubr.msk.f32.mxu1 %vm4886_vm1, %v4885_v8  ;;  %v4197_v18 = vld [vmem:[%s4923_s17] ss:$0 sm:$0xff]  ;;  %s5534_s16 = smov 96   ;;  %vm3662_vm7 = vcmask 253952   ;;  %vm3770_vm8 = vcmask 523264  }
  0x4f   : > { %v5109_v0 = vld [vmem:[%s917_s22] sm:$0xff]  ;;  %4403 = vmatpush3.msra.mxu0 %v956_v9  ;;  %s5530_s22 = smov 88  }
  0x50   : > { %v926_v1 = vsel %vm925_vm0, %v5109_v0, 0.0  ;;  %4404 = vmatprep.subr.mxu0 %v4885_v8  ;;  %v4198_v21 = vld [vmem:[%s4933_s25] ss:$0 sm:$0xff] }
  0x51   : > { %927 = vadd.xlane.f32.xlu0 %v926_v1  ;;  %4405 = vmatpush3.msra.mxu0 %v955_v10  ;;  %v5149_v28 = vld [vmem:[%s5584_s12] sm:$0xff] }
  0x52   : > { %4406 = vmatprep.subr.mxu0 %v4885_v8  ;;  %v959_v43 = vld [vmem:[%s4938_s29] sm:$0xff] }
  0x53   : > { %4407 = vmatpush3.msra.mxu0 %v954_v11 }
  0x54   : > { %4411 = vmatprep.subr.mxu0 %v4885_v8 }
  0xda   : > { %v928_v2 = vpop.xlane.xlu0 %927 }
  0xdb   : > { %v930_v3 = vmul.f32 0.03125, %v928_v2 }
  0xdd   : > { %v931_v4 = vsub.f32 %v5109_v0, %v930_v3 }
  0xdf   : > { %v932_v5 = vmul.f32 %v931_v4, %v931_v4 }
  0xe1   : > { %v933_v6 = vsel %vm925_vm0, %v932_v5, 0.0 }
  0xe2   : > { %934 = vadd.xlane.f32.xlu0 %v933_v6 }
 0x16b   : > { %v935_v12 = vpop.xlane.xlu0 %934 }
 0x16c   : > { %v936_v13 = vmul.f32 0.03125, %v935_v12 }
 0x16e   : > { %v937_v14 = vadd.f32 1e-06, %v936_v13 }
 0x170   : > { %4732 = vrsqrt.f32 %v937_v14 }
 0x17d   : > { %v4733_v15 = vpop.eup %4732 }
 0x17e   : > { %v939_v17 = vmul.f32 %v4733_v15, %v931_v4 }
 0x180   : > { %v946_v19 = vmul.f32 %v4196_v16, %v939_v17  ;;  %v4204_v16 = vld [vmem:[%s5585_s3] ss:$0 sm:$0xff]  ;;  %s5591_s3 = sld [smem:[#allocation23_spill]] }
 0x182   : > { %v953_v20 = vadd.f32 %v4197_v18, %v946_v19 }
 0x184   : > { %4409 = vmatmul.mubr.msk.f32.vlgmr.msra.gmra.mxu0 %vm925_vm0, %v953_v20 }
 0x185   : > { %4413 = vmatprep.mubr.msk.f32.mxu0 %vm4886_vm1, %v4885_v8 }
 0x244   : > { %v1040_v22 = vpop.f32.mrf.mxu0 }
 0x245   : > { %v5135_v23 = vadd.f32 %v4198_v21, %v1040_v22 }
 0x246   : > { %v4410_v24 = vpop.f32.mrf.mxu0 }
 0x247   : > { %1135 = vrot.lane.b32.xlu0 %v5135_v23, %s5528_s23  ;;  %1045 = vrot.lane.b32.xlu1 %v5135_v23, %s5534_s16  ;;  %s5532_s23 = smov 120   ;;  %s5540_s16 = smov 112  }
 0x2b9   : > { %v1136_v25 = vpop.permute.xlu0 %1135  ;;  %v1046_v26 = vpop.permute.xlu1 %1045 }
 0x2ba   : > { %4412 = vmatpush3.xpose.msk.msra.mxu0 %vm1047_vm2, %v1046_v26  ;;  %4417 = vmatpush3.msra.mxu1 %v1136_v25 }
 0x2bb   : > { %4426 = vmatprep.subr.mxu1 %v4885_v8  ;;  %4421 = vmatprep.subr.mxu0 %v4885_v8 }
 0x2bd   : > { %4414 = vmatmul.mubr.msk.f32.vlgmr.msra.gmra.mxu0 %vm1047_vm2, %v5135_v23 }
 0x2be   : > { %4423 = vmatprep.mubr.msk.f32.mxu0 %vm4886_vm1, %v4885_v8  ;;  %4422 = vmatpush3.msra.mxu0 %v959_v43 }
 0x2bf   : > { %4431 = vmatprep.subr.mxu0 %v4885_v8 }
 0x37d   : > { %v1118_v27 = vpop.f32.mrf.mxu0 }
 0x37e   : > { %v1122_v29 = vmul.f32 0.35355338, %v1118_v27  ;;  %v961_v27 = vld [vmem:[%s4938_s29 + $0x10] sm:$0xff] }
 0x37f   : > { %v4415_v30 = vpop.f32.mrf.mxu0 }
 0x380   : > { %v1123_v31 = vadd.f32 %v1122_v29, %v5149_v28 }
 0x382   : > { %v1124_v32 = vsel %vm1047_vm2, %v1123_v31, -inf }
 0x383   : > { %1125 = vmax.xlane.f32.xlu1 %v1124_v32 }
 0x40c   : > { %v1126_v33 = vpop.xlane.xlu1 %1125 }
 0x40d   : > { %v1127_v34 = vsub.f32 %v1123_v31, %v1126_v33 }
 0x40f   : > { %v1128_v35 = vmul.f32 1.442695, %v1127_v34 }
 0x411   : > { %4734 = vpow2.f32 %v1128_v35 }
 0x41e   : > { %v4735_v36 = vpop.eup %4734 }
 0x41f   : > { %v1130_v37 = vsel %vm1047_vm2, %v4735_v36, 0.0 }
 0x420   : > { %1131 = vadd.xlane.f32.xlu0 %v1130_v37 }
 0x436   : > { %1293 = vrot.lane.b32.xlu0 %v5135_v23, %s5530_s22  ;;  %s5536_s22 = smov 56  }
 0x43a   : > { %1291 = vrot.lane.b32.xlu0 %v5135_v23, %s5532_s23  ;;  %s5548_s23 = smov 80  }
 0x4a9   : > { %v1132_v38 = vpop.xlane.xlu0 %1131 }
 0x4aa   : > { %4736 = vrcp.f32 %v1132_v38 }
 0x4ad   : > { %v1294_v40 = vpop.permute.xlu0 %1293 }
 0x4b1   : > { %v1292_v42 = vpop.permute.xlu0 %1291 }
 0x4b7   : > { %v4737_v39 = vpop.eup %4736 }
 0x4b8   : > { %v1134_v41 = vmul.f32 %v4737_v39, %v4735_v36 }
 0x4ba   : > { %4419 = vmatmul.mubr.msk.f32.vlgmr.msra.gmra.mxu1 %vm1047_vm2, %v1134_v41 }
 0x4bb   : > { %4427 = vmatpush3.xpose.msk.msra.mxu1 %vm1047_vm2, %v1294_v40  ;;  %4428 = vmatprep.mubr.msk.f32.mxu1 %vm4886_vm1, %v4885_v8 }
 0x4bc   : > { %4436 = vmatprep.subr.mxu1 %v4885_v8 }
 0x4be   : > { %4429 = vmatmul.mubr.msk.f32.vlgmr.msra.gmra.mxu1 %vm1047_vm2, %v1292_v42 }
 0x4bf   : > { %4438 = vmatprep.mubr.msk.f32.mxu1 %vm4886_vm1, %v4885_v8  ;;  %4437 = vmatpush3.msra.mxu1 %v960_v59  ;;  %v2100_v59 = vld [vmem:[%s5028_s27 + $0x8] sm:$0x3] }
 0x4c0   : > { %4446 = vmatprep.subr.mxu1 %v4885_v8 }
 0x57a   : > { %v1207_v44 = vpop.f32.mrf.mxu1 }
 0x57b   : > { %4424 = vmatmul.mubr.msk.f32.vlgmr.msra.gmra.mxu0 %vm1047_vm2, %v1207_v44 }
 0x57c   : > { %v4420_v45 = vpop.f32.mrf.mxu1  ;;  %4433 = vmatprep.mubr.msk.f32.mxu0 %vm4886_vm1, %v4885_v8 }
 0x57e   : > { %v1365_v46 = vpop.f32.mrf.mxu1 }
 0x57f   : > { %v1369_v47 = vmul.f32 0.35355338, %v1365_v46  ;;  %v962_v46 = vld [vmem:[%s4938_s29 + $0x18] sm:$0xff] }
 0x580   : > { %v4430_v48 = vpop.f32.mrf.mxu1 }
 0x581   : > { %v1370_v49 = vadd.f32 %v1369_v47, %v5149_v28  ;;  %v2017_v47 = vld [vmem:[%s5578_s8 + $0x18] sm:$0xff]  ;;  %v2016_v48 = vld [vmem:[%s5578_s8 + $0x10] sm:$0xff] }
 0x583   : > { %v1371_v50 = vsel %vm1047_vm2, %v1370_v49, -inf }
 0x584   : > { %1372 = vmax.xlane.f32.xlu1 %v1371_v50 }
 0x595   : > { %1382 = vrot.lane.b32.xlu1 %v5135_v23, %s5536_s22  ;;  %s5538_s22 = smov 48  }
 0x599   : > { %1534 = vrot.lane.b32.xlu1 %v5135_v23, %s5548_s23  ;;  %s5590_s23 = sld [smem:[#allocation13_spill]] }
 0x59d   : > { %1532 = vrot.lane.b32.xlu1 %v5135_v23, %s5540_s16  ;;  %s5542_s16 = smov 104  }
 0x60d   : > { %v1373_v51 = vpop.xlane.xlu1 %1372 }
 0x60e   : > { %v1374_v52 = vsub.f32 %v1370_v49, %v1373_v51  ;;  %v2015_v51 = vld [vmem:[%s5578_s8 + $0x8] sm:$0xff] }
 0x610   : > { %v1375_v53 = vmul.f32 1.442695, %v1374_v52  ;;  %v2014_v52 = vld [vmem:[%s5578_s8] sm:$0xff]  ;;  %s4276_s8 = sshll.u32 %s5076_s0, 7 }
 0x611   : > { %v1383_v54 = vpop.permute.xlu1 %1382  ;;  %s4072_s13 = scalar_lea.hbm %s5053_s19, %s4276_s8 }
 0x612   : > { %4738 = vpow2.f32 %v1375_v53  ;;  %4432 = vmatpush3.msra.mxu0 %v1383_v54 }
 0x613   : > { %4441 = vmatprep.subr.mxu0 %v4885_v8 }
 0x615   : > { %v1535_v62 = vpop.permute.xlu1 %1534 }
 0x619   : > { %v1533_v1 = vpop.permute.xlu1 %1532 }
 0x61f   : > { %v4739_v55 = vpop.eup %4738 }
 0x620   : > { %v1377_v56 = vsel %vm1047_vm2, %v4739_v55, 0.0 }
 0x621   : > { %1378 = vadd.xlane.f32.xlu0 %v1377_v56  ;;  %v2119_v56 = vld [vmem:[%s5579_s4] sm:$0xff] }
 0x637   : > { %1623 = vrot.lane.b32.xlu0 %v5135_v23, %s5538_s22  ;;  %s5546_s22 = smov 72  }
 0x63b   : > { %v1280_v57 = vpop.f32.mrf.mxu0 }
 0x63c   : > { %v1290_v17 = vadd.f32 %v4204_v16, %v1280_v57  ;;  %v2099_v57 = vld [vmem:[%s5028_s27] sm:$0xff] }
 0x63d   : > { %v4425_v58 = vpop.f32.mrf.mxu0 }
 0x63e   : > { %v4898_v58 = vmov 0  }
 0x63f   : > { %4730 = vset.pattern.permute.xlu1 %v4898_v58  ;;  %4731 = vset.pattern.permute.xlu0 %v4898_v58 }
 0x6aa   : > { %v1379_v60 = vpop.xlane.xlu0 %1378 }
 0x6ab   : > { %4740 = vrcp.f32 %v1379_v60  ;;  %v4217_v60 = vld [vmem:[%s5586_s14] ss:$0 sm:$0xff] }
 0x6ae   : > { %v1624_v3 = vpop.permute.xlu0 %1623 }
 0x6b8   : > { %v4741_v61 = vpop.eup %4740 }
 0x6b9   : > { %v1381_v63 = vmul.f32 %v4741_v61, %v4739_v55 }
 0x6bb   : > { %4434 = vmatmul.mubr.msk.f32.vlgmr.msra.gmra.mxu0 %vm1047_vm2, %v1381_v63 }
 0x6bc   : > { %4442 = vmatpush3.xpose.msk.msra.mxu0 %vm1047_vm2, %v1535_v62  ;;  %4443 = vmatprep.mubr.msk.f32.mxu0 %vm4886_vm1, %v4885_v8 }
 0x6bd   : > { %4451 = vmatprep.subr.mxu0 %v4885_v8 }
 0x6bf   : > { %4444 = vmatmul.mubr.msk.f32.vlgmr.msra.gmra.mxu0 %vm1047_vm2, %v1533_v1 }
 0x6c0   : > { %4453 = vmatprep.mubr.msk.f32.mxu0 %vm4886_vm1, %v4885_v8  ;;  %4452 = vmatpush3.msra.mxu0 %v961_v27 }
 0x6c1   : > { %4461 = vmatprep.subr.mxu0 %v4885_v8 }
 0x77b   : > { %v1454_v2 = vpop.f32.mrf.mxu0 }
 0x77c   : > { %4439 = vmatmul.mubr.msk.f32.vlgmr.msra.gmra.mxu1 %vm1047_vm2, %v1454_v2  ;;  %v2120_v2 = vld [vmem:[%s5579_s4 + $0x8] sm:$0x3]  ;;  %s5602_s4 = smov 48  }
 0x77d   : > { %4447 = vmatpush3.msra.mxu1 %v1624_v3  ;;  %v4435_v4 = vpop.f32.mrf.mxu0  ;;  %4448 = vmatprep.mubr.msk.f32.mxu1 %vm4886_vm1, %v4885_v8  ;;  %v2112_v3 = vlaneseq }
 0x77e   : > { %4456 = vmatprep.subr.mxu1 %v4885_v8 }
 0x77f   : > { %v1606_v5 = vpop.f32.mrf.mxu0  ;;  %v2113_v4 = vshrl.u32 %v2112_v3, 7 }
 0x780   : > { %v1610_v6 = vmul.f32 0.35355338, %v1606_v5 }
 0x781   : > { %v4445_v7 = vpop.f32.mrf.mxu0 }
 0x782   : > { %v1611_v9 = vadd.f32 %v1610_v6, %v5149_v28  ;;  %v2114_v6 = vsub.s32 0, %v2113_v4 }
 0x784   : > { %v1612_v10 = vsel %vm1047_vm2, %v1611_v9, -inf }
 0x785   : > { %1613 = vmax.xlane.f32.xlu1 %v1612_v10 }
 0x80e   : > { %v1614_v11 = vpop.xlane.xlu1 %1613 }
 0x80f   : > { %v1615_v12 = vsub.f32 %v1611_v9, %v1614_v11 }
 0x811   : > { %v1616_v13 = vmul.f32 1.442695, %v1615_v12 }
 0x813   : > { %4742 = vpow2.f32 %v1616_v13 }
 0x820   : > { %v4743_v14 = vpop.eup %4742 }
 0x821   : > { %v1618_v15 = vsel %vm1047_vm2, %v4743_v14, 0.0 }
 0x822   : > { %1619 = vadd.xlane.f32.xlu0 %v1618_v15 }
 0x838   : > { %1775 = vrot.lane.b32.xlu0 %v5135_v23, %s5546_s22  ;;  %s5589_s22 = sld [smem:[#allocation12_spill]] }
 0x83c   : > { %v1527_v18 = vpop.f32.mrf.mxu1  ;;  %1773 = vrot.lane.b32.xlu0 %v5135_v23, %s5542_s16  ;;  %s5544_s16 = smov 40  }
 0x83d   : > { %v1531_v19 = vadd.f32 %v1527_v18, %v1290_v17 }
 0x83e   : > { %v4440_v20 = vpop.f32.mrf.mxu1 }
 0x8ab   : > { %v1620_v21 = vpop.xlane.xlu0 %1619 }
 0x8ac   : > { %4744 = vrcp.f32 %v1620_v21 }
 0x8af   : > { %v1776_v24 = vpop.permute.xlu0 %1775 }
 0x8b3   : > { %v1774_v26 = vpop.permute.xlu0 %1773 }
 0x8b9   : > { %v4745_v22 = vpop.eup %4744 }
 0x8ba   : > { %v1622_v25 = vmul.f32 %v4745_v22, %v4743_v14 }
 0x8bc   : > { %4449 = vmatmul.mubr.msk.f32.vlgmr.msra.gmra.mxu1 %vm1047_vm2, %v1622_v25 }
 0x8bd   : > { %4457 = vmatpush3.xpose.msk.msra.mxu1 %vm1047_vm2, %v1776_v24  ;;  %4458 = vmatprep.mubr.msk.f32.mxu1 %vm4886_vm1, %v4885_v8 }
 0x8be   : > { %4466 = vmatprep.subr.mxu1 %v4885_v8 }
 0x8c0   : > { %4459 = vmatmul.mubr.msk.f32.vlgmr.msra.gmra.mxu1 %vm1047_vm2, %v1774_v26 }
 0x8c1   : > { %4468 = vmatprep.mubr.msk.f32.mxu1 %vm4886_vm1, %v4885_v8  ;;  %4467 = vmatpush3.msra.mxu1 %v962_v46 }
 0x97c   : > { %v1695_v29 = vpop.f32.mrf.mxu1 }
 0x97d   : > { %4454 = vmatmul.mubr.msk.f32.vlgmr.msra.gmra.mxu0 %vm1047_vm2, %v1695_v29 }
 0x97e   : > { %v4450_v30 = vpop.f32.mrf.mxu1  ;;  %4463 = vmatprep.mubr.msk.f32.mxu0 %vm4886_vm1, %v4885_v8 }
 0x97f   : > { %v2252_v30 = vld [vmem:[%s4968_s30 + $0x18] sm:$0xff] }
 0x980   : > { %v1847_v31 = vpop.f32.mrf.mxu1 }
 0x981   : > { %v1851_v32 = vmul.f32 0.35355338, %v1847_v31  ;;  %v2251_v31 = vld [vmem:[%s4968_s30 + $0x10] sm:$0xff] }
 0x982   : > { %v4460_v33 = vpop.f32.mrf.mxu1 }
 0x983   : > { %v1852_v34 = vadd.f32 %v1851_v32, %v5149_v28  ;;  %v2250_v32 = vld [vmem:[%s4968_s30 + $0x8] sm:$0xff]  ;;  %v2249_v33 = vld [vmem:[%s4968_s30] sm:$0xff] }
 0x985   : > { %v1853_v35 = vsel %vm1047_vm2, %v1852_v34, -inf }
 0x986   : > { %1854 = vmax.xlane.f32.xlu1 %v1853_v35 }
 0x997   : > { %1864 = vrot.lane.b32.xlu1 %v5135_v23, %s5544_s16  ;;  %s913_s16 = scalar_lea.vmem %s5587_s5, %s5105_s2  ;;  %s920_s5 = scalar_lea.vmem %s5048_s24, %s5105_s2 }
 0x998   : > { %v5251_v7 = vld [vmem:[%s913_s16] sm:$0x1]  ;;  %s5588_s16 = sld [smem:[#allocation11_spill]] }
 0x999   : > { %v2115_v9 = vrot.slane %v5251_v7, %v2114_v6 }
 0x99b   : > { %2103 = vperm.xlu1 %4730, %v2099_v57  }
 0x99f   : > { %2108 = vperm.xlu1 %4730, %v2100_v59   ;;  %v5287_v59 = vld [vmem:[%s5591_s3] sm:$0xff] }
 0xa0f   : > { %v1855_v36 = vpop.xlane.xlu1 %1854 }
 0xa10   : > { %v1856_v37 = vsub.f32 %v1852_v34, %v1855_v36 }
 0xa12   : > { %v1857_v38 = vmul.f32 1.442695, %v1856_v37 }
 0xa13   : > { %v1865_v39 = vpop.permute.xlu1 %1864 }
 0xa14   : > { %4746 = vpow2.f32 %v1857_v38  ;;  %4462 = vmatpush3.msra.mxu0 %v1865_v39 }
 0xa15   : > { %4471 = vmatprep.subr.mxu0 %v4885_v8 }
 0xa17   : > { %v2104_v5 = vpop.permute.xlu1 %2103 }
 0xa1b   : > { %v2109_v10 = vpop.permute.xlu1 %2108 }
 0xa1c   : > { %v2118_v11 = vmul.f32 %v2115_v9, %v2109_v10 }
 0xa21   : > { %v4747_v40 = vpop.eup %4746 }
 0xa22   : > { %v1859_v28 = vsel %vm1047_vm2, %v4747_v40, 0.0 }
 0xa23   : > { %1860 = vadd.xlane.f32.xlu0 %v1859_v28  ;;  %v4221_v28 = vld [vmem:[%s5588_s16] ss:$0 sm:$0xff]  ;;  %s5592_s16 = smov 96  }
 0xa3d   : > { %v1768_v41 = vpop.f32.mrf.mxu0 }
 0xa3e   : > { %v1772_v42 = vadd.f32 %v1768_v41, %v1531_v19 }
 0xa3f   : > { %v4455_v43 = vpop.f32.mrf.mxu0 }
 0xaac   : > { %v1861_v44 = vpop.xlane.xlu0 %1860 }
 0xaad   : > { %4748 = vrcp.f32 %v1861_v44 }
 0xaba   : > { %v4749_v23 = vpop.eup %4748 }
 0xabb   : > { %v1863_v45 = vmul.f32 %v4749_v23, %v4747_v40 }
 0xabd   : > { %4464 = vmatmul.mubr.msk.f32.vlgmr.msra.gmra.mxu0 %vm1047_vm2, %v1863_v45 }
 0xabe   : > { %4479 = vmatprep.mubr.msk.f32.mxu0 %vm4886_vm1, %v4885_v8  ;;  %4472 = vmatpush3.msra.mxu0 %v2017_v47 }
 0xabf   : > { %4473 = vmatprep.subr.mxu0 %v4885_v8 }
 0xac0   : > { %4474 = vmatpush3.msra.mxu0 %v2016_v48  ;;  %v4223_v48 = vld [vmem:[%s5590_s23] ss:$0 sm:$0xff]  ;;  %s5593_s23 = smov 64  }
 0xac1   : > { %4475 = vmatprep.subr.mxu0 %v4885_v8 }
 0xac2   : > { %4476 = vmatpush3.msra.mxu0 %v2015_v51 }
 0xac3   : > { %4477 = vmatprep.subr.mxu0 %v4885_v8 }
 0xac4   : > { %4478 = vmatpush3.msra.mxu0 %v2014_v52 }
 0xb7d   : > { %v1936_v49 = vpop.f32.mrf.mxu0 }
 0xb7e   : > { %4469 = vmatmul.mubr.msk.f32.vlgmr.msra.gmra.mxu1 %vm1047_vm2, %v1936_v49 }
 0xb7f   : > { %v4465_v50 = vpop.f32.mrf.mxu0  ;;  %4484 = vmatprep.mubr.msk.f32.mxu1 %vm1047_vm2, %v2119_v56  ;;  %v5284_v56 = vld [vmem:[%s5591_s3 + $0x8] sm:$0x3]  ;;  %s5596_s3 = smov 112  }
 0xc3e   : > { %v2009_v53 = vpop.f32.mrf.mxu1 }
 0xc3f   : > { %v2013_v54 = vadd.f32 %v2009_v53, %v1772_v42  ;;  %v4222_v42 = vld [vmem:[%s5589_s22] ss:$0 sm:$0xff]  ;;  %s5594_s22 = smov 120  }
 0xc40   : > { %v4470_v55 = vpop.f32.mrf.mxu1 }
 0xc41   : > { %4480 = vmatmul.mubr.msk.f32.vlgmr.msra.gmra.mxu0 %vm925_vm0, %v2013_v54 }
 0xd01   : > { %v2094_v61 = vpop.f32.mrf.mxu0 }
 0xd02   : > { %v2095_v62 = vadd.f32 %v4217_v60, %v2094_v61 }
 0xd03   : > { %v4481_v63 = vpop.f32.mrf.mxu0 }
 0xd04   : > { %v5243_v1 = vadd.f32 %v2095_v62, %v5109_v0  ;;  %v2117_v0 = vmul.f32 %v2115_v9, %v2104_v5 }
 0xd06   : > { %4482 = vmatprep.subr.mxu1 %v5243_v1 }
 0xd07   : > { %4483 = vmatpush3.msra.mxu1 %v5243_v1 }
 0xd08   : > { %4485 = vmatmul.mubr.msk.f32.vlgmr.msra.gmra.mxu1 %vm1047_vm2, %v2120_v2  ;;  %4487 = vmatprep.subr.mxu1 %v2252_v30 }
 0xd09   : > { %4488 = vmatpush3.msra.mxu1 %v2252_v30 }
 0xd0a   : > { %4489 = vmatprep.subr.mxu1 %v2251_v31 }
 0xd0b   : > { %4490 = vmatpush3.msra.mxu1 %v2251_v31 }
 0xd0c   : > { %4491 = vmatprep.subr.mxu1 %v2250_v32 }
 0xd0d   : > { %4492 = vmatpush3.msra.mxu1 %v2250_v32 }
 0xd0e   : > { %4493 = vmatprep.subr.mxu1 %v2249_v33 }
 0xd0f   : > { %4494 = vmatpush3.msra.mxu1 %v2249_v33 }
 0xdc8   : > { %v4486_v12 = vpop.f32.mrf.mxu1 }
 0xdc9   : > { %v2203_v13 = vadd.f32 %v4486_v12, %v2118_v11 }
 0xdca   : > { %v2193_v14 = vpop.f32.mrf.mxu1 }
 0xdcb   : > { %v2202_v15 = vadd.f32 %v2193_v14, %v2117_v0  ;;  %v2210_v16 = vsel %vm2209_vm3, %v2203_v13, 0.0 }
 0xdcc   : > { %2211 = vadd.xlane.f32.xlu0 %v2210_v16 }
 0xdcd   : > { %v2206_v17 = vsel %vm925_vm0, %v2202_v15, 0.0 }
 0xdce   : > { %2207 = vadd.xlane.f32.xlu1 %v2206_v17 }
 0xe55   : > { %v2212_v18 = vpop.xlane.xlu0 %2211 }
 0xe56   : > { %v2214_v19 = vmul.f32 0.03125, %v2212_v18 }
 0xe57   : > { %v2208_v20 = vpop.xlane.xlu1 %2207 }
 0xe58   : > { %v2213_v21 = vmul.f32 0.03125, %v2208_v20  ;;  %v2216_v22 = vsub.f32 %v2203_v13, %v2214_v19 }
 0xe5a   : > { %v2215_v24 = vsub.f32 %v2202_v15, %v2213_v21  ;;  %v2218_v27 = vmul.f32 %v2216_v22, %v2216_v22 }
 0xe5c   : > { %v2217_v25 = vmul.f32 %v2215_v24, %v2215_v24  ;;  %v2222_v29 = vsel %vm2209_vm3, %v2218_v27, 0.0 }
 0xe5e   : > { %v2219_v26 = vsel %vm925_vm0, %v2217_v25, 0.0 }
 0xe5f   : > { %2220 = vadd.xlane.f32.xlu0 %v2219_v26 }
 0xe63   : > { %2223 = vadd.xlane.f32.xlu0 %v2222_v29 }
 0xee8   : > { %v2221_v34 = vpop.xlane.xlu0 %2220 }
 0xee9   : > { %v2225_v35 = vmul.f32 0.03125, %v2221_v34 }
 0xeeb   : > { %v2227_v36 = vadd.f32 1e-06, %v2225_v35 }
 0xeec   : > { %v2224_v37 = vpop.xlane.xlu0 %2223 }
 0xeed   : > { %4750 = vrsqrt.f32 %v2227_v36  ;;  %v2226_v38 = vmul.f32 0.03125, %v2224_v37 }
 0xeef   : > { %v2228_v39 = vadd.f32 1e-06, %v2226_v38 }
 0xef1   : > { %4752 = vrsqrt.f32 %v2228_v39 }
 0xefa   : > { %v4751_v40 = vpop.eup %4750 }
 0xefb   : > { %v2231_v41 = vmul.f32 %v4751_v40, %v2215_v24 }
 0xefd   : > { %v2239_v43 = vmul.f32 %v4221_v28, %v2231_v41 }
 0xefe   : > { %v4753_v44 = vpop.eup %4752 }
 0xeff   : > { %v2232_v23 = vmul.f32 %v4753_v44, %v2216_v22  ;;  %v2247_v45 = vadd.f32 %v4222_v42, %v2239_v43 }
 0xf01   : > { %v2240_v46 = vmul.f32 %v4221_v28, %v2232_v23  ;;  %4495 = vmatprep.mubr.msk.f32.mxu1 %vm925_vm0, %v2247_v45 }
 0xf03   : > { %v2248_v47 = vadd.f32 %v4222_v42, %v2240_v46 }
 0xf05   : > { %4496 = vmatmul.mubr.msk.f32.vlgmr.msra.gmra.mxu1 %vm925_vm0, %v2248_v47 }
 0xfc5   : > { %v4497_v49 = vpop.f32.mrf.mxu1 }
 0xfc6   : > { %v5267_v50 = vadd.f32 %v4497_v49, %v4223_v48 }
 0xfc7   : > { %v2339_v51 = vpop.f32.mrf.mxu1 }
 0xfc8   : > { %v5269_v52 = vadd.f32 %v4223_v48, %v2339_v51  ;;  %2352 = vrot.lane.b32.xlu0 %v5267_v50, %s5592_s16 }
 0xfca   : > { %2350 = vrot.lane.b32.xlu1 %v5269_v52, %s5592_s16  ;;  %4502 = vmatprep.mubr.msk.f32.mxu0 %vm1047_vm2, %v5269_v52  ;;  %s5595_s16 = smov 80  }
0x103a   : > { %v2353_v53 = vpop.permute.xlu0 %2352 }
0x103b   : > { %4498 = vmatprep.subr.msk.mxu0 %vm1047_vm2, %v2353_v53 }
0x103c   : > { %4499 = vmatpush3.xpose.msk.msra.mxu0 %vm1047_vm2, %v2353_v53  ;;  %v2351_v54 = vpop.permute.xlu1 %2350 }
0x103d   : > { %4500 = vmatprep.subr.msk.mxu0 %vm1047_vm2, %v2351_v54 }
0x1040   : > { %4501 = vmatpush3.xpose.msk.msra.mxu0 %vm1047_vm2, %v2351_v54 }
0x1043   : > { %4503 = vmatmul.mubr.msk.f32.vlgmr.msra.gmra.mxu0 %vm1047_vm2, %v5267_v50 }
0x1103   : > { %v4504_v55 = vpop.f32.mrf.mxu0 }
0x1104   : > { %v2438_v57 = vmul.f32 0.35355338, %v4504_v55 }
0x1105   : > { %v2428_v58 = vpop.f32.mrf.mxu0 }
0x1106   : > { %v2437_v60 = vmul.f32 0.35355338, %v2428_v58  ;;  %v2440_v61 = vadd.f32 %v2438_v57, %v5284_v56 }
0x1108   : > { %v2446_v62 = vsel %vm2445_vm4, %v2440_v61, -inf  ;;  %v2439_v63 = vadd.f32 %v2437_v60, %v5287_v59 }
0x1109   : > { %2447 = vmax.xlane.f32.xlu1 %v2446_v62 }
0x110a   : > { %v2442_v2 = vsel %vm2441_vm5, %v2439_v63, -inf }
0x110b   : > { %2443 = vmax.xlane.f32.xlu0 %v2442_v2 }
0x111a   : > { %2465 = vrot.lane.b32.xlu1 %v5269_v52, %s5593_s23 }
0x111e   : > { %2643 = vrot.lane.b32.xlu1 %v5269_v52, %s5594_s22 }
0x1121   : > { %2467 = vrot.lane.b32.xlu0 %v5267_v50, %s5593_s23  ;;  %s5597_s23 = smov 88  }
0x1122   : > { %2937 = vrot.lane.b32.xlu1 %v5267_v50, %s5595_s16 }
0x1126   : > { %2931 = vrot.lane.b32.xlu1 %v5269_v52, %s5596_s3 }
0x1192   : > { %v2448_v3 = vpop.xlane.xlu1 %2447 }
0x1193   : > { %v2450_v4 = vsub.f32 %v2440_v61, %v2448_v3 }
0x1194   : > { %v2444_v5 = vpop.xlane.xlu0 %2443 }
0x1195   : > { %v2453_v6 = vmul.f32 1.442695, %v2450_v4  ;;  %v2449_v9 = vsub.f32 %v2439_v63, %v2444_v5 }
0x1196   : > { %v2466_v0 = vpop.permute.xlu1 %2465 }
0x1197   : > { %4754 = vpow2.f32 %v2453_v6  ;;  %v2451_v10 = vmul.f32 1.442695, %v2449_v9 }
0x1198   : > { %v2468_v11 = vpop.permute.xlu0 %2467 }
0x1199   : > { %4756 = vpow2.f32 %v2451_v10  ;;  %4505 = vmatprep.subr.msk.mxu1 %vm2476_vm6, %v2468_v11 }
0x119a   : > { %4506 = vmatpush3.msk.msra.mxu1 %vm2476_vm6, %v2468_v11  ;;  %v2644_v21 = vpop.permute.xlu1 %2643 }
0x119b   : > { %4507 = vmatprep.subr.mxu1 %v2466_v0 }
0x119c   : > { %4508 = vmatpush3.msra.mxu1 %v2466_v0 }
0x119e   : > { %v2938_v26 = vpop.permute.xlu1 %2937 }
0x11a2   : > { %v2932_v29 = vpop.permute.xlu1 %2931 }
0x11a4   : > { %v4755_v12 = vpop.eup %4754 }
0x11a5   : > { %v2458_v13 = vsel %vm2445_vm4, %v4755_v12, 0.0 }
0x11a6   : > { %v4757_v14 = vpop.eup %4756  ;;  %2459 = vadd.xlane.f32.xlu0 %v2458_v13 }
0x11a7   : > { %v2455_v15 = vsel %vm2441_vm5, %v4757_v14, 0.0 }
0x11aa   : > { %2456 = vadd.xlane.f32.xlu0 %v2455_v15 }
0x11c0   : > { %2649 = vrot.lane.b32.xlu0 %v5267_v50, %s5597_s23 }
0x11c4   : > { %2647 = vrot.lane.b32.xlu0 %v5269_v52, %s5597_s23  ;;  %s5601_s23 = smov 104  }
0x11c8   : > { %2645 = vrot.lane.b32.xlu0 %v5267_v50, %s5594_s22  ;;  %s5599_s22 = smov 56  }
0x11cc   : > { %2935 = vrot.lane.b32.xlu0 %v5269_v52, %s5595_s16  ;;  %s5600_s16 = smov 72  }
0x11d0   : > { %2933 = vrot.lane.b32.xlu0 %v5267_v50, %s5596_s3  ;;  %s5598_s3 = sld [smem:[#allocation14_spill]] }
0x11d6   : > { %v2254_v32 = vld [vmem:[%s5598_s3] sm:$0xff]  ;;  %v2255_v10 = vld [vmem:[%s5598_s3 + $0x8] sm:$0xff] }
0x11d7   : > { %4512 = vmatprep.subr.mxu0 %v2254_v32 }
0x11d8   : > { %4513 = vmatpush3.msra.mxu0 %v2254_v32 }
0x122f   : > { %v2460_v16 = vpop.xlane.xlu0 %2459 }
0x1230   : > { %4758 = vrcp.f32 %v2460_v16 }
0x1233   : > { %v2457_v17 = vpop.xlane.xlu0 %2456 }
0x1234   : > { %4760 = vrcp.f32 %v2457_v17 }
0x1237   : > { %v2650_v18 = vpop.permute.xlu0 %2649 }
0x1238   : > { %4517 = vmatprep.subr.msk.mxu1 %vm1047_vm2, %v2650_v18 }
0x123b   : > { %v2648_v22 = vpop.permute.xlu0 %2647 }
0x123d   : > { %v4759_v19 = vpop.eup %4758 }
0x123e   : > { %v2464_v25 = vmul.f32 %v4759_v19, %v4755_v12 }
0x123f   : > { %v2646_v27 = vpop.permute.xlu0 %2645 }
0x1241   : > { %v4761_v20 = vpop.eup %4760 }
0x1242   : > { %v2463_v24 = vmul.f32 %v4761_v20, %v4757_v14 }
0x1243   : > { %v2936_v30 = vpop.permute.xlu0 %2935 }
0x1244   : > { %4509 = vmatprep.mubr.msk.f32.mxu1 %vm2441_vm5, %v2463_v24 }
0x1245   : > { %4510 = vmatmul.mubr.msk.f32.vlgmr.msra.gmra.mxu1 %vm2441_vm5, %v2464_v25 }
0x1246   : > { %4518 = vmatpush3.xpose.msk.msra.mxu1 %vm1047_vm2, %v2650_v18  ;;  %4521 = vmatprep.mubr.msk.f32.mxu1 %vm1047_vm2, %v2644_v21 }
0x1247   : > { %4519 = vmatprep.subr.msk.mxu1 %vm1047_vm2, %v2648_v22  ;;  %v2934_v31 = vpop.permute.xlu0 %2933 }
0x124a   : > { %4520 = vmatpush3.xpose.msk.msra.mxu1 %vm1047_vm2, %v2648_v22 }
0x124b   : > { %4536 = vmatprep.subr.msk.mxu1 %vm1047_vm2, %v2938_v26 }
0x124d   : > { %4522 = vmatmul.mubr.msk.f32.vlgmr.msra.gmra.mxu1 %vm1047_vm2, %v2646_v27 }
0x124e   : > { %4537 = vmatpush3.xpose.msk.msra.mxu1 %vm1047_vm2, %v2938_v26  ;;  %4540 = vmatprep.mubr.msk.f32.mxu1 %vm1047_vm2, %v2932_v29 }
0x124f   : > { %4538 = vmatprep.subr.msk.mxu1 %vm1047_vm2, %v2936_v30 }
0x1252   : > { %4539 = vmatpush3.xpose.msk.msra.mxu1 %vm1047_vm2, %v2936_v30 }
0x1255   : > { %4541 = vmatmul.mubr.msk.f32.vlgmr.msra.gmra.mxu1 %vm1047_vm2, %v2934_v31 }
0x1305   : > { %v4511_v33 = vpop.f32.mrf.mxu1 }
0x1307   : > { %v2545_v34 = vpop.f32.mrf.mxu1 }
0x1308   : > { %4514 = vmatprep.mubr.msk.f32.mxu0 %vm1047_vm2, %v2545_v34 }
0x1309   : > { %4515 = vmatmul.mubr.msk.f32.vlgmr.msra.gmra.mxu0 %vm1047_vm2, %v4511_v33 }
0x130d   : > { %v4523_v35 = vpop.f32.mrf.mxu1 }
0x130e   : > { %v2735_v36 = vmul.f32 0.35355338, %v4523_v35 }
0x130f   : > { %v2725_v37 = vpop.f32.mrf.mxu1 }
0x1310   : > { %v2734_v38 = vmul.f32 0.35355338, %v2725_v37  ;;  %v2737_v39 = vadd.f32 %v2735_v36, %v5284_v56 }
0x1312   : > { %v2741_v40 = vsel %vm2445_vm4, %v2737_v39, -inf  ;;  %v2736_v28 = vadd.f32 %v2734_v38, %v5287_v59 }
0x1313   : > { %2742 = vmax.xlane.f32.xlu0 %v2741_v40 }
0x1314   : > { %v2738_v41 = vsel %vm2441_vm5, %v2736_v28, -inf }
0x1315   : > { %2739 = vmax.xlane.f32.xlu1 %v2738_v41  ;;  %v4542_v42 = vpop.f32.mrf.mxu1 }
0x1316   : > { %v3023_v2 = vmul.f32 0.35355338, %v4542_v42 }
0x1317   : > { %v3013_v43 = vpop.f32.mrf.mxu1 }
0x1318   : > { %v3022_v44 = vmul.f32 0.35355338, %v3013_v43  ;;  %v3025_v3 = vadd.f32 %v3023_v2, %v5284_v56 }
0x131a   : > { %v3024_v23 = vadd.f32 %v3022_v44, %v5287_v59  ;;  %v3029_v4 = vsel %vm2445_vm4, %v3025_v3, -inf  ;;  %v2256_v44 = vld [vmem:[%s5598_s3 + $0x10] sm:$0xff] }
0x131c   : > { %v3026_v45 = vsel %vm2441_vm5, %v3024_v23, -inf }
0x1326   : > { %2762 = vrot.lane.b32.xlu1 %v5267_v50, %s5599_s22 }
0x132a   : > { %3225 = vrot.lane.b32.xlu1 %v5267_v50, %s5600_s16 }
0x132e   : > { %3223 = vrot.lane.b32.xlu1 %v5269_v52, %s5600_s16  ;;  %s5606_s16 = sld [smem:[#allocation18_spill]] }
0x1332   : > { %3219 = vrot.lane.b32.xlu1 %v5269_v52, %s5601_s23 }
0x1356   : > { %3027 = vmax.xlane.f32.xlu1 %v3026_v45 }
0x1367   : > { %3050 = vrot.lane.b32.xlu1 %v5267_v50, %s5602_s4 }
0x139c   : > { %v2743_v46 = vpop.xlane.xlu0 %2742 }
0x139d   : > { %v2745_v47 = vsub.f32 %v2737_v39, %v2743_v46 }
0x139e   : > { %v2740_v48 = vpop.xlane.xlu1 %2739 }
0x139f   : > { %v2748_v49 = vmul.f32 1.442695, %v2745_v47  ;;  %v2744_v51 = vsub.f32 %v2736_v28, %v2740_v48 }
0x13a1   : > { %4762 = vpow2.f32 %v2748_v49  ;;  %v2746_v53 = vmul.f32 1.442695, %v2744_v51 }
0x13a2   : > { %v2763_v54 = vpop.permute.xlu1 %2762 }
0x13a3   : > { %4764 = vpow2.f32 %v2746_v53  ;;  %4524 = vmatprep.subr.msk.mxu0 %vm2476_vm6, %v2763_v54 }
0x13a4   : > { %4525 = vmatpush3.msk.msra.mxu0 %vm2476_vm6, %v2763_v54 }
0x13a6   : > { %v3226_v55 = vpop.permute.xlu1 %3225 }
0x13a7   : > { %4555 = vmatprep.subr.msk.mxu1 %vm1047_vm2, %v3226_v55 }
0x13a8   : > { %4556 = vmatpush3.xpose.msk.msra.mxu1 %vm1047_vm2, %v3226_v55 }
0x13aa   : > { %v3224_v57 = vpop.permute.xlu1 %3223 }
0x13ab   : > { %4557 = vmatprep.subr.msk.mxu1 %vm1047_vm2, %v3224_v57 }
0x13ac   : > { %4558 = vmatpush3.xpose.msk.msra.mxu1 %vm1047_vm2, %v3224_v57 }
0x13ad   : > { %4574 = vmatprep.subr.mxu1 %v4885_v8 }
0x13ae   : > { %v4763_v58 = vpop.eup %4762  ;;  %v3220_v60 = vpop.permute.xlu1 %3219 }
0x13af   : > { %4559 = vmatprep.mubr.msk.f32.mxu1 %vm1047_vm2, %v3220_v60  ;;  %v2753_v61 = vsel %vm2445_vm4, %v4763_v58, 0.0 }
0x13b0   : > { %v4765_v62 = vpop.eup %4764  ;;  %2754 = vadd.xlane.f32.xlu0 %v2753_v61 }
0x13b1   : > { %v2750_v63 = vsel %vm2441_vm5, %v4765_v62, 0.0 }
0x13b4   : > { %2751 = vadd.xlane.f32.xlu0 %v2750_v63 }
0x13c9   : > { %v4516_v31 = vpop.f32.mrf.mxu0 }
0x13ca   : > { %2760 = vrot.lane.b32.xlu0 %v5269_v52, %s5599_s22  ;;  %s5604_s22 = smov 40  }
0x13cb   : > { %v5380_v36 = vpop.f32.mrf.mxu0 }
0x13ce   : > { %3221 = vrot.lane.b32.xlu0 %v5267_v50, %s5601_s23  ;;  %s5607_s23 = sld [smem:[#allocation16_spill]] }
0x13df   : > { %v3028_v12 = vpop.xlane.xlu1 %3027 }
0x13e0   : > { %v3032_v17 = vsub.f32 %v3024_v23, %v3028_v12 }
0x13e2   : > { %v3034_v20 = vmul.f32 1.442695, %v3032_v17 }
0x13e3   : > { %v3051_v16 = vpop.permute.xlu1 %3050 }
0x13ed   : > { %3030 = vmax.xlane.f32.xlu0 %v3029_v4 }
0x1439   : > { %v2755_v5 = vpop.xlane.xlu0 %2754 }
0x143a   : > { %4766 = vrcp.f32 %v2755_v5 }
0x143d   : > { %v2752_v6 = vpop.xlane.xlu0 %2751 }
0x143e   : > { %4768 = vrcp.f32 %v2752_v6 }
0x1441   : > { %v2761_v9 = vpop.permute.xlu0 %2760 }
0x1442   : > { %4526 = vmatprep.subr.mxu0 %v2761_v9 }
0x1443   : > { %4527 = vmatpush3.msra.mxu0 %v2761_v9 }
0x1444   : > { %4531 = vmatprep.subr.mxu0 %v2255_v10 }
0x1445   : > { %v3222_v11 = vpop.permute.xlu0 %3221 }
0x1446   : > { %4560 = vmatmul.mubr.msk.f32.vlgmr.msra.gmra.mxu1 %vm1047_vm2, %v3222_v11  ;;  %v2257_v11 = vld [vmem:[%s5598_s3 + $0x18] sm:$0xff]  ;;  %s5610_s3 = sld [smem:[#allocation19_spill]] }
0x1447   : > { %4578 = vmatprep.mubr.msk.f32.mxu1 %vm4886_vm1, %v4885_v8  ;;  %v4767_v0 = vpop.eup %4766 }
0x1448   : > { %v2759_v15 = vmul.f32 %v4767_v0, %v4763_v58 }
0x144b   : > { %v4769_v13 = vpop.eup %4768 }
0x144c   : > { %v2758_v14 = vmul.f32 %v4769_v13, %v4765_v62 }
0x144e   : > { %4528 = vmatprep.mubr.msk.f32.mxu0 %vm2441_vm5, %v2758_v14 }
0x144f   : > { %4529 = vmatmul.mubr.msk.f32.vlgmr.msra.gmra.mxu0 %vm2441_vm5, %v2759_v15 }
0x1450   : > { %4532 = vmatpush3.msra.mxu0 %v2255_v10 }
0x1451   : > { %4543 = vmatprep.subr.msk.mxu0 %vm2476_vm6, %v3051_v16 }
0x1476   : > { %v3031_v18 = vpop.xlane.xlu0 %3030 }
0x1477   : > { %v3033_v19 = vsub.f32 %v3025_v3, %v3031_v18 }
0x1479   : > { %v3036_v21 = vmul.f32 1.442695, %v3033_v19 }
0x147b   : > { %4770 = vpow2.f32 %v3036_v21 }
0x147c   : > { %4772 = vpow2.f32 %v3034_v20 }
0x1488   : > { %v4771_v22 = vpop.eup %4770 }
0x1489   : > { %v3041_v24 = vsel %vm2445_vm4, %v4771_v22, 0.0  ;;  %v4773_v25 = vpop.eup %4772 }
0x148a   : > { %3042 = vadd.xlane.f32.xlu0 %v3041_v24  ;;  %v3038_v26 = vsel %vm2441_vm5, %v4773_v25, 0.0  ;;  %v3507_v24 = vld [vmem:[%s5605_s6] sm:$0x1] }
0x148e   : > { %3039 = vadd.xlane.f32.xlu0 %v3038_v26 }
0x14a4   : > { %3048 = vrot.lane.b32.xlu0 %v5269_v52, %s5602_s4  ;;  %s5603_s4 = sld [smem:[#allocation15_spill]] }
0x14aa   : > { %v4235_v57 = vld [vmem:[%s5603_s4] ss:$0 sm:$0xff]  ;;  %s5608_s4 = sld [smem:[#allocation17_spill]] }
0x14ab   : > { %v2642_v58 = vadd.f32 %v4516_v31, %v4235_v57 }
0x1506   : > { %v4561_v27 = vpop.f32.mrf.mxu1 }
0x1507   : > { %v3311_v29 = vmul.f32 0.35355338, %v4561_v27 }
0x1508   : > { %v3301_v30 = vpop.f32.mrf.mxu1 }
0x1509   : > { %v3310_v32 = vmul.f32 0.35355338, %v3301_v30  ;;  %v3313_v33 = vadd.f32 %v3311_v29, %v5284_v56 }
0x150b   : > { %v3317_v34 = vsel %vm2445_vm4, %v3313_v33, -inf  ;;  %v3312_v35 = vadd.f32 %v3310_v32, %v5287_v59 }
0x150c   : > { %3318 = vmax.xlane.f32.xlu0 %v3317_v34 }
0x150d   : > { %v3314_v37 = vsel %vm2441_vm5, %v3312_v35, -inf }
0x150e   : > { %3315 = vmax.xlane.f32.xlu1 %v3314_v37 }
0x150f   : > { %v4530_v38 = vpop.f32.mrf.mxu0 }
0x1511   : > { %v2839_v39 = vpop.f32.mrf.mxu0 }
0x1512   : > { %4533 = vmatprep.mubr.msk.f32.mxu0 %vm1047_vm2, %v2839_v39 }
0x1513   : > { %4534 = vmatmul.mubr.msk.f32.vlgmr.msra.gmra.mxu0 %vm1047_vm2, %v4530_v38  ;;  %v3043_v40 = vpop.xlane.xlu0 %3042 }
0x1514   : > { %4544 = vmatpush3.msk.msra.mxu0 %vm2476_vm6, %v3051_v16  ;;  %4774 = vrcp.f32 %v3043_v40  ;;  %v2641_v16 = vadd.f32 %v4235_v57, %v5380_v36 }
0x1517   : > { %v3040_v56 = vpop.xlane.xlu0 %3039 }
0x1518   : > { %4776 = vrcp.f32 %v3040_v56 }
0x151b   : > { %v3049_v59 = vpop.permute.xlu0 %3048 }
0x151c   : > { %4545 = vmatprep.subr.mxu0 %v3049_v59 }
0x151d   : > { %4546 = vmatpush3.msra.mxu0 %v3049_v59 }
0x151e   : > { %4550 = vmatprep.subr.mxu0 %v2256_v44 }
0x1521   : > { %v4775_v28 = vpop.eup %4774 }
0x1522   : > { %v3047_v43 = vmul.f32 %v4775_v28, %v4771_v22  ;;  %v3681_v28 = vld [vmem:[%s5606_s16 + $0x18] sm:$0xff] }
0x1525   : > { %v4777_v41 = vpop.eup %4776 }
0x1526   : > { %v3046_v42 = vmul.f32 %v4777_v41, %v4773_v25  ;;  %v3584_v25 = vld [vmem:[%s5043_s20] sm:$0xff]  ;;  %v3680_v41 = vld [vmem:[%s5606_s16 + $0x10] sm:$0xff] }
0x1528   : > { %4547 = vmatprep.mubr.msk.f32.mxu0 %vm2441_vm5, %v3046_v42  ;;  %v3679_v42 = vld [vmem:[%s5606_s16 + $0x8] sm:$0xff] }
0x1529   : > { %4548 = vmatmul.mubr.msk.f32.vlgmr.msra.gmra.mxu0 %vm2441_vm5, %v3047_v43  ;;  %v3678_v43 = vld [vmem:[%s5606_s16] sm:$0xff] }
0x152a   : > { %4551 = vmatpush3.msra.mxu0 %v2256_v44 }
0x1595   : > { %v3319_v23 = vpop.xlane.xlu0 %3318 }
0x1596   : > { %v3321_v45 = vsub.f32 %v3313_v33, %v3319_v23 }
0x1597   : > { %v3316_v46 = vpop.xlane.xlu1 %3315 }
0x1598   : > { %v3324_v47 = vmul.f32 1.442695, %v3321_v45  ;;  %v3320_v48 = vsub.f32 %v3312_v35, %v3316_v46 }
0x159a   : > { %4778 = vpow2.f32 %v3324_v47  ;;  %v3322_v49 = vmul.f32 1.442695, %v3320_v48 }
0x159c   : > { %4780 = vpow2.f32 %v3322_v49 }
0x15a7   : > { %v4779_v51 = vpop.eup %4778 }
0x15a8   : > { %v3329_v53 = vsel %vm2445_vm4, %v4779_v51, 0.0 }
0x15a9   : > { %v4781_v54 = vpop.eup %4780  ;;  %3330 = vadd.xlane.f32.xlu0 %v3329_v53 }
0x15aa   : > { %v3326_v55 = vsel %vm2441_vm5, %v4781_v54, 0.0 }
0x15ab   : > { %3327 = vadd.xlane.f32.xlu1 %v3326_v55  ;;  %v3661_v55 = vld [vmem:[%s5608_s4] sm:$0x1] }
0x15bc   : > { %3338 = vrot.lane.b32.xlu1 %v5267_v50, %s5604_s22 }
0x15bf   : > { %3336 = vrot.lane.b32.xlu0 %v5269_v52, %s5604_s22  ;;  %s5609_s22 = sld [smem:[#allocation20_spill]] }
0x15d3   : > { %v4535_v60 = vpop.f32.mrf.mxu0 }
0x15d4   : > { %v2930_v61 = vadd.f32 %v4535_v60, %v2642_v58 }
0x15d5   : > { %v2920_v62 = vpop.f32.mrf.mxu0 }
0x15d6   : > { %v2929_v17 = vadd.f32 %v2920_v62, %v2641_v16 }
0x15e9   : > { %v4549_v63 = vpop.f32.mrf.mxu0 }
0x15eb   : > { %v3127_v2 = vpop.f32.mrf.mxu0 }
0x15ec   : > { %4552 = vmatprep.mubr.msk.f32.mxu0 %vm1047_vm2, %v3127_v2 }
0x15ed   : > { %4553 = vmatmul.mubr.msk.f32.vlgmr.msra.gmra.mxu0 %vm1047_vm2, %v4549_v63  ;;  %v4270_v63 = vld [vmem:[%s5608_s4] ss:$0 sm:$0xff]  ;;  %s5611_s4 = sld [smem:[#allocation21_spill]] }
0x1632   : > { %v3331_v3 = vpop.xlane.xlu0 %3330 }
0x1633   : > { %4782 = vrcp.f32 %v3331_v3  ;;  %v3768_v3 = vld [vmem:[%s5609_s22 + $0x38] sm:$0xff] }
0x1634   : > { %v3328_v4 = vpop.xlane.xlu1 %3327 }
0x1635   : > { %4784 = vrcp.f32 %v3328_v4  ;;  %v3767_v4 = vld [vmem:[%s5609_s22 + $0x30] sm:$0xff] }
0x1636   : > { %v3337_v52 = vpop.permute.xlu0 %3336 }
0x1638   : > { %v3339_v50 = vpop.permute.xlu1 %3338 }
0x1639   : > { %4562 = vmatprep.subr.msk.mxu0 %vm2476_vm6, %v3339_v50 }
0x163a   : > { %4563 = vmatpush3.msk.msra.mxu0 %vm2476_vm6, %v3339_v50  ;;  %v3766_v50 = vld [vmem:[%s5609_s22 + $0x28] sm:$0xff] }
0x163b   : > { %4564 = vmatprep.subr.mxu0 %v3337_v52 }
0x163c   : > { %4565 = vmatpush3.msra.mxu0 %v3337_v52  ;;  %v3765_v52 = vld [vmem:[%s5609_s22 + $0x20] sm:$0xff] }
0x163d   : > { %4569 = vmatprep.subr.mxu0 %v2257_v11 }
0x1640   : > { %v4783_v5 = vpop.eup %4782 }
0x1641   : > { %v3335_v10 = vmul.f32 %v4783_v5, %v4779_v51  ;;  %v3660_v51 = vld [vmem:[%s5607_s23] sm:$0x1]  ;;  %v3764_v5 = vld [vmem:[%s5609_s22 + $0x18] sm:$0xff] }
0x1642   : > { %v4785_v6 = vpop.eup %4784 }
0x1643   : > { %v3334_v9 = vmul.f32 %v4785_v6, %v4781_v54  ;;  %v3763_v6 = vld [vmem:[%s5609_s22 + $0x10] sm:$0xff] }
0x1645   : > { %4566 = vmatprep.mubr.msk.f32.mxu0 %vm2441_vm5, %v3334_v9  ;;  %v3762_v9 = vld [vmem:[%s5609_s22 + $0x8] sm:$0xff] }
0x1646   : > { %4567 = vmatmul.mubr.msk.f32.vlgmr.msra.gmra.mxu0 %vm2441_vm5, %v3335_v10  ;;  %v3761_v10 = vld [vmem:[%s5609_s22] sm:$0xff] }
0x1647   : > { %4570 = vmatpush3.msra.mxu0 %v2257_v11  ;;  %v3682_v11 = vld [vmem:[%s5610_s3] sm:$0x1] }
0x1648   : > { %4581 = vmatprep.subr.mxu0 %v4885_v8 }
0x16ad   : > { %v4554_v0 = vpop.f32.mrf.mxu0 }
0x16ae   : > { %v3218_v12 = vadd.f32 %v4554_v0, %v2930_v61  ;;  %v4269_v61 = vld [vmem:[%s5607_s23] ss:$0 sm:$0xff] }
0x16af   : > { %v3208_v13 = vpop.f32.mrf.mxu0 }
0x16b0   : > { %v3217_v19 = vadd.f32 %v3208_v13, %v2929_v17 }
0x1706   : > { %v4568_v14 = vpop.f32.mrf.mxu0 }
0x1708   : > { %v3415_v15 = vpop.f32.mrf.mxu0 }
0x1709   : > { %4571 = vmatprep.mubr.msk.f32.mxu0 %vm1047_vm2, %v3415_v15  ;;  %v4271_v15 = vld [vmem:[%s5610_s3] ss:$0 sm:$0xff]  ;;  %s908_s3 = sand.u32 1, %s4846_s10  }
0x170a   : > { %4572 = vmatmul.mubr.msk.f32.vlgmr.msra.gmra.mxu0 %vm1047_vm2, %v4568_v14  ;;  %s4194_s6 = sshll.u32 %s908_s3, 3  ;;  %s4058_s2 = scalar_lea.sflag [#allocation3], %s908_s3 }
0x170b   : > { %4585 = vmatprep.mubr.msk.f32.mxu0 %vm4886_vm1, %v4885_v8  ;;  %s910_s9 = scalar_lea.vmem [#allocation2], %s4194_s6 }
0x170c   : > { %s4074_s12 = sshll.u32 %s910_s9, 4  ;;  %s4075_s12 = int_to_ptr.vmem [resolvable:$true] %s4074_s12 }
0x170d   : > { %s4794_s14 = scalar_lea.vmem %s4075_s12, 128 }
0x170e   : > { %p4795_p11 = scmp.ne.s32.totalorder %s4075_s12, %s4794_s14 }
0x1710   : > { %p4796_p12 = pnand %p4795_p11, %p5093_p5 }
0x1712   : > { %p4797_p13 = pneg %p4796_p12 }
0x17ca   : > { %v4573_v18 = vpop.f32.mrf.mxu0 }
0x17cb   : > { %v3506_v20 = vadd.f32 %v4573_v18, %v3218_v12 }
0x17cc   : > { %v3496_v21 = vpop.f32.mrf.mxu0 }
0x17cd   : > { %v3505_v22 = vadd.f32 %v3496_v21, %v3217_v19  ;;  %4575 = vmatpush3.msk.msra.mxu1 %vm2476_vm6, %v3506_v20  ;;  %4582 = vmatpush3.msk.msra.mxu0 %vm2476_vm6, %v3506_v20 }
0x17ce   : > { %4576 = vmatprep.subr.mxu1 %v4885_v8  ;;  %4583 = vmatprep.subr.mxu0 %v4885_v8 }
0x17cf   : > { %4577 = vmatpush3.msra.mxu1 %v3505_v22  ;;  %4584 = vmatpush3.msra.mxu0 %v3505_v22 }
0x17d0   : > { %4579 = vmatmul.mubr.msk.f32.vlgmr.msra.gmra.mxu1 %vm2441_vm5, %v3507_v24  ;;  %4586 = vmatmul.mubr.msk.f32.vlgmr.msra.gmra.mxu0 %vm2441_vm5, %v3584_v25 }
0x17d1   : > { %4588 = vmatprep.subr.mxu1 %v4885_v8  ;;  %4596 = vmatprep.mubr.msk.f32.mxu1 %vm4886_vm1, %v4885_v8 }
0x17d2   : > { %4599 = vmatprep.subr.mxu0 %v4885_v8  ;;  %4615 = vmatprep.mubr.msk.f32.mxu0 %vm4886_vm1, %v4885_v8 }
0x17d3   : > { %4589 = vmatpush3.msra.mxu1 %v3681_v28  ;;  %4600 = vmatpush3.msra.mxu0 %v3768_v3 }
0x17d4   : > { %4590 = vmatprep.subr.mxu1 %v4885_v8  ;;  %4601 = vmatprep.subr.mxu0 %v4885_v8 }
0x17d5   : > { %4591 = vmatpush3.msra.mxu1 %v3680_v41  ;;  %4602 = vmatpush3.msra.mxu0 %v3767_v4 }
0x17d6   : > { %4592 = vmatprep.subr.mxu1 %v4885_v8  ;;  %4603 = vmatprep.subr.mxu0 %v4885_v8 }
0x17d7   : > { %4593 = vmatpush3.msra.mxu1 %v3679_v42  ;;  %4604 = vmatpush3.msra.mxu0 %v3766_v50 }
0x17d8   : > { %4594 = vmatprep.subr.mxu1 %v4885_v8  ;;  %4605 = vmatprep.subr.mxu0 %v4885_v8 }
0x17d9   : > { %4595 = vmatpush3.msra.mxu1 %v3678_v43  ;;  %4606 = vmatpush3.msra.mxu0 %v3765_v52 }
0x17da   : > { %4618 = vmatprep.subr.mxu1 %v4885_v8  ;;  %4607 = vmatprep.subr.mxu0 %v4885_v8 }
0x17db   : > { %4608 = vmatpush3.msra.mxu0 %v3764_v5 }
0x17dc   : > { %4609 = vmatprep.subr.mxu0 %v4885_v8 }
0x17dd   : > { %4610 = vmatpush3.msra.mxu0 %v3763_v6 }
0x17de   : > { %4611 = vmatprep.subr.mxu0 %v4885_v8 }
0x17df   : > { %4612 = vmatpush3.msra.mxu0 %v3762_v9 }
0x17e0   : > { %4613 = vmatprep.subr.mxu0 %v4885_v8 }
0x17e1   : > { %4614 = vmatpush3.msra.mxu0 %v3761_v10 }
0x1890   : > { %v3580_v26 = vpop.f32.mrf.mxu1  ;;  %v3654_v27 = vpop.f32.mrf.mxu0 }
0x1891   : > { %v5424_v29 = vadd.f32 %v3580_v26, %v5251_v7  ;;  %v5427_v30 = vadd.f32 %v3654_v27, %v5243_v1 }
0x1892   : > { %v4580_v31 = vpop.f32.mrf.mxu1  ;;  %v4587_v32 = vpop.f32.mrf.mxu0 }
0x1893   : > { %v3848_v33 = vsel %vm925_vm0, %v5427_v30, 0.0  ;;  %v3663_v34 = vsel %vm3662_vm7, %v5424_v29, 0.0  ;;  %v3769_v31 = vld [vmem:[%s5611_s4] sm:$0x1] }
0x1894   : > { %3849 = vadd.xlane.f32.xlu0 %v3848_v33  ;;  %3664 = vadd.xlane.f32.xlu1 %v3663_v34 }
0x191d   : > { %v3850_v35 = vpop.xlane.xlu0 %3849  ;;  %v3665_v36 = vpop.xlane.xlu1 %3664 }
0x191e   : > { %v3851_v7 = vmul.f32 0.03125, %v3850_v35  ;;  %v3666_v37 = vmul.f32 0.03125, %v3665_v36  ;;  %v4273_v36 = vld [vmem:[%s5611_s4] ss:$0 sm:$0xff] }
0x1920   : > { %v3852_v1 = vsub.f32 %v5427_v30, %v3851_v7  ;;  %v3667_v38 = vsub.f32 %v5424_v29, %v3666_v37 }
0x1922   : > { %v3853_v39 = vmul.f32 %v3852_v1, %v3852_v1  ;;  %v3668_v40 = vmul.f32 %v3667_v38, %v3667_v38 }
0x1924   : > { %v3854_v56 = vsel %vm925_vm0, %v3853_v39, 0.0  ;;  %v3669_v59 = vsel %vm3662_vm7, %v3668_v40, 0.0 }
0x1925   : > { %3855 = vadd.xlane.f32.xlu0 %v3854_v56  ;;  %3670 = vadd.xlane.f32.xlu1 %v3669_v59 }
0x19ae   : > { %v3856_v44 = vpop.xlane.xlu0 %3855  ;;  %v3671_v23 = vpop.xlane.xlu1 %3670 }
0x19af   : > { %v3857_v45 = vmul.f32 0.03125, %v3856_v44  ;;  %v3672_v46 = vmul.f32 0.03125, %v3671_v23 }
0x19b1   : > { %v3673_v47 = vadd.f32 1e-06, %v3672_v46  ;;  %v3858_v48 = vadd.f32 1e-06, %v3857_v45 }
0x19b3   : > { %4786 = vrsqrt.f32 %v3673_v47 }
0x19b4   : > { %4788 = vrsqrt.f32 %v3858_v48 }
0x19c0   : > { %v4787_v49 = vpop.eup %4786 }
0x19c1   : > { %v3675_v53 = vmul.f32 %v4787_v49, %v3667_v38  ;;  %v4789_v54 = vpop.eup %4788 }
0x19c2   : > { %v3860_v58 = vmul.f32 %v4789_v54, %v3852_v1 }
0x19c3   : > { %v3676_v57 = vmul.f32 %v3675_v53, %v3660_v51 }
0x19c4   : > { %v3867_v62 = vmul.f32 %v4269_v61, %v3860_v58 }
0x19c5   : > { %v3677_v60 = vadd.f32 %v3676_v57, %v3661_v55 }
0x19c6   : > { %v3874_v2 = vadd.f32 %v4270_v63, %v3867_v62 }
0x19c7   : > { %4597 = vmatmul.mubr.msk.f32.vlgmr.msra.gmra.mxu1 %vm925_vm0, %v3677_v60 }
0x19c8   : > { %4619 = vmatpush3.msra.mxu1 %v3681_v28  ;;  %4626 = vmatprep.mubr.msk.f32.mxu1 %vm4886_vm1, %v4885_v8 }
0x19c9   : > { %4620 = vmatprep.subr.mxu1 %v4885_v8 }
0x19ca   : > { %4621 = vmatpush3.msra.mxu1 %v3680_v41 }
0x19cb   : > { %4622 = vmatprep.subr.mxu1 %v4885_v8 }
0x19cc   : > { %4623 = vmatpush3.msra.mxu1 %v3679_v42 }
0x19cd   : > { %4624 = vmatprep.subr.mxu1 %v4885_v8 }
0x19ce   : > { %4625 = vmatpush3.msra.mxu1 %v3678_v43 }
0x19cf   : > { %4627 = vmatmul.mubr.msk.f32.vlgmr.msra.gmra.mxu1 %vm925_vm0, %v3874_v2  ;;  %4629 = vmatprep.subr.mxu1 %v4885_v8 }
0x19d0   : > { %4645 = vmatprep.mubr.msk.f32.mxu1 %vm4886_vm1, %v4885_v8  ;;  %4630 = vmatpush3.msra.mxu1 %v3768_v3 }
0x19d1   : > { %4631 = vmatprep.subr.mxu1 %v4885_v8 }
0x19d2   : > { %4632 = vmatpush3.msra.mxu1 %v3767_v4 }
0x19d3   : > { %4633 = vmatprep.subr.mxu1 %v4885_v8 }
0x19d4   : > { %4634 = vmatpush3.msra.mxu1 %v3766_v50 }
0x19d5   : > { %4635 = vmatprep.subr.mxu1 %v4885_v8 }
0x19d6   : > { %4636 = vmatpush3.msra.mxu1 %v3765_v52 }
0x19d7   : > { %4637 = vmatprep.subr.mxu1 %v4885_v8 }
0x19d8   : > { %4638 = vmatpush3.msra.mxu1 %v3764_v5 }
0x19d9   : > { %4639 = vmatprep.subr.mxu1 %v4885_v8 }
0x19da   : > { %4640 = vmatpush3.msra.mxu1 %v3763_v6 }
0x19db   : > { %4641 = vmatprep.subr.mxu1 %v4885_v8 }
0x19dc   : > { %4642 = vmatpush3.msra.mxu1 %v3762_v9 }
0x19dd   : > { %4643 = vmatprep.subr.mxu1 %v4885_v8 }
0x19de   : > { %4644 = vmatpush3.msra.mxu1 %v3761_v10 }
0x1a87   : > { %v3752_v0 = vpop.f32.mrf.mxu1 }
0x1a88   : > { %v3753_v12 = vadd.f32 %v3752_v0, %v3682_v11 }
0x1a89   : > { %v4598_v13 = vpop.f32.mrf.mxu1 }
0x1a8a   : > { %v3757_v14 = vmul.f32 0.70710677, %v3753_v12  ;;  %v3756_v8 = vmul.f32 0.5, %v3753_v12 }
0x1a8c   : > { %4790 = verf.f32 %v3757_v14 }
0x1a8f   : > { %v3955_v16 = vpop.f32.mrf.mxu1 }
0x1a90   : > { %v3956_v17 = vadd.f32 %v4271_v15, %v3955_v16 }
0x1a91   : > { %v4628_v18 = vpop.f32.mrf.mxu1 }
0x1a92   : > { %v3960_v19 = vmul.f32 0.70710677, %v3956_v17  ;;  %v3959_v25 = vmul.f32 0.5, %v3956_v17 }
0x1a94   : > { %4792 = verf.f32 %v3960_v19 }
0x1a99   : > { %v4791_v20 = vpop.eup %4790 }
0x1a9a   : > { %v3759_v21 = vadd.f32 1.0, %v4791_v20 }
0x1a9c   : > { %v3760_v22 = vmul.f32 %v3759_v21, %v3756_v8 }
0x1a9e   : > { %4616 = vmatmul.mubr.msk.f32.vlgmr.msra.gmra.mxu0 %vm3770_vm8, %v3760_v22 }
0x1aa1   : > { %v4793_v24 = vpop.eup %4792 }
0x1aa2   : > { %v3962_v26 = vadd.f32 1.0, %v4793_v24 }
0x1aa4   : > { %v3963_v27 = vmul.f32 %v3962_v26, %v3959_v25 }
0x1aa6   : > { %4646 = vmatmul.mubr.msk.f32.vlgmr.msra.gmra.mxu1 %vm3770_vm8, %v3963_v27 }
0x1b5e   : > { %v3840_v32 = vpop.f32.mrf.mxu0 }
0x1b5f   : > { %v3841_v33 = vadd.f32 %v3840_v32, %v3769_v31 }
0x1b60   : > { %v4617_v34 = vpop.f32.mrf.mxu0 }
0x1b61   : > { %v3844_v35 = vadd.f32 %v3841_v33, %v5424_v29 }
0x1b63   : > { %3845 = vst.msk [vmem:[%s920_s5] sm:$0x1] %vm3662_vm7, %v3844_v35  ;;  %s4899_s5 = smov [#allocation2]  }
0x1b64   : > { %s4798_s4 = sshll.u32 %s4899_s5, 4  ;;  %s4799_s4 = int_to_ptr.vmem [resolvable:$false] %s4798_s4 }
0x1b65   : > { %s4800_s0 = scalar_lea.vmem %s4799_s4, 256  ;;  %p4801_p0 = scmp.lt.s32.totalorder %s4075_s12, %s4799_s4 }
0x1b66   : > { %v4048_v7 = vpop.f32.mrf.mxu1  ;;  %p4802_p1 = scmp.lt.s32.totalorder %s4800_s0, %s4794_s14 }
0x1b67   : > { %v4049_v37 = vadd.f32 %v4273_v36, %v4048_v7 }
0x1b68   : > { %v4647_v1 = vpop.f32.mrf.mxu1  ;;  %p4803_p2 = por %p4802_p1, %p4801_p0 }
0x1b69   : > { %v4052_v38 = vadd.f32 %v4049_v37, %v5427_v30 }
0x1b6a   : > { %p4804_p3 = pnand %p4803_p2, %p4797_p13 }
0x1b6b   : > { %4053 = vst.msk [vmem:[%s910_s9] sm:$0xff] %vm925_vm0, %v4052_v38 }
0x1b6c   : > { %4807 = shalt.err (!%p4804_p3)
}
0x1b6d   : > { %s4808_s6 = scalar_lea.hbm %s4072_s13, 128  ;;  %s4812_s9 = scalar_lea.hbm %s5053_s19, 256 }
0x1b6e   : > { %p4809_p4 = scmp.ne.s32.totalorder %s4072_s13, %s4808_s6  ;;  %p4813_p9 = scmp.lt.s32.totalorder %s4072_s13, %s5053_s19 }
0x1b6f   : > { %p4814_p10 = scmp.lt.s32.totalorder %s4812_s9, %s4808_s6 }
0x1b70   : > { %p4810_p7 = pnand %p4809_p4, %p5093_p5 }
0x1b71   : > { %p4815_p11 = por %p4814_p10, %p4813_p9 }
0x1b72   : > { %p4811_p8 = pneg %p4810_p7 }
0x1b74   : > { %p4816_p12 = pnand %p4815_p11, %p4811_p8 }
0x1b76   : > { %4819 = shalt.err (!%p4816_p12)
}
0x1b77   : > { %4648 = dma.vmem_to_hbm [thread:$0]  (%p5093_p5), %s4075_s12, 128, %s4072_s13, %s4058_s2  }
0x1b78 PF: > { %p4654_p13 = scmp.ge.s32.totalorder %s4854_s15, 2  ;;  %s4092_s8 = sand.u32 1, %s4842_s7  }
0x1b79   : > { %s4093_s14 = scalar_lea.sflag [#allocation3], %s4092_s8 }
0x1b7a   : > { %p4651_p0 = pnand %p4654_p13, %p5097_p6 }
0x1b7c   : > { %p4652_p1 = pneg %p4651_p0 }
0x1b7e   : > { %4837 = dma.done.wait (%p4652_p1), %s4093_s14, 128  }
0x1b7f   : > { %4839 = vsyncadd (%p4652_p1), %s4093_s14, 4294967168  ;;  %p70_p2 = scmp.ge.s32.totalorder %s5080_s18, 4   ;;  %s5612_s7 = smov %s4846_s10 }
0x1b80   : > { %s5613_s10 = smov %s4850_s11  ;;  %s5614_s11 = smov %s5091_s26 }
0x1b81   : > { %s5615_s15 = smov %s5080_s18  ;;  %72 = sbr.rel (!%p70_p2) target bundleno = 58 (0x3a), region = 211 }
0x1b86   :  { %4098 = vsyncpa [#allocation3], 1 }
0x1b87   :  { %4100 = vsyncpa [#allocation3 + $0x1], 1 }

// kernel: eden_forward.5
= control target key start
LH: loop header
LB: loop body
LE: loop exit
PB: predicated region body
PF: predicated region fallthrough
CT: control target
= control target key end

     0   :  { %s4750_s6 = smov 1   ;;  %s4751_s10 = smov 2   ;;  %s5350_s0 = inlined_call_operand.smem [shape: u32[30], index: -1, kind: input, shape index: {}] }
   0x1   :  { %s4801_s5 = sld [smem:[%s5350_s0]]   ;;  %s4752_s14 = smov 3  }
   0x2   :  { %s4806_s9 = sld [smem:[%s5350_s0 + %s4750_s6]]   ;;  %s4753_s18 = smov 4  }
   0x3   :  { %s4811_s13 = sld [smem:[%s5350_s0 + %s4751_s10]]   ;;  %s4754_s22 = smov 5  }
   0x4   :  { %s4816_s17 = sld [smem:[%s5350_s0 + %s4752_s14]]   ;;  %s4755_s26 = smov 6  }
   0x5   :  { %s4821_s21 = sld [smem:[%s5350_s0 + %s4753_s18]]   ;;  %s4756_s30 = smov 7  }
   0x6   :  { %s4826_s25 = sld [smem:[%s5350_s0 + %s4754_s22]]   ;;  %s4757_s4 = smov 8  }
   0x7   :  { %s4831_s29 = sld [smem:[%s5350_s0 + %s4755_s26]]   ;;  %s4758_s10 = smov 9  }
   0x8   :  { %s4836_s3 = sld [smem:[%s5350_s0 + %s4756_s30]]   ;;  %s4759_s15 = smov 10  }
   0x9   :  { %s4841_s8 = sld [smem:[%s5350_s0 + %s4757_s4]]   ;;  %s4760_s20 = smov 11  }
   0xa   :  { %s4846_s14 = sld [smem:[%s5350_s0 + %s4758_s10]]   ;;  %s4761_s26 = smov 12  }
   0xb   :  { %s4851_s19 = sld [smem:[%s5350_s0 + %s4759_s15]]   ;;  %s4762_s1 = smov 13  }
   0xc   :  { %s4856_s24 = sld [smem:[%s5350_s0 + %s4760_s20]]   ;;  %s4763_s7 = smov 14  }
   0xd   :  { %s4861_s30 = sld [smem:[%s5350_s0 + %s4761_s26]]   ;;  %s4764_s15 = smov 15  }
   0xe   :  { %s4866_s6 = sld [smem:[%s5350_s0 + %s4762_s1]]   ;;  %s4765_s22 = smov 16  }
   0xf   :  { %s4871_s12 = sld [smem:[%s5350_s0 + %s4763_s7]]   ;;  %s4766_s28 = smov 17  }
  0x10   :  { %s4876_s20 = sld [smem:[%s5350_s0 + %s4764_s15]]   ;;  %s4767_s7 = smov 18  }
  0x11   :  { %5368 = sst [smem:[#allocation2_spill]] %s4851_s19  ;;  %s4768_s15 = smov 19  }
  0x12   :  { %5369 = sst [smem:[#allocation3_spill]] %s4856_s24 }
  0x13   :  { %s4881_s27 = sld [smem:[%s5350_s0 + %s4765_s22]]   ;;  %s4769_s22 = smov 20  }
  0x14   :  { %5370 = sst [smem:[#allocation4_spill]] %s4866_s6 }
  0x15   :  { %5371 = sst [smem:[#allocation5_spill]] %s4871_s12 }
  0x16   :  { %5372 = sst [smem:[#allocation6_spill]] %s4876_s20 }
  0x17   :  { %s4886_s4 = sld [smem:[%s5350_s0 + %s4766_s28]]   ;;  %s4770_s28 = smov 21  }
  0x18   :  { %s4891_s12 = sld [smem:[%s5350_s0 + %s4767_s7]]   ;;  %s4771_s7 = smov 22  }
  0x19   :  { %5373 = sst [smem:[#allocation7_spill]] %s4881_s27 }
  0x1a   :  { %s4896_s20 = sld [smem:[%s5350_s0 + %s4768_s15]]   ;;  %s4772_s15 = smov 23  }
  0x1b   :  { %s4901_s27 = sld [smem:[%s5350_s0 + %s4769_s22]]   ;;  %s4773_s22 = smov 24  }
  0x1d   :  { %5374 = sst [smem:[#allocation8_spill]] %s4886_s4 }
  0x1e   :  { %5375 = sst [smem:[#allocation9_spill]] %s4891_s12 }
  0x1f   :  { %s4906_s4 = sld [smem:[%s5350_s0 + %s4770_s28]]   ;;  %s4774_s28 = smov 25  }
  0x20   :  { %5376 = sst [smem:[#allocation10_spill]] %s4896_s20 }
  0x21   :  { %5377 = sst [smem:[#allocation11_spill]] %s4901_s27 }
  0x22   :  { %s4911_s12 = sld [smem:[%s5350_s0 + %s4771_s7]]   ;;  %s4775_s7 = smov 26  }
  0x23   :  { %s4916_s20 = sld [smem:[%s5350_s0 + %s4772_s15]]   ;;  %s4776_s15 = smov 27  }
  0x24   :  { %s4921_s27 = sld [smem:[%s5350_s0 + %s4773_s22]]   ;;  %s4777_s22 = smov 28  }
  0x25   :  { %5378 = sst [smem:[#allocation12_spill]] %s4906_s4 }
  0x26   :  { %s4926_s4 = sld [smem:[%s5350_s0 + %s4774_s28]]   ;;  %s4778_s28 = smov 29  }
  0x27   :  { %s4931_s6 = sld [smem:[%s5350_s0 + %s4775_s7]]   ;;  %s4948_s7 = smov 0  }
  0x28   :  { %s4941_s24 = sld [smem:[%s5350_s0 + %s4777_s22]]  }
  0x29   :  { %5379 = sst [smem:[#allocation13_spill]] %s4916_s20 }
  0x2a   :  { %s4936_s20 = sld [smem:[%s5350_s0 + %s4776_s15]]  }
  0x2b   :  { %s4946_s19 = sld [smem:[%s5350_s0 + %s4778_s28]]  }
  0x2c LB: > { %s4170_s10 = sadd.s32 4294967295, %s4748_s7   ;;  %p4174_p0 = scmp.ge.s32.totalorder %s4748_s7, 1  ;;  %s4748_s7 = sphi %s4948_s7, %s70_s7  }
  0x2d   : > { %p827_p1 = scmp.lt.s32.totalorder %s4748_s7, 3 }
  0x2f   : > { %p828_p2 = pnand %p4174_p0, %p827_p1 }
  0x30   : > { %p907_p3 = scmp.lt.s32.totalorder (!%p828_p2), %s4170_s10, 1  ;;  %s4781_s15 = smov (!%p828_p2), 64  }
  0x31   : > { %831 = sbr.rel (%p828_p2) target bundleno = 6998 (0x1b56), region = 132  ;;  %s4782_s16 = smov (!%p828_p2), 96  }
  0x32   : > { %s4783_s18 = smov (!%p828_p2), 88   ;;  %s4784_s22 = smov (!%p828_p2), 120  }
  0x33   : > { %s4785_s23 = smov (!%p828_p2), 56   ;;  %s4786_s26 = smov (!%p828_p2), 80  }
  0x34   : > { %s4787_s28 = smov (!%p828_p2), 112   ;;  %s5362_s1 = smov (!%p828_p2), 48  }
  0x35   : > { %s5366_s2 = smov (!%p828_p2), 72  }
  0x36   : > { %s5398_s10 = smov (!%p907_p3, %s4170_s10), 1  ;;  %vm925_vm0 = vcmask 261120   ;;  %v957_v7 = vld [vmem:[%s4821_s21 + $0x18] sm:$0xff]  ;;  %v4779_v8 = vmov 0.0   ;;  %v956_v9 = vld [vmem:[%s4821_s21 + $0x10] sm:$0xff]  ;;  %vm4780_vm1 = vmmov 0  }
  0x37   : > { %s5359_s0 = sshll.u32 %s5398_s10, 3  ;;  %4379 = vmatprep.subr.mxu0 %v4779_v8  ;;  %4387 = vmatprep.mubr.msk.f32.mxu0 %vm4780_vm1, %v4779_v8  ;;  %v955_v10 = vld [vmem:[%s4821_s21 + $0x8] sm:$0xff]  ;;  %v954_v11 = vld [vmem:[%s4821_s21] sm:$0xff]  ;;  %vm1047_vm2 = vcmask 64512   ;;  %vm2209_vm3 = vcmask 254976   ;;  %vm2445_vm4 = vcmask 74752  }
  0x38   : > { %s913_s11 = scalar_lea.vmem %s4806_s9, %s5359_s0  ;;  %4380 = vmatpush3.msra.mxu0 %v957_v7  ;;  %4395 = vmatprep.subr.mxu1 %v4779_v8  ;;  %v4177_v16 = vld [vmem:[%s4811_s13] ss:$0 sm:$0xff]  ;;  %v960_v59 = vld [vmem:[%s4831_s29 + $0x8] sm:$0xff]  ;;  %s5360_s0 = smov 40   ;;  %vm2441_vm5 = vcmask 80896   ;;  %vm2476_vm6 = vcmask 1041408  }
  0x39   : > { %v4962_v0 = vld [vmem:[%s913_s11] sm:$0xff]  ;;  %4381 = vmatprep.subr.mxu0 %v4779_v8  ;;  %4397 = vmatprep.mubr.msk.f32.mxu1 %vm4780_vm1, %v4779_v8  ;;  %s5364_s11 = smov 104   ;;  %vm3662_vm7 = vcmask 253952   ;;  %vm3770_vm8 = vcmask 523264  }
  0x3a   : > { %v926_v1 = vsel %vm925_vm0, %v4962_v0, 0.0  ;;  %4382 = vmatpush3.msra.mxu0 %v956_v9  ;;  %v4178_v18 = vld [vmem:[%s4816_s17] ss:$0 sm:$0xff] }
  0x3b   : > { %927 = vadd.xlane.f32.xlu0 %v926_v1  ;;  %4383 = vmatprep.subr.mxu0 %v4779_v8  ;;  %v4179_v21 = vld [vmem:[%s4826_s25] ss:$0 sm:$0xff] }
  0x3c   : > { %4384 = vmatpush3.msra.mxu0 %v955_v10  ;;  %v5002_v28 = vld [vmem:[%s4911_s12] sm:$0xff] }
  0x3d   : > { %4385 = vmatprep.subr.mxu0 %v4779_v8  ;;  %v959_v43 = vld [vmem:[%s4831_s29] sm:$0xff] }
  0x3e   : > { %4386 = vmatpush3.msra.mxu0 %v954_v11 }
  0x3f   : > { %4390 = vmatprep.subr.mxu0 %v4779_v8 }
  0xc4   : > { %v928_v2 = vpop.xlane.xlu0 %927 }
  0xc5   : > { %v930_v3 = vmul.f32 0.03125, %v928_v2 }
  0xc7   : > { %v931_v4 = vsub.f32 %v4962_v0, %v930_v3 }
  0xc9   : > { %v932_v5 = vmul.f32 %v931_v4, %v931_v4 }
  0xcb   : > { %v933_v6 = vsel %vm925_vm0, %v932_v5, 0.0 }
  0xcc   : > { %934 = vadd.xlane.f32.xlu0 %v933_v6 }
 0x155   : > { %v935_v12 = vpop.xlane.xlu0 %934 }
 0x156   : > { %v936_v13 = vmul.f32 0.03125, %v935_v12 }
 0x158   : > { %v937_v14 = vadd.f32 1e-06, %v936_v13 }
 0x15a   : > { %4680 = vrsqrt.f32 %v937_v14 }
 0x167   : > { %v4681_v15 = vpop.eup %4680 }
 0x168   : > { %v939_v17 = vmul.f32 %v4681_v15, %v931_v4 }
 0x16a   : > { %v946_v19 = vmul.f32 %v4177_v16, %v939_v17  ;;  %v4185_v16 = vld [vmem:[%s4836_s3] ss:$0 sm:$0xff] }
 0x16c   : > { %v953_v20 = vadd.f32 %v4178_v18, %v946_v19 }
 0x16e   : > { %4388 = vmatmul.mubr.msk.f32.vlgmr.msra.gmra.mxu0 %vm925_vm0, %v953_v20 }
 0x16f   : > { %4392 = vmatprep.mubr.msk.f32.mxu0 %vm4780_vm1, %v4779_v8 }
 0x22e   : > { %v1040_v22 = vpop.f32.mrf.mxu0 }
 0x22f   : > { %v4988_v23 = vadd.f32 %v4179_v21, %v1040_v22 }
 0x230   : > { %v4389_v24 = vpop.f32.mrf.mxu0 }
 0x231   : > { %1135 = vrot.lane.b32.xlu0 %v4988_v23, %s4781_s15  ;;  %1045 = vrot.lane.b32.xlu1 %v4988_v23, %s4782_s16 }
 0x2a3   : > { %v1136_v25 = vpop.permute.xlu0 %1135  ;;  %v1046_v26 = vpop.permute.xlu1 %1045 }
 0x2a4   : > { %4391 = vmatpush3.xpose.msk.msra.mxu0 %vm1047_vm2, %v1046_v26  ;;  %4396 = vmatpush3.msra.mxu1 %v1136_v25 }
 0x2a5   : > { %4405 = vmatprep.subr.mxu1 %v4779_v8  ;;  %4400 = vmatprep.subr.mxu0 %v4779_v8 }
 0x2a7   : > { %4393 = vmatmul.mubr.msk.f32.vlgmr.msra.gmra.mxu0 %vm1047_vm2, %v4988_v23 }
 0x2a8   : > { %4402 = vmatprep.mubr.msk.f32.mxu0 %vm4780_vm1, %v4779_v8  ;;  %4401 = vmatpush3.msra.mxu0 %v959_v43 }
 0x2a9   : > { %4410 = vmatprep.subr.mxu0 %v4779_v8 }
 0x367   : > { %v1118_v27 = vpop.f32.mrf.mxu0 }
 0x368   : > { %v1122_v29 = vmul.f32 0.35355338, %v1118_v27  ;;  %v961_v27 = vld [vmem:[%s4831_s29 + $0x10] sm:$0xff] }
 0x369   : > { %v4394_v30 = vpop.f32.mrf.mxu0 }
 0x36a   : > { %v1123_v31 = vadd.f32 %v1122_v29, %v5002_v28 }
 0x36c   : > { %v1124_v32 = vsel %vm1047_vm2, %v1123_v31, -inf }
 0x36d   : > { %1125 = vmax.xlane.f32.xlu1 %v1124_v32 }
 0x3f6   : > { %v1126_v33 = vpop.xlane.xlu1 %1125 }
 0x3f7   : > { %v1127_v34 = vsub.f32 %v1123_v31, %v1126_v33 }
 0x3f9   : > { %v1128_v35 = vmul.f32 1.442695, %v1127_v34 }
 0x3fb   : > { %4682 = vpow2.f32 %v1128_v35 }
 0x408   : > { %v4683_v36 = vpop.eup %4682 }
 0x409   : > { %v1130_v37 = vsel %vm1047_vm2, %v4683_v36, 0.0 }
 0x40a   : > { %1131 = vadd.xlane.f32.xlu0 %v1130_v37 }
 0x420   : > { %1293 = vrot.lane.b32.xlu0 %v4988_v23, %s4783_s18 }
 0x424   : > { %1291 = vrot.lane.b32.xlu0 %v4988_v23, %s4784_s22 }
 0x493   : > { %v1132_v38 = vpop.xlane.xlu0 %1131 }
 0x494   : > { %4684 = vrcp.f32 %v1132_v38 }
 0x497   : > { %v1294_v40 = vpop.permute.xlu0 %1293 }
 0x49b   : > { %v1292_v42 = vpop.permute.xlu0 %1291 }
 0x4a1   : > { %v4685_v39 = vpop.eup %4684 }
 0x4a2   : > { %v1134_v41 = vmul.f32 %v4685_v39, %v4683_v36 }
 0x4a4   : > { %4398 = vmatmul.mubr.msk.f32.vlgmr.msra.gmra.mxu1 %vm1047_vm2, %v1134_v41 }
 0x4a5   : > { %4406 = vmatpush3.xpose.msk.msra.mxu1 %vm1047_vm2, %v1294_v40  ;;  %4407 = vmatprep.mubr.msk.f32.mxu1 %vm4780_vm1, %v4779_v8 }
 0x4a6   : > { %4415 = vmatprep.subr.mxu1 %v4779_v8 }
 0x4a8   : > { %4408 = vmatmul.mubr.msk.f32.vlgmr.msra.gmra.mxu1 %vm1047_vm2, %v1292_v42 }
 0x4a9   : > { %4417 = vmatprep.mubr.msk.f32.mxu1 %vm4780_vm1, %v4779_v8  ;;  %4416 = vmatpush3.msra.mxu1 %v960_v59  ;;  %v2100_v59 = vld [vmem:[%s4921_s27 + $0x8] sm:$0x3] }
 0x4aa   : > { %4425 = vmatprep.subr.mxu1 %v4779_v8 }
 0x564   : > { %v1207_v44 = vpop.f32.mrf.mxu1 }
 0x565   : > { %4403 = vmatmul.mubr.msk.f32.vlgmr.msra.gmra.mxu0 %vm1047_vm2, %v1207_v44 }
 0x566   : > { %v4399_v45 = vpop.f32.mrf.mxu1  ;;  %4412 = vmatprep.mubr.msk.f32.mxu0 %vm4780_vm1, %v4779_v8 }
 0x568   : > { %v1365_v46 = vpop.f32.mrf.mxu1 }
 0x569   : > { %v1369_v47 = vmul.f32 0.35355338, %v1365_v46  ;;  %v962_v46 = vld [vmem:[%s4831_s29 + $0x18] sm:$0xff] }
 0x56a   : > { %v4409_v48 = vpop.f32.mrf.mxu1 }
 0x56b   : > { %v1370_v49 = vadd.f32 %v1369_v47, %v5002_v28  ;;  %v2017_v47 = vld [vmem:[%s4841_s8 + $0x18] sm:$0xff]  ;;  %v2016_v48 = vld [vmem:[%s4841_s8 + $0x10] sm:$0xff] }
 0x56d   : > { %v1371_v50 = vsel %vm1047_vm2, %v1370_v49, -inf }
 0x56e   : > { %1372 = vmax.xlane.f32.xlu1 %v1371_v50 }
 0x57f   : > { %1382 = vrot.lane.b32.xlu1 %v4988_v23, %s4785_s23 }
 0x583   : > { %1534 = vrot.lane.b32.xlu1 %v4988_v23, %s4786_s26 }
 0x587   : > { %1532 = vrot.lane.b32.xlu1 %v4988_v23, %s4787_s28 }
 0x5f7   : > { %v1373_v51 = vpop.xlane.xlu1 %1372 }
 0x5f8   : > { %v1374_v52 = vsub.f32 %v1370_v49, %v1373_v51  ;;  %v2015_v51 = vld [vmem:[%s4841_s8 + $0x8] sm:$0xff] }
 0x5fa   : > { %v1375_v53 = vmul.f32 1.442695, %v1374_v52  ;;  %v2014_v52 = vld [vmem:[%s4841_s8] sm:$0xff] }
 0x5fb   : > { %v1383_v54 = vpop.permute.xlu1 %1382 }
 0x5fc   : > { %4686 = vpow2.f32 %v1375_v53  ;;  %4411 = vmatpush3.msra.mxu0 %v1383_v54 }
 0x5fd   : > { %4420 = vmatprep.subr.mxu0 %v4779_v8 }
 0x5ff   : > { %v1535_v62 = vpop.permute.xlu1 %1534 }
 0x603   : > { %v1533_v1 = vpop.permute.xlu1 %1532 }
 0x609   : > { %v4687_v55 = vpop.eup %4686 }
 0x60a   : > { %v1377_v56 = vsel %vm1047_vm2, %v4687_v55, 0.0 }
 0x60b   : > { %1378 = vadd.xlane.f32.xlu0 %v1377_v56  ;;  %v2119_v56 = vld [vmem:[%s4926_s4] sm:$0xff] }
 0x621   : > { %1623 = vrot.lane.b32.xlu0 %v4988_v23, %s5362_s1  ;;  %s5381_s1 = sld [smem:[#allocation3_spill]] }
 0x625   : > { %v1280_v57 = vpop.f32.mrf.mxu0 }
 0x626   : > { %v1290_v17 = vadd.f32 %v4185_v16, %v1280_v57  ;;  %v2099_v57 = vld [vmem:[%s4921_s27] sm:$0xff] }
 0x627   : > { %v4404_v58 = vpop.f32.mrf.mxu0 }
 0x628   : > { %v4792_v58 = vmov 0  }
 0x629   : > { %4678 = vset.pattern.permute.xlu1 %v4792_v58  ;;  %4679 = vset.pattern.permute.xlu0 %v4792_v58 }
 0x694   : > { %v1379_v60 = vpop.xlane.xlu0 %1378 }
 0x695   : > { %4688 = vrcp.f32 %v1379_v60  ;;  %v4198_v60 = vld [vmem:[%s4846_s14] ss:$0 sm:$0xff] }
 0x698   : > { %v1624_v3 = vpop.permute.xlu0 %1623 }
 0x6a2   : > { %v4689_v61 = vpop.eup %4688 }
 0x6a3   : > { %v1381_v63 = vmul.f32 %v4689_v61, %v4687_v55 }
 0x6a5   : > { %4413 = vmatmul.mubr.msk.f32.vlgmr.msra.gmra.mxu0 %vm1047_vm2, %v1381_v63 }
 0x6a6   : > { %4421 = vmatpush3.xpose.msk.msra.mxu0 %vm1047_vm2, %v1535_v62  ;;  %4422 = vmatprep.mubr.msk.f32.mxu0 %vm4780_vm1, %v4779_v8 }
 0x6a7   : > { %4430 = vmatprep.subr.mxu0 %v4779_v8 }
 0x6a9   : > { %4423 = vmatmul.mubr.msk.f32.vlgmr.msra.gmra.mxu0 %vm1047_vm2, %v1533_v1 }
 0x6aa   : > { %4432 = vmatprep.mubr.msk.f32.mxu0 %vm4780_vm1, %v4779_v8  ;;  %4431 = vmatpush3.msra.mxu0 %v961_v27 }
 0x6ab   : > { %4440 = vmatprep.subr.mxu0 %v4779_v8 }
 0x765   : > { %v1454_v2 = vpop.f32.mrf.mxu0 }
 0x766   : > { %4418 = vmatmul.mubr.msk.f32.vlgmr.msra.gmra.mxu1 %vm1047_vm2, %v1454_v2  ;;  %v2120_v2 = vld [vmem:[%s4926_s4 + $0x8] sm:$0x3] }
 0x767   : > { %4426 = vmatpush3.msra.mxu1 %v1624_v3  ;;  %v4414_v4 = vpop.f32.mrf.mxu0  ;;  %4427 = vmatprep.mubr.msk.f32.mxu1 %vm4780_vm1, %v4779_v8  ;;  %v2112_v3 = vlaneseq }
 0x768   : > { %4435 = vmatprep.subr.mxu1 %v4779_v8 }
 0x769   : > { %v1606_v5 = vpop.f32.mrf.mxu0  ;;  %v2113_v4 = vshrl.u32 %v2112_v3, 7 }
 0x76a   : > { %v1610_v6 = vmul.f32 0.35355338, %v1606_v5 }
 0x76b   : > { %v4424_v7 = vpop.f32.mrf.mxu0 }
 0x76c   : > { %v1611_v9 = vadd.f32 %v1610_v6, %v5002_v28  ;;  %v2114_v6 = vsub.s32 0, %v2113_v4 }
 0x76e   : > { %v1612_v10 = vsel %vm1047_vm2, %v1611_v9, -inf }
 0x76f   : > { %1613 = vmax.xlane.f32.xlu1 %v1612_v10 }
 0x7f8   : > { %v1614_v11 = vpop.xlane.xlu1 %1613 }
 0x7f9   : > { %v1615_v12 = vsub.f32 %v1611_v9, %v1614_v11 }
 0x7fb   : > { %v1616_v13 = vmul.f32 1.442695, %v1615_v12 }
 0x7fd   : > { %4690 = vpow2.f32 %v1616_v13 }
 0x80a   : > { %v4691_v14 = vpop.eup %4690 }
 0x80b   : > { %v1618_v15 = vsel %vm1047_vm2, %v4691_v14, 0.0 }
 0x80c   : > { %1619 = vadd.xlane.f32.xlu0 %v1618_v15 }
 0x822   : > { %1775 = vrot.lane.b32.xlu0 %v4988_v23, %s5366_s2  ;;  %s5383_s2 = sld [smem:[#allocation13_spill]] }
 0x826   : > { %v1527_v18 = vpop.f32.mrf.mxu1  ;;  %1773 = vrot.lane.b32.xlu0 %v4988_v23, %s5364_s11  ;;  %s5382_s11 = sld [smem:[#allocation4_spill]] }
 0x827   : > { %v1531_v19 = vadd.f32 %v1527_v18, %v1290_v17 }
 0x828   : > { %v4419_v20 = vpop.f32.mrf.mxu1 }
 0x895   : > { %v1620_v21 = vpop.xlane.xlu0 %1619 }
 0x896   : > { %4692 = vrcp.f32 %v1620_v21 }
 0x899   : > { %v1776_v24 = vpop.permute.xlu0 %1775 }
 0x89d   : > { %v1774_v26 = vpop.permute.xlu0 %1773 }
 0x8a3   : > { %v4693_v22 = vpop.eup %4692 }
 0x8a4   : > { %v1622_v25 = vmul.f32 %v4693_v22, %v4691_v14 }
 0x8a6   : > { %4428 = vmatmul.mubr.msk.f32.vlgmr.msra.gmra.mxu1 %vm1047_vm2, %v1622_v25 }
 0x8a7   : > { %4436 = vmatpush3.xpose.msk.msra.mxu1 %vm1047_vm2, %v1776_v24  ;;  %4437 = vmatprep.mubr.msk.f32.mxu1 %vm4780_vm1, %v4779_v8 }
 0x8a8   : > { %4445 = vmatprep.subr.mxu1 %v4779_v8 }
 0x8aa   : > { %4438 = vmatmul.mubr.msk.f32.vlgmr.msra.gmra.mxu1 %vm1047_vm2, %v1774_v26 }
 0x8ab   : > { %4447 = vmatprep.mubr.msk.f32.mxu1 %vm4780_vm1, %v4779_v8  ;;  %4446 = vmatpush3.msra.mxu1 %v962_v46 }
 0x966   : > { %v1695_v29 = vpop.f32.mrf.mxu1 }
 0x967   : > { %4433 = vmatmul.mubr.msk.f32.vlgmr.msra.gmra.mxu0 %vm1047_vm2, %v1695_v29 }
 0x968   : > { %v4429_v30 = vpop.f32.mrf.mxu1  ;;  %4442 = vmatprep.mubr.msk.f32.mxu0 %vm4780_vm1, %v4779_v8 }
 0x969   : > { %v2252_v30 = vld [vmem:[%s4861_s30 + $0x18] sm:$0xff] }
 0x96a   : > { %v1847_v31 = vpop.f32.mrf.mxu1 }
 0x96b   : > { %v1851_v32 = vmul.f32 0.35355338, %v1847_v31  ;;  %v2251_v31 = vld [vmem:[%s4861_s30 + $0x10] sm:$0xff] }
 0x96c   : > { %v4439_v33 = vpop.f32.mrf.mxu1 }
 0x96d   : > { %v1852_v34 = vadd.f32 %v1851_v32, %v5002_v28  ;;  %v2250_v32 = vld [vmem:[%s4861_s30 + $0x8] sm:$0xff]  ;;  %v2249_v33 = vld [vmem:[%s4861_s30] sm:$0xff] }
 0x96f   : > { %v1853_v35 = vsel %vm1047_vm2, %v1852_v34, -inf }
 0x970   : > { %1854 = vmax.xlane.f32.xlu1 %v1853_v35 }
 0x981   : > { %1864 = vrot.lane.b32.xlu1 %v4988_v23, %s5360_s0  ;;  %s909_s0 = scalar_lea.vmem %s4801_s5, %s5398_s10 }
 0x982   : > { %v5104_v7 = vld [vmem:[%s909_s0] sm:$0x1]  ;;  %s5380_s0 = sld [smem:[#allocation2_spill]] }
 0x983   : > { %v2115_v9 = vrot.slane %v5104_v7, %v2114_v6 }
 0x985   : > { %2103 = vperm.xlu1 %4678, %v2099_v57  }
 0x989   : > { %2108 = vperm.xlu1 %4678, %v2100_v59   ;;  %v5140_v59 = vld [vmem:[%s5383_s2] sm:$0xff] }
 0x9f9   : > { %v1855_v36 = vpop.xlane.xlu1 %1854 }
 0x9fa   : > { %v1856_v37 = vsub.f32 %v1852_v34, %v1855_v36 }
 0x9fc   : > { %v1857_v38 = vmul.f32 1.442695, %v1856_v37 }
 0x9fd   : > { %v1865_v39 = vpop.permute.xlu1 %1864 }
 0x9fe   : > { %4694 = vpow2.f32 %v1857_v38  ;;  %4441 = vmatpush3.msra.mxu0 %v1865_v39 }
 0x9ff   : > { %4450 = vmatprep.subr.mxu0 %v4779_v8 }
 0xa01   : > { %v2104_v5 = vpop.permute.xlu1 %2103 }
 0xa05   : > { %v2109_v10 = vpop.permute.xlu1 %2108 }
 0xa06   : > { %v2118_v11 = vmul.f32 %v2115_v9, %v2109_v10 }
 0xa0b   : > { %v4695_v40 = vpop.eup %4694 }
 0xa0c   : > { %v1859_v28 = vsel %vm1047_vm2, %v4695_v40, 0.0 }
 0xa0d   : > { %1860 = vadd.xlane.f32.xlu0 %v1859_v28  ;;  %v4202_v28 = vld [vmem:[%s5380_s0] ss:$0 sm:$0xff]  ;;  %s5393_s0 = sld [smem:[#allocation11_spill]] }
 0xa27   : > { %v1768_v41 = vpop.f32.mrf.mxu0 }
 0xa28   : > { %v1772_v42 = vadd.f32 %v1768_v41, %v1531_v19 }
 0xa29   : > { %v4434_v43 = vpop.f32.mrf.mxu0 }
 0xa96   : > { %v1861_v44 = vpop.xlane.xlu0 %1860 }
 0xa97   : > { %4696 = vrcp.f32 %v1861_v44 }
 0xaa4   : > { %v4697_v23 = vpop.eup %4696 }
 0xaa5   : > { %v1863_v45 = vmul.f32 %v4697_v23, %v4695_v40 }
 0xaa7   : > { %4443 = vmatmul.mubr.msk.f32.vlgmr.msra.gmra.mxu0 %vm1047_vm2, %v1863_v45 }
 0xaa8   : > { %4458 = vmatprep.mubr.msk.f32.mxu0 %vm4780_vm1, %v4779_v8  ;;  %4451 = vmatpush3.msra.mxu0 %v2017_v47 }
 0xaa9   : > { %4452 = vmatprep.subr.mxu0 %v4779_v8 }
 0xaaa   : > { %4453 = vmatpush3.msra.mxu0 %v2016_v48  ;;  %v4204_v48 = vld [vmem:[%s5382_s11] ss:$0 sm:$0xff]  ;;  %s5392_s11 = sld [smem:[#allocation8_spill]] }
 0xaab   : > { %4454 = vmatprep.subr.mxu0 %v4779_v8 }
 0xaac   : > { %4455 = vmatpush3.msra.mxu0 %v2015_v51 }
 0xaad   : > { %4456 = vmatprep.subr.mxu0 %v4779_v8 }
 0xaae   : > { %4457 = vmatpush3.msra.mxu0 %v2014_v52 }
 0xb67   : > { %v1936_v49 = vpop.f32.mrf.mxu0 }
 0xb68   : > { %4448 = vmatmul.mubr.msk.f32.vlgmr.msra.gmra.mxu1 %vm1047_vm2, %v1936_v49 }
 0xb69   : > { %v4444_v50 = vpop.f32.mrf.mxu0  ;;  %4463 = vmatprep.mubr.msk.f32.mxu1 %vm1047_vm2, %v2119_v56  ;;  %v5137_v56 = vld [vmem:[%s5383_s2 + $0x8] sm:$0x3] }
 0xc28   : > { %v2009_v53 = vpop.f32.mrf.mxu1 }
 0xc29   : > { %v2013_v54 = vadd.f32 %v2009_v53, %v1772_v42  ;;  %v4203_v42 = vld [vmem:[%s5381_s1] ss:$0 sm:$0xff]  ;;  %s5391_s1 = sld [smem:[#allocation7_spill]] }
 0xc2a   : > { %v4449_v55 = vpop.f32.mrf.mxu1 }
 0xc2b   : > { %4459 = vmatmul.mubr.msk.f32.vlgmr.msra.gmra.mxu0 %vm925_vm0, %v2013_v54 }
 0xceb   : > { %v2094_v61 = vpop.f32.mrf.mxu0 }
 0xcec   : > { %v2095_v62 = vadd.f32 %v4198_v60, %v2094_v61 }
 0xced   : > { %v4460_v63 = vpop.f32.mrf.mxu0 }
 0xcee   : > { %v5096_v1 = vadd.f32 %v2095_v62, %v4962_v0  ;;  %v2117_v0 = vmul.f32 %v2115_v9, %v2104_v5 }
 0xcf0   : > { %4461 = vmatprep.subr.mxu1 %v5096_v1 }
 0xcf1   : > { %4462 = vmatpush3.msra.mxu1 %v5096_v1 }
 0xcf2   : > { %4464 = vmatmul.mubr.msk.f32.vlgmr.msra.gmra.mxu1 %vm1047_vm2, %v2120_v2  ;;  %4466 = vmatprep.subr.mxu1 %v2252_v30 }
 0xcf3   : > { %4467 = vmatpush3.msra.mxu1 %v2252_v30 }
 0xcf4   : > { %4468 = vmatprep.subr.mxu1 %v2251_v31 }
 0xcf5   : > { %4469 = vmatpush3.msra.mxu1 %v2251_v31 }
 0xcf6   : > { %4470 = vmatprep.subr.mxu1 %v2250_v32 }
 0xcf7   : > { %4471 = vmatpush3.msra.mxu1 %v2250_v32 }
 0xcf8   : > { %4472 = vmatprep.subr.mxu1 %v2249_v33 }
 0xcf9   : > { %4473 = vmatpush3.msra.mxu1 %v2249_v33 }
 0xdb2   : > { %v4465_v12 = vpop.f32.mrf.mxu1 }
 0xdb3   : > { %v2203_v13 = vadd.f32 %v4465_v12, %v2118_v11 }
 0xdb4   : > { %v2193_v14 = vpop.f32.mrf.mxu1 }
 0xdb5   : > { %v2202_v15 = vadd.f32 %v2193_v14, %v2117_v0  ;;  %v2210_v16 = vsel %vm2209_vm3, %v2203_v13, 0.0 }
 0xdb6   : > { %2211 = vadd.xlane.f32.xlu0 %v2210_v16 }
 0xdb7   : > { %v2206_v17 = vsel %vm925_vm0, %v2202_v15, 0.0 }
 0xdb8   : > { %2207 = vadd.xlane.f32.xlu1 %v2206_v17 }
 0xe3f   : > { %v2212_v18 = vpop.xlane.xlu0 %2211 }
 0xe40   : > { %v2214_v19 = vmul.f32 0.03125, %v2212_v18 }
 0xe41   : > { %v2208_v20 = vpop.xlane.xlu1 %2207 }
 0xe42   : > { %v2213_v21 = vmul.f32 0.03125, %v2208_v20  ;;  %v2216_v22 = vsub.f32 %v2203_v13, %v2214_v19 }
 0xe44   : > { %v2215_v24 = vsub.f32 %v2202_v15, %v2213_v21  ;;  %v2218_v27 = vmul.f32 %v2216_v22, %v2216_v22 }
 0xe46   : > { %v2217_v25 = vmul.f32 %v2215_v24, %v2215_v24  ;;  %v2222_v29 = vsel %vm2209_vm3, %v2218_v27, 0.0 }
 0xe48   : > { %v2219_v26 = vsel %vm925_vm0, %v2217_v25, 0.0 }
 0xe49   : > { %2220 = vadd.xlane.f32.xlu0 %v2219_v26 }
 0xe4d   : > { %2223 = vadd.xlane.f32.xlu0 %v2222_v29 }
 0xed2   : > { %v2221_v34 = vpop.xlane.xlu0 %2220 }
 0xed3   : > { %v2225_v35 = vmul.f32 0.03125, %v2221_v34 }
 0xed5   : > { %v2227_v36 = vadd.f32 1e-06, %v2225_v35 }
 0xed6   : > { %v2224_v37 = vpop.xlane.xlu0 %2223 }
 0xed7   : > { %4698 = vrsqrt.f32 %v2227_v36  ;;  %v2226_v38 = vmul.f32 0.03125, %v2224_v37 }
 0xed9   : > { %v2228_v39 = vadd.f32 1e-06, %v2226_v38 }
 0xedb   : > { %4700 = vrsqrt.f32 %v2228_v39 }
 0xee4   : > { %v4699_v40 = vpop.eup %4698 }
 0xee5   : > { %v2231_v41 = vmul.f32 %v4699_v40, %v2215_v24 }
 0xee7   : > { %v2239_v43 = vmul.f32 %v4202_v28, %v2231_v41 }
 0xee8   : > { %v4701_v44 = vpop.eup %4700 }
 0xee9   : > { %v2232_v23 = vmul.f32 %v4701_v44, %v2216_v22  ;;  %v2247_v45 = vadd.f32 %v4203_v42, %v2239_v43 }
 0xeeb   : > { %v2240_v46 = vmul.f32 %v4202_v28, %v2232_v23  ;;  %4474 = vmatprep.mubr.msk.f32.mxu1 %vm925_vm0, %v2247_v45 }
 0xeed   : > { %v2248_v47 = vadd.f32 %v4203_v42, %v2240_v46 }
 0xeef   : > { %4475 = vmatmul.mubr.msk.f32.vlgmr.msra.gmra.mxu1 %vm925_vm0, %v2248_v47 }
 0xfaf   : > { %v4476_v49 = vpop.f32.mrf.mxu1 }
 0xfb0   : > { %v5120_v50 = vadd.f32 %v4476_v49, %v4204_v48 }
 0xfb1   : > { %v2339_v51 = vpop.f32.mrf.mxu1 }
 0xfb2   : > { %v5122_v52 = vadd.f32 %v4204_v48, %v2339_v51  ;;  %2352 = vrot.lane.b32.xlu0 %v5120_v50, %s4782_s16 }
 0xfb4   : > { %2350 = vrot.lane.b32.xlu1 %v5122_v52, %s4782_s16  ;;  %4481 = vmatprep.mubr.msk.f32.mxu0 %vm1047_vm2, %v5122_v52  ;;  %s5385_s16 = smov 72  }
0x1024   : > { %v2353_v53 = vpop.permute.xlu0 %2352 }
0x1025   : > { %4477 = vmatprep.subr.msk.mxu0 %vm1047_vm2, %v2353_v53 }
0x1026   : > { %4478 = vmatpush3.xpose.msk.msra.mxu0 %vm1047_vm2, %v2353_v53  ;;  %v2351_v54 = vpop.permute.xlu1 %2350 }
0x1027   : > { %4479 = vmatprep.subr.msk.mxu0 %vm1047_vm2, %v2351_v54 }
0x102a   : > { %4480 = vmatpush3.xpose.msk.msra.mxu0 %vm1047_vm2, %v2351_v54 }
0x102d   : > { %4482 = vmatmul.mubr.msk.f32.vlgmr.msra.gmra.mxu0 %vm1047_vm2, %v5120_v50 }
0x10ed   : > { %v4483_v55 = vpop.f32.mrf.mxu0 }
0x10ee   : > { %v2438_v57 = vmul.f32 0.35355338, %v4483_v55 }
0x10ef   : > { %v2428_v58 = vpop.f32.mrf.mxu0 }
0x10f0   : > { %v2437_v60 = vmul.f32 0.35355338, %v2428_v58  ;;  %v2440_v61 = vadd.f32 %v2438_v57, %v5137_v56 }
0x10f2   : > { %v2446_v62 = vsel %vm2445_vm4, %v2440_v61, -inf  ;;  %v2439_v63 = vadd.f32 %v2437_v60, %v5140_v59 }
0x10f3   : > { %2447 = vmax.xlane.f32.xlu1 %v2446_v62 }
0x10f4   : > { %v2442_v2 = vsel %vm2441_vm5, %v2439_v63, -inf }
0x10f5   : > { %2443 = vmax.xlane.f32.xlu0 %v2442_v2 }
0x1104   : > { %2465 = vrot.lane.b32.xlu1 %v5122_v52, %s4781_s15 }
0x1108   : > { %2643 = vrot.lane.b32.xlu1 %v5122_v52, %s4784_s22 }
0x110b   : > { %2467 = vrot.lane.b32.xlu0 %v5120_v50, %s4781_s15  ;;  %s5384_s15 = sld [smem:[#allocation5_spill]] }
0x110c   : > { %2937 = vrot.lane.b32.xlu1 %v5120_v50, %s4786_s26 }
0x1110   : > { %2931 = vrot.lane.b32.xlu1 %v5122_v52, %s4787_s28 }
0x1111   : > { %v2254_v32 = vld [vmem:[%s5384_s15] sm:$0xff] }
0x1112   : > { %4491 = vmatprep.subr.mxu0 %v2254_v32 }
0x1113   : > { %4492 = vmatpush3.msra.mxu0 %v2254_v32 }
0x117c   : > { %v2448_v3 = vpop.xlane.xlu1 %2447 }
0x117d   : > { %v2450_v4 = vsub.f32 %v2440_v61, %v2448_v3 }
0x117e   : > { %v2444_v5 = vpop.xlane.xlu0 %2443 }
0x117f   : > { %v2453_v6 = vmul.f32 1.442695, %v2450_v4  ;;  %v2449_v9 = vsub.f32 %v2439_v63, %v2444_v5 }
0x1180   : > { %v2466_v0 = vpop.permute.xlu1 %2465 }
0x1181   : > { %4702 = vpow2.f32 %v2453_v6  ;;  %v2451_v10 = vmul.f32 1.442695, %v2449_v9 }
0x1182   : > { %v2468_v11 = vpop.permute.xlu0 %2467 }
0x1183   : > { %4704 = vpow2.f32 %v2451_v10  ;;  %4484 = vmatprep.subr.msk.mxu1 %vm2476_vm6, %v2468_v11  ;;  %v2255_v10 = vld [vmem:[%s5384_s15 + $0x8] sm:$0xff] }
0x1184   : > { %4485 = vmatpush3.msk.msra.mxu1 %vm2476_vm6, %v2468_v11  ;;  %v2644_v21 = vpop.permute.xlu1 %2643 }
0x1185   : > { %4486 = vmatprep.subr.mxu1 %v2466_v0 }
0x1186   : > { %4487 = vmatpush3.msra.mxu1 %v2466_v0 }
0x1188   : > { %v2938_v26 = vpop.permute.xlu1 %2937 }
0x118c   : > { %v2932_v29 = vpop.permute.xlu1 %2931 }
0x118e   : > { %v4703_v12 = vpop.eup %4702 }
0x118f   : > { %v2458_v13 = vsel %vm2445_vm4, %v4703_v12, 0.0 }
0x1190   : > { %v4705_v14 = vpop.eup %4704  ;;  %2459 = vadd.xlane.f32.xlu0 %v2458_v13 }
0x1191   : > { %v2455_v15 = vsel %vm2441_vm5, %v4705_v14, 0.0 }
0x1194   : > { %2456 = vadd.xlane.f32.xlu0 %v2455_v15 }
0x11aa   : > { %2649 = vrot.lane.b32.xlu0 %v5120_v50, %s4783_s18 }
0x11ae   : > { %2647 = vrot.lane.b32.xlu0 %v5122_v52, %s4783_s18  ;;  %s5386_s18 = smov 104  }
0x11b2   : > { %2645 = vrot.lane.b32.xlu0 %v5120_v50, %s4784_s22  ;;  %s5387_s22 = smov 48  }
0x11b6   : > { %2935 = vrot.lane.b32.xlu0 %v5122_v52, %s4786_s26  ;;  %s5389_s26 = smov 40  }
0x11ba   : > { %2933 = vrot.lane.b32.xlu0 %v5120_v50, %s4787_s28  ;;  %s5390_s28 = sld [smem:[#allocation9_spill]] }
0x1219   : > { %v2460_v16 = vpop.xlane.xlu0 %2459 }
0x121a   : > { %4706 = vrcp.f32 %v2460_v16 }
0x121d   : > { %v2457_v17 = vpop.xlane.xlu0 %2456 }
0x121e   : > { %4708 = vrcp.f32 %v2457_v17 }
0x1221   : > { %v2650_v18 = vpop.permute.xlu0 %2649 }
0x1222   : > { %4496 = vmatprep.subr.msk.mxu1 %vm1047_vm2, %v2650_v18 }
0x1225   : > { %v2648_v22 = vpop.permute.xlu0 %2647 }
0x1227   : > { %v4707_v19 = vpop.eup %4706 }
0x1228   : > { %v2464_v25 = vmul.f32 %v4707_v19, %v4703_v12 }
0x1229   : > { %v2646_v27 = vpop.permute.xlu0 %2645 }
0x122b   : > { %v4709_v20 = vpop.eup %4708 }
0x122c   : > { %v2463_v24 = vmul.f32 %v4709_v20, %v4705_v14 }
0x122d   : > { %v2936_v30 = vpop.permute.xlu0 %2935 }
0x122e   : > { %4488 = vmatprep.mubr.msk.f32.mxu1 %vm2441_vm5, %v2463_v24 }
0x122f   : > { %4489 = vmatmul.mubr.msk.f32.vlgmr.msra.gmra.mxu1 %vm2441_vm5, %v2464_v25 }
0x1230   : > { %4497 = vmatpush3.xpose.msk.msra.mxu1 %vm1047_vm2, %v2650_v18  ;;  %4500 = vmatprep.mubr.msk.f32.mxu1 %vm1047_vm2, %v2644_v21 }
0x1231   : > { %4498 = vmatprep.subr.msk.mxu1 %vm1047_vm2, %v2648_v22  ;;  %v2934_v31 = vpop.permute.xlu0 %2933 }
0x1234   : > { %4499 = vmatpush3.xpose.msk.msra.mxu1 %vm1047_vm2, %v2648_v22 }
0x1235   : > { %4515 = vmatprep.subr.msk.mxu1 %vm1047_vm2, %v2938_v26 }
0x1237   : > { %4501 = vmatmul.mubr.msk.f32.vlgmr.msra.gmra.mxu1 %vm1047_vm2, %v2646_v27 }
0x1238   : > { %4516 = vmatpush3.xpose.msk.msra.mxu1 %vm1047_vm2, %v2938_v26  ;;  %4519 = vmatprep.mubr.msk.f32.mxu1 %vm1047_vm2, %v2932_v29 }
0x1239   : > { %4517 = vmatprep.subr.msk.mxu1 %vm1047_vm2, %v2936_v30 }
0x123c   : > { %4518 = vmatpush3.xpose.msk.msra.mxu1 %vm1047_vm2, %v2936_v30 }
0x123f   : > { %4520 = vmatmul.mubr.msk.f32.vlgmr.msra.gmra.mxu1 %vm1047_vm2, %v2934_v31 }
0x12ef   : > { %v4490_v33 = vpop.f32.mrf.mxu1 }
0x12f1   : > { %v2545_v34 = vpop.f32.mrf.mxu1 }
0x12f2   : > { %4493 = vmatprep.mubr.msk.f32.mxu0 %vm1047_vm2, %v2545_v34 }
0x12f3   : > { %4494 = vmatmul.mubr.msk.f32.vlgmr.msra.gmra.mxu0 %vm1047_vm2, %v4490_v33 }
0x12f7   : > { %v4502_v35 = vpop.f32.mrf.mxu1 }
0x12f8   : > { %v2735_v36 = vmul.f32 0.35355338, %v4502_v35 }
0x12f9   : > { %v2725_v37 = vpop.f32.mrf.mxu1 }
0x12fa   : > { %v2734_v38 = vmul.f32 0.35355338, %v2725_v37  ;;  %v2737_v39 = vadd.f32 %v2735_v36, %v5137_v56 }
0x12fc   : > { %v2741_v40 = vsel %vm2445_vm4, %v2737_v39, -inf  ;;  %v2736_v28 = vadd.f32 %v2734_v38, %v5140_v59 }
0x12fd   : > { %2742 = vmax.xlane.f32.xlu0 %v2741_v40 }
0x12fe   : > { %v2738_v41 = vsel %vm2441_vm5, %v2736_v28, -inf }
0x12ff   : > { %2739 = vmax.xlane.f32.xlu1 %v2738_v41  ;;  %v4521_v42 = vpop.f32.mrf.mxu1 }
0x1300   : > { %v3023_v2 = vmul.f32 0.35355338, %v4521_v42 }
0x1301   : > { %v3013_v43 = vpop.f32.mrf.mxu1 }
0x1302   : > { %v3022_v44 = vmul.f32 0.35355338, %v3013_v43  ;;  %v3025_v3 = vadd.f32 %v3023_v2, %v5137_v56 }
0x1304   : > { %v3024_v23 = vadd.f32 %v3022_v44, %v5140_v59  ;;  %v3029_v4 = vsel %vm2445_vm4, %v3025_v3, -inf  ;;  %v2256_v44 = vld [vmem:[%s5384_s15 + $0x10] sm:$0xff] }
0x1306   : > { %v3026_v45 = vsel %vm2441_vm5, %v3024_v23, -inf }
0x1310   : > { %2762 = vrot.lane.b32.xlu1 %v5120_v50, %s4785_s23 }
0x1314   : > { %3225 = vrot.lane.b32.xlu1 %v5120_v50, %s5385_s16 }
0x1318   : > { %3223 = vrot.lane.b32.xlu1 %v5122_v52, %s5385_s16  ;;  %s5394_s16 = sld [smem:[#allocation10_spill]] }
0x131c   : > { %3219 = vrot.lane.b32.xlu1 %v5122_v52, %s5386_s18 }
0x1340   : > { %3027 = vmax.xlane.f32.xlu1 %v3026_v45 }
0x1351   : > { %3050 = vrot.lane.b32.xlu1 %v5120_v50, %s5387_s22 }
0x1386   : > { %v2743_v46 = vpop.xlane.xlu0 %2742 }
0x1387   : > { %v2745_v47 = vsub.f32 %v2737_v39, %v2743_v46 }
0x1388   : > { %v2740_v48 = vpop.xlane.xlu1 %2739 }
0x1389   : > { %v2748_v49 = vmul.f32 1.442695, %v2745_v47  ;;  %v2744_v51 = vsub.f32 %v2736_v28, %v2740_v48 }
0x138b   : > { %4710 = vpow2.f32 %v2748_v49  ;;  %v2746_v53 = vmul.f32 1.442695, %v2744_v51 }
0x138c   : > { %v2763_v54 = vpop.permute.xlu1 %2762 }
0x138d   : > { %4712 = vpow2.f32 %v2746_v53  ;;  %4503 = vmatprep.subr.msk.mxu0 %vm2476_vm6, %v2763_v54 }
0x138e   : > { %4504 = vmatpush3.msk.msra.mxu0 %vm2476_vm6, %v2763_v54 }
0x1390   : > { %v3226_v55 = vpop.permute.xlu1 %3225 }
0x1391   : > { %4534 = vmatprep.subr.msk.mxu1 %vm1047_vm2, %v3226_v55 }
0x1392   : > { %4535 = vmatpush3.xpose.msk.msra.mxu1 %vm1047_vm2, %v3226_v55 }
0x1394   : > { %v3224_v57 = vpop.permute.xlu1 %3223 }
0x1395   : > { %4536 = vmatprep.subr.msk.mxu1 %vm1047_vm2, %v3224_v57 }
0x1396   : > { %4537 = vmatpush3.xpose.msk.msra.mxu1 %vm1047_vm2, %v3224_v57 }
0x1397   : > { %4553 = vmatprep.subr.mxu1 %v4779_v8 }
0x1398   : > { %v4711_v58 = vpop.eup %4710  ;;  %v3220_v60 = vpop.permute.xlu1 %3219 }
0x1399   : > { %4538 = vmatprep.mubr.msk.f32.mxu1 %vm1047_vm2, %v3220_v60  ;;  %v2753_v61 = vsel %vm2445_vm4, %v4711_v58, 0.0 }
0x139a   : > { %v4713_v62 = vpop.eup %4712  ;;  %2754 = vadd.xlane.f32.xlu0 %v2753_v61 }
0x139b   : > { %v2750_v63 = vsel %vm2441_vm5, %v4713_v62, 0.0 }
0x139e   : > { %2751 = vadd.xlane.f32.xlu0 %v2750_v63 }
0x13b3   : > { %v4495_v31 = vpop.f32.mrf.mxu0 }
0x13b4   : > { %2760 = vrot.lane.b32.xlu0 %v5122_v52, %s4785_s23  ;;  %s5388_s23 = sld [smem:[#allocation6_spill]] }
0x13b5   : > { %v5233_v36 = vpop.f32.mrf.mxu0 }
0x13b8   : > { %3221 = vrot.lane.b32.xlu0 %v5120_v50, %s5386_s18  ;;  %s5395_s18 = sld [smem:[#allocation12_spill]] }
0x13ba   : > { %v4216_v57 = vld [vmem:[%s5388_s23] ss:$0 sm:$0xff]  ;;  %s5396_s23 = sshll.u32 %s5398_s10, 3 }
0x13c9   : > { %v3028_v12 = vpop.xlane.xlu1 %3027 }
0x13ca   : > { %v3032_v17 = vsub.f32 %v3024_v23, %v3028_v12 }
0x13cc   : > { %v3034_v20 = vmul.f32 1.442695, %v3032_v17 }
0x13cd   : > { %v3051_v16 = vpop.permute.xlu1 %3050 }
0x13d7   : > { %3030 = vmax.xlane.f32.xlu0 %v3029_v4 }
0x1423   : > { %v2755_v5 = vpop.xlane.xlu0 %2754 }
0x1424   : > { %4714 = vrcp.f32 %v2755_v5 }
0x1427   : > { %v2752_v6 = vpop.xlane.xlu0 %2751 }
0x1428   : > { %4716 = vrcp.f32 %v2752_v6 }
0x142b   : > { %v2761_v9 = vpop.permute.xlu0 %2760 }
0x142c   : > { %4505 = vmatprep.subr.mxu0 %v2761_v9 }
0x142d   : > { %4506 = vmatpush3.msra.mxu0 %v2761_v9 }
0x142e   : > { %4510 = vmatprep.subr.mxu0 %v2255_v10 }
0x142f   : > { %v3222_v11 = vpop.permute.xlu0 %3221 }
0x1430   : > { %4539 = vmatmul.mubr.msk.f32.vlgmr.msra.gmra.mxu1 %vm1047_vm2, %v3222_v11  ;;  %v2257_v11 = vld [vmem:[%s5384_s15 + $0x18] sm:$0xff] }
0x1431   : > { %4557 = vmatprep.mubr.msk.f32.mxu1 %vm4780_vm1, %v4779_v8  ;;  %v4715_v0 = vpop.eup %4714 }
0x1432   : > { %v2759_v15 = vmul.f32 %v4715_v0, %v4711_v58  ;;  %v2642_v58 = vadd.f32 %v4495_v31, %v4216_v57 }
0x1435   : > { %v4717_v13 = vpop.eup %4716 }
0x1436   : > { %v2758_v14 = vmul.f32 %v4717_v13, %v4713_v62 }
0x1438   : > { %4507 = vmatprep.mubr.msk.f32.mxu0 %vm2441_vm5, %v2758_v14 }
0x1439   : > { %4508 = vmatmul.mubr.msk.f32.vlgmr.msra.gmra.mxu0 %vm2441_vm5, %v2759_v15 }
0x143a   : > { %4511 = vmatpush3.msra.mxu0 %v2255_v10 }
0x143b   : > { %4522 = vmatprep.subr.msk.mxu0 %vm2476_vm6, %v3051_v16 }
0x1460   : > { %v3031_v18 = vpop.xlane.xlu0 %3030 }
0x1461   : > { %v3033_v19 = vsub.f32 %v3025_v3, %v3031_v18 }
0x1463   : > { %v3036_v21 = vmul.f32 1.442695, %v3033_v19 }
0x1465   : > { %4718 = vpow2.f32 %v3036_v21 }
0x1466   : > { %4720 = vpow2.f32 %v3034_v20 }
0x1472   : > { %v4719_v22 = vpop.eup %4718 }
0x1473   : > { %v3041_v24 = vsel %vm2445_vm4, %v4719_v22, 0.0  ;;  %v4721_v25 = vpop.eup %4720 }
0x1474   : > { %3042 = vadd.xlane.f32.xlu0 %v3041_v24  ;;  %v3038_v26 = vsel %vm2441_vm5, %v4721_v25, 0.0  ;;  %v3507_v24 = vld [vmem:[%s4931_s6] sm:$0x1] }
0x1478   : > { %3039 = vadd.xlane.f32.xlu0 %v3038_v26 }
0x148e   : > { %3048 = vrot.lane.b32.xlu0 %v5122_v52, %s5387_s22  ;;  %s916_s22 = scalar_lea.vmem %s4941_s24, %s5398_s10 }
0x14f0   : > { %v4540_v27 = vpop.f32.mrf.mxu1 }
0x14f1   : > { %v3311_v29 = vmul.f32 0.35355338, %v4540_v27 }
0x14f2   : > { %v3301_v30 = vpop.f32.mrf.mxu1 }
0x14f3   : > { %v3310_v32 = vmul.f32 0.35355338, %v3301_v30  ;;  %v3313_v33 = vadd.f32 %v3311_v29, %v5137_v56 }
0x14f5   : > { %v3317_v34 = vsel %vm2445_vm4, %v3313_v33, -inf  ;;  %v3312_v35 = vadd.f32 %v3310_v32, %v5140_v59 }
0x14f6   : > { %3318 = vmax.xlane.f32.xlu0 %v3317_v34 }
0x14f7   : > { %v3314_v37 = vsel %vm2441_vm5, %v3312_v35, -inf }
0x14f8   : > { %3315 = vmax.xlane.f32.xlu1 %v3314_v37 }
0x14f9   : > { %v4509_v38 = vpop.f32.mrf.mxu0 }
0x14fb   : > { %v2839_v39 = vpop.f32.mrf.mxu0 }
0x14fc   : > { %4512 = vmatprep.mubr.msk.f32.mxu0 %vm1047_vm2, %v2839_v39 }
0x14fd   : > { %4513 = vmatmul.mubr.msk.f32.vlgmr.msra.gmra.mxu0 %vm1047_vm2, %v4509_v38  ;;  %v3043_v40 = vpop.xlane.xlu0 %3042 }
0x14fe   : > { %4523 = vmatpush3.msk.msra.mxu0 %vm2476_vm6, %v3051_v16  ;;  %4722 = vrcp.f32 %v3043_v40  ;;  %v2641_v16 = vadd.f32 %v4216_v57, %v5233_v36 }
0x1501   : > { %v3040_v56 = vpop.xlane.xlu0 %3039 }
0x1502   : > { %4724 = vrcp.f32 %v3040_v56 }
0x1505   : > { %v3049_v59 = vpop.permute.xlu0 %3048 }
0x1506   : > { %4524 = vmatprep.subr.mxu0 %v3049_v59 }
0x1507   : > { %4525 = vmatpush3.msra.mxu0 %v3049_v59 }
0x1508   : > { %4529 = vmatprep.subr.mxu0 %v2256_v44 }
0x150b   : > { %v4723_v28 = vpop.eup %4722 }
0x150c   : > { %v3047_v43 = vmul.f32 %v4723_v28, %v4719_v22  ;;  %v3681_v28 = vld [vmem:[%s5390_s28 + $0x18] sm:$0xff] }
0x150f   : > { %v4725_v41 = vpop.eup %4724 }
0x1510   : > { %v3046_v42 = vmul.f32 %v4725_v41, %v4721_v25  ;;  %v3584_v25 = vld [vmem:[%s4936_s20] sm:$0xff]  ;;  %v3680_v41 = vld [vmem:[%s5390_s28 + $0x10] sm:$0xff] }
0x1512   : > { %4526 = vmatprep.mubr.msk.f32.mxu0 %vm2441_vm5, %v3046_v42  ;;  %v3679_v42 = vld [vmem:[%s5390_s28 + $0x8] sm:$0xff] }
0x1513   : > { %4527 = vmatmul.mubr.msk.f32.vlgmr.msra.gmra.mxu0 %vm2441_vm5, %v3047_v43  ;;  %v3678_v43 = vld [vmem:[%s5390_s28] sm:$0xff] }
0x1514   : > { %4530 = vmatpush3.msra.mxu0 %v2256_v44 }
0x157f   : > { %v3319_v23 = vpop.xlane.xlu0 %3318 }
0x1580   : > { %v3321_v45 = vsub.f32 %v3313_v33, %v3319_v23 }
0x1581   : > { %v3316_v46 = vpop.xlane.xlu1 %3315 }
0x1582   : > { %v3324_v47 = vmul.f32 1.442695, %v3321_v45  ;;  %v3320_v48 = vsub.f32 %v3312_v35, %v3316_v46 }
0x1584   : > { %4726 = vpow2.f32 %v3324_v47  ;;  %v3322_v49 = vmul.f32 1.442695, %v3320_v48 }
0x1586   : > { %4728 = vpow2.f32 %v3322_v49 }
0x1591   : > { %v4727_v51 = vpop.eup %4726 }
0x1592   : > { %v3329_v53 = vsel %vm2445_vm4, %v4727_v51, 0.0 }
0x1593   : > { %v4729_v54 = vpop.eup %4728  ;;  %3330 = vadd.xlane.f32.xlu0 %v3329_v53 }
0x1594   : > { %v3326_v55 = vsel %vm2441_vm5, %v4729_v54, 0.0 }
0x1595   : > { %3327 = vadd.xlane.f32.xlu1 %v3326_v55  ;;  %v3661_v55 = vld [vmem:[%s5392_s11] sm:$0x1] }
0x15a6   : > { %3338 = vrot.lane.b32.xlu1 %v5120_v50, %s5389_s26 }
0x15a9   : > { %3336 = vrot.lane.b32.xlu0 %v5122_v52, %s5389_s26  ;;  %s920_s26 = scalar_lea.vmem %s4946_s19, %s5396_s23 }
0x15bd   : > { %v4514_v60 = vpop.f32.mrf.mxu0 }
0x15be   : > { %v2930_v61 = vadd.f32 %v4514_v60, %v2642_v58 }
0x15bf   : > { %v2920_v62 = vpop.f32.mrf.mxu0 }
0x15c0   : > { %v2929_v17 = vadd.f32 %v2920_v62, %v2641_v16 }
0x15d3   : > { %v4528_v63 = vpop.f32.mrf.mxu0 }
0x15d5   : > { %v3127_v2 = vpop.f32.mrf.mxu0 }
0x15d6   : > { %4531 = vmatprep.mubr.msk.f32.mxu0 %vm1047_vm2, %v3127_v2 }
0x15d7   : > { %4532 = vmatmul.mubr.msk.f32.vlgmr.msra.gmra.mxu0 %vm1047_vm2, %v4528_v63  ;;  %v4251_v63 = vld [vmem:[%s5392_s11] ss:$0 sm:$0xff] }
0x161c   : > { %v3331_v3 = vpop.xlane.xlu0 %3330 }
0x161d   : > { %4730 = vrcp.f32 %v3331_v3  ;;  %v3768_v3 = vld [vmem:[%s5393_s0 + $0x38] sm:$0xff] }
0x161e   : > { %v3328_v4 = vpop.xlane.xlu1 %3327 }
0x161f   : > { %4732 = vrcp.f32 %v3328_v4  ;;  %v3767_v4 = vld [vmem:[%s5393_s0 + $0x30] sm:$0xff] }
0x1620   : > { %v3337_v52 = vpop.permute.xlu0 %3336 }
0x1622   : > { %v3339_v50 = vpop.permute.xlu1 %3338 }
0x1623   : > { %4541 = vmatprep.subr.msk.mxu0 %vm2476_vm6, %v3339_v50 }
0x1624   : > { %4542 = vmatpush3.msk.msra.mxu0 %vm2476_vm6, %v3339_v50  ;;  %v3766_v50 = vld [vmem:[%s5393_s0 + $0x28] sm:$0xff] }
0x1625   : > { %4543 = vmatprep.subr.mxu0 %v3337_v52 }
0x1626   : > { %4544 = vmatpush3.msra.mxu0 %v3337_v52  ;;  %v3765_v52 = vld [vmem:[%s5393_s0 + $0x20] sm:$0xff] }
0x1627   : > { %4548 = vmatprep.subr.mxu0 %v2257_v11 }
0x162a   : > { %v4731_v5 = vpop.eup %4730 }
0x162b   : > { %v3335_v10 = vmul.f32 %v4731_v5, %v4727_v51  ;;  %v3660_v51 = vld [vmem:[%s5391_s1] sm:$0x1]  ;;  %v3764_v5 = vld [vmem:[%s5393_s0 + $0x18] sm:$0xff] }
0x162c   : > { %v4733_v6 = vpop.eup %4732 }
0x162d   : > { %v3334_v9 = vmul.f32 %v4733_v6, %v4729_v54  ;;  %v3763_v6 = vld [vmem:[%s5393_s0 + $0x10] sm:$0xff] }
0x162f   : > { %4545 = vmatprep.mubr.msk.f32.mxu0 %vm2441_vm5, %v3334_v9  ;;  %v3762_v9 = vld [vmem:[%s5393_s0 + $0x8] sm:$0xff] }
0x1630   : > { %4546 = vmatmul.mubr.msk.f32.vlgmr.msra.gmra.mxu0 %vm2441_vm5, %v3335_v10  ;;  %v3761_v10 = vld [vmem:[%s5393_s0] sm:$0xff] }
0x1631   : > { %4549 = vmatpush3.msra.mxu0 %v2257_v11  ;;  %v3682_v11 = vld [vmem:[%s5394_s16] sm:$0x1] }
0x1632   : > { %4560 = vmatprep.subr.mxu0 %v4779_v8 }
0x1697   : > { %v4533_v0 = vpop.f32.mrf.mxu0 }
0x1698   : > { %v3218_v12 = vadd.f32 %v4533_v0, %v2930_v61  ;;  %v4250_v61 = vld [vmem:[%s5391_s1] ss:$0 sm:$0xff] }
0x1699   : > { %v3208_v13 = vpop.f32.mrf.mxu0 }
0x169a   : > { %v3217_v19 = vadd.f32 %v3208_v13, %v2929_v17 }
0x16f0   : > { %v4547_v14 = vpop.f32.mrf.mxu0 }
0x16f2   : > { %v3415_v15 = vpop.f32.mrf.mxu0 }
0x16f3   : > { %4550 = vmatprep.mubr.msk.f32.mxu0 %vm1047_vm2, %v3415_v15  ;;  %v4252_v15 = vld [vmem:[%s5394_s16] ss:$0 sm:$0xff] }
0x16f4   : > { %4551 = vmatmul.mubr.msk.f32.vlgmr.msra.gmra.mxu0 %vm1047_vm2, %v4547_v14 }
0x16f5   : > { %4564 = vmatprep.mubr.msk.f32.mxu0 %vm4780_vm1, %v4779_v8 }
0x17b4   : > { %v4552_v18 = vpop.f32.mrf.mxu0 }
0x17b5   : > { %v3506_v20 = vadd.f32 %v4552_v18, %v3218_v12 }
0x17b6   : > { %v3496_v21 = vpop.f32.mrf.mxu0 }
0x17b7   : > { %v3505_v22 = vadd.f32 %v3496_v21, %v3217_v19  ;;  %4554 = vmatpush3.msk.msra.mxu1 %vm2476_vm6, %v3506_v20  ;;  %4561 = vmatpush3.msk.msra.mxu0 %vm2476_vm6, %v3506_v20 }
0x17b8   : > { %4555 = vmatprep.subr.mxu1 %v4779_v8  ;;  %4562 = vmatprep.subr.mxu0 %v4779_v8 }
0x17b9   : > { %4556 = vmatpush3.msra.mxu1 %v3505_v22  ;;  %4563 = vmatpush3.msra.mxu0 %v3505_v22 }
0x17ba   : > { %4558 = vmatmul.mubr.msk.f32.vlgmr.msra.gmra.mxu1 %vm2441_vm5, %v3507_v24  ;;  %4565 = vmatmul.mubr.msk.f32.vlgmr.msra.gmra.mxu0 %vm2441_vm5, %v3584_v25 }
0x17bb   : > { %4567 = vmatprep.subr.mxu1 %v4779_v8  ;;  %4575 = vmatprep.mubr.msk.f32.mxu1 %vm4780_vm1, %v4779_v8 }
0x17bc   : > { %4578 = vmatprep.subr.mxu0 %v4779_v8  ;;  %4594 = vmatprep.mubr.msk.f32.mxu0 %vm4780_vm1, %v4779_v8 }
0x17bd   : > { %4568 = vmatpush3.msra.mxu1 %v3681_v28  ;;  %4579 = vmatpush3.msra.mxu0 %v3768_v3 }
0x17be   : > { %4569 = vmatprep.subr.mxu1 %v4779_v8  ;;  %4580 = vmatprep.subr.mxu0 %v4779_v8 }
0x17bf   : > { %4570 = vmatpush3.msra.mxu1 %v3680_v41  ;;  %4581 = vmatpush3.msra.mxu0 %v3767_v4 }
0x17c0   : > { %4571 = vmatprep.subr.mxu1 %v4779_v8  ;;  %4582 = vmatprep.subr.mxu0 %v4779_v8 }
0x17c1   : > { %4572 = vmatpush3.msra.mxu1 %v3679_v42  ;;  %4583 = vmatpush3.msra.mxu0 %v3766_v50 }
0x17c2   : > { %4573 = vmatprep.subr.mxu1 %v4779_v8  ;;  %4584 = vmatprep.subr.mxu0 %v4779_v8 }
0x17c3   : > { %4574 = vmatpush3.msra.mxu1 %v3678_v43  ;;  %4585 = vmatpush3.msra.mxu0 %v3765_v52 }
0x17c4   : > { %4597 = vmatprep.subr.mxu1 %v4779_v8  ;;  %4586 = vmatprep.subr.mxu0 %v4779_v8 }
0x17c5   : > { %4587 = vmatpush3.msra.mxu0 %v3764_v5 }
0x17c6   : > { %4588 = vmatprep.subr.mxu0 %v4779_v8 }
0x17c7   : > { %4589 = vmatpush3.msra.mxu0 %v3763_v6 }
0x17c8   : > { %4590 = vmatprep.subr.mxu0 %v4779_v8 }
0x17c9   : > { %4591 = vmatpush3.msra.mxu0 %v3762_v9 }
0x17ca   : > { %4592 = vmatprep.subr.mxu0 %v4779_v8 }
0x17cb   : > { %4593 = vmatpush3.msra.mxu0 %v3761_v10 }
0x187a   : > { %v3580_v26 = vpop.f32.mrf.mxu1  ;;  %v3654_v27 = vpop.f32.mrf.mxu0 }
0x187b   : > { %v5277_v29 = vadd.f32 %v3580_v26, %v5104_v7  ;;  %v5280_v30 = vadd.f32 %v3654_v27, %v5096_v1 }
0x187c   : > { %v4559_v31 = vpop.f32.mrf.mxu1  ;;  %v4566_v32 = vpop.f32.mrf.mxu0 }
0x187d   : > { %v3848_v33 = vsel %vm925_vm0, %v5280_v30, 0.0  ;;  %v3663_v34 = vsel %vm3662_vm7, %v5277_v29, 0.0  ;;  %v3769_v31 = vld [vmem:[%s5395_s18] sm:$0x1] }
0x187e   : > { %3849 = vadd.xlane.f32.xlu0 %v3848_v33  ;;  %3664 = vadd.xlane.f32.xlu1 %v3663_v34 }
0x1907   : > { %v3850_v35 = vpop.xlane.xlu0 %3849  ;;  %v3665_v36 = vpop.xlane.xlu1 %3664 }
0x1908   : > { %v3851_v7 = vmul.f32 0.03125, %v3850_v35  ;;  %v3666_v37 = vmul.f32 0.03125, %v3665_v36  ;;  %v4254_v36 = vld [vmem:[%s5395_s18] ss:$0 sm:$0xff] }
0x190a   : > { %v3852_v1 = vsub.f32 %v5280_v30, %v3851_v7  ;;  %v3667_v38 = vsub.f32 %v5277_v29, %v3666_v37 }
0x190c   : > { %v3853_v39 = vmul.f32 %v3852_v1, %v3852_v1  ;;  %v3668_v40 = vmul.f32 %v3667_v38, %v3667_v38 }
0x190e   : > { %v3854_v56 = vsel %vm925_vm0, %v3853_v39, 0.0  ;;  %v3669_v59 = vsel %vm3662_vm7, %v3668_v40, 0.0 }
0x190f   : > { %3855 = vadd.xlane.f32.xlu0 %v3854_v56  ;;  %3670 = vadd.xlane.f32.xlu1 %v3669_v59 }
0x1998   : > { %v3856_v44 = vpop.xlane.xlu0 %3855  ;;  %v3671_v23 = vpop.xlane.xlu1 %3670 }
0x1999   : > { %v3857_v45 = vmul.f32 0.03125, %v3856_v44  ;;  %v3672_v46 = vmul.f32 0.03125, %v3671_v23 }
0x199b   : > { %v3673_v47 = vadd.f32 1e-06, %v3672_v46  ;;  %v3858_v48 = vadd.f32 1e-06, %v3857_v45 }
0x199d   : > { %4734 = vrsqrt.f32 %v3673_v47 }
0x199e   : > { %4736 = vrsqrt.f32 %v3858_v48 }
0x19aa   : > { %v4735_v49 = vpop.eup %4734 }
0x19ab   : > { %v3675_v53 = vmul.f32 %v4735_v49, %v3667_v38  ;;  %v4737_v54 = vpop.eup %4736 }
0x19ac   : > { %v3860_v58 = vmul.f32 %v4737_v54, %v3852_v1 }
0x19ad   : > { %v3676_v57 = vmul.f32 %v3675_v53, %v3660_v51 }
0x19ae   : > { %v3867_v62 = vmul.f32 %v4250_v61, %v3860_v58 }
0x19af   : > { %v3677_v60 = vadd.f32 %v3676_v57, %v3661_v55 }
0x19b0   : > { %v3874_v2 = vadd.f32 %v4251_v63, %v3867_v62 }
0x19b1   : > { %4576 = vmatmul.mubr.msk.f32.vlgmr.msra.gmra.mxu1 %vm925_vm0, %v3677_v60 }
0x19b2   : > { %4598 = vmatpush3.msra.mxu1 %v3681_v28  ;;  %4605 = vmatprep.mubr.msk.f32.mxu1 %vm4780_vm1, %v4779_v8 }
0x19b3   : > { %4599 = vmatprep.subr.mxu1 %v4779_v8 }
0x19b4   : > { %4600 = vmatpush3.msra.mxu1 %v3680_v41 }
0x19b5   : > { %4601 = vmatprep.subr.mxu1 %v4779_v8 }
0x19b6   : > { %4602 = vmatpush3.msra.mxu1 %v3679_v42 }
0x19b7   : > { %4603 = vmatprep.subr.mxu1 %v4779_v8 }
0x19b8   : > { %4604 = vmatpush3.msra.mxu1 %v3678_v43 }
0x19b9   : > { %4606 = vmatmul.mubr.msk.f32.vlgmr.msra.gmra.mxu1 %vm925_vm0, %v3874_v2  ;;  %4608 = vmatprep.subr.mxu1 %v4779_v8 }
0x19ba   : > { %4624 = vmatprep.mubr.msk.f32.mxu1 %vm4780_vm1, %v4779_v8  ;;  %4609 = vmatpush3.msra.mxu1 %v3768_v3 }
0x19bb   : > { %4610 = vmatprep.subr.mxu1 %v4779_v8 }
0x19bc   : > { %4611 = vmatpush3.msra.mxu1 %v3767_v4 }
0x19bd   : > { %4612 = vmatprep.subr.mxu1 %v4779_v8 }
0x19be   : > { %4613 = vmatpush3.msra.mxu1 %v3766_v50 }
0x19bf   : > { %4614 = vmatprep.subr.mxu1 %v4779_v8 }
0x19c0   : > { %4615 = vmatpush3.msra.mxu1 %v3765_v52 }
0x19c1   : > { %4616 = vmatprep.subr.mxu1 %v4779_v8 }
0x19c2   : > { %4617 = vmatpush3.msra.mxu1 %v3764_v5 }
0x19c3   : > { %4618 = vmatprep.subr.mxu1 %v4779_v8 }
0x19c4   : > { %4619 = vmatpush3.msra.mxu1 %v3763_v6 }
0x19c5   : > { %4620 = vmatprep.subr.mxu1 %v4779_v8 }
0x19c6   : > { %4621 = vmatpush3.msra.mxu1 %v3762_v9 }
0x19c7   : > { %4622 = vmatprep.subr.mxu1 %v4779_v8 }
0x19c8   : > { %4623 = vmatpush3.msra.mxu1 %v3761_v10 }
0x1a71   : > { %v3752_v0 = vpop.f32.mrf.mxu1 }
0x1a72   : > { %v3753_v12 = vadd.f32 %v3752_v0, %v3682_v11 }
0x1a73   : > { %v4577_v13 = vpop.f32.mrf.mxu1 }
0x1a74   : > { %v3757_v14 = vmul.f32 0.70710677, %v3753_v12  ;;  %v3756_v21 = vmul.f32 0.5, %v3753_v12 }
0x1a76   : > { %4738 = verf.f32 %v3757_v14 }
0x1a79   : > { %v3955_v16 = vpop.f32.mrf.mxu1 }
0x1a7a   : > { %v3956_v17 = vadd.f32 %v4252_v15, %v3955_v16 }
0x1a7b   : > { %v4607_v18 = vpop.f32.mrf.mxu1 }
0x1a7c   : > { %v3960_v19 = vmul.f32 0.70710677, %v3956_v17  ;;  %v3959_v25 = vmul.f32 0.5, %v3956_v17 }
0x1a7e   : > { %4740 = verf.f32 %v3960_v19 }
0x1a83   : > { %v4739_v20 = vpop.eup %4738 }
0x1a84   : > { %v3759_v8 = vadd.f32 1.0, %v4739_v20 }
0x1a86   : > { %v3760_v22 = vmul.f32 %v3759_v8, %v3756_v21 }
0x1a88   : > { %4595 = vmatmul.mubr.msk.f32.vlgmr.msra.gmra.mxu0 %vm3770_vm8, %v3760_v22 }
0x1a8b   : > { %v4741_v24 = vpop.eup %4740 }
0x1a8c   : > { %v3962_v26 = vadd.f32 1.0, %v4741_v24 }
0x1a8e   : > { %v3963_v27 = vmul.f32 %v3962_v26, %v3959_v25 }
0x1a90   : > { %4625 = vmatmul.mubr.msk.f32.vlgmr.msra.gmra.mxu1 %vm3770_vm8, %v3963_v27 }
0x1b48   : > { %v3840_v32 = vpop.f32.mrf.mxu0 }
0x1b49   : > { %v3841_v33 = vadd.f32 %v3840_v32, %v3769_v31 }
0x1b4a   : > { %v4596_v34 = vpop.f32.mrf.mxu0 }
0x1b4b   : > { %v3844_v35 = vadd.f32 %v3841_v33, %v5277_v29 }
0x1b4d   : > { %3845 = vst.msk [vmem:[%s916_s22] sm:$0x1] %vm3662_vm7, %v3844_v35 }
0x1b50   : > { %v4048_v7 = vpop.f32.mrf.mxu1 }
0x1b51   : > { %v4049_v37 = vadd.f32 %v4254_v36, %v4048_v7 }
0x1b52   : > { %v4626_v1 = vpop.f32.mrf.mxu1 }
0x1b53   : > { %v4052_v38 = vadd.f32 %v4049_v37, %v5280_v30 }
0x1b55   : > { %4053 = vst.msk [vmem:[%s920_s26] sm:$0xff] %vm925_vm0, %v4052_v38 }
0x1b56 PF: > { %s70_s7 = sadd.s32 1, %s4748_s7  }
0x1b57   : > { %p67_p4 = scmp.ge.s32.totalorder %s70_s7, 4  }
0x1b59   :  { %69 = sbr.rel (!%p67_p4) target bundleno = 44 (0x2c), region = 206 }

</bundles_post_ra>
